<compile_context>
chip_gen: v5e
topology: v5e:2x2
jax: 0.10.0
libtpu: 0.0.40
codegen_flags: <defaults>
</compile_context>

<pallas_src>
import jax
import jax.numpy as jnp
from jax import lax
from jax.experimental import pallas as pl
from jax.experimental.pallas import tpu as pltpu

R_NUM = 2                     # cfg.GAN.R_NUM (cfg not provided) -> fixed to 2
IN_EPS = 1e-5                 # nn.InstanceNorm2d default eps
NEG_INF = -1e30


def _tpu_budget():
    """Generation-aware (vmem_limit_bytes, default spatial rows per tile)."""
    try:
        cap = int(pltpu.get_tpu_info().vmem_capacity_bytes)
    except Exception:
        cap = 64 * 1024 * 1024            # conservative fallback (v7x-sized)
    if cap >= 100 * 1024 * 1024:          # v5e / v6e: 128 MiB VMEM
        return 56 * 1024 * 1024, 2048
    return 36 * 1024 * 1024, 1024         # v7x: 64 MiB VMEM -> smaller tiles


VMEM_LIMIT, DEFAULT_TILE_HW = _tpu_budget()


def _cparams(dims):
    return pltpu.CompilerParams(dimension_semantics=dims,
                                vmem_limit_bytes=VMEM_LIMIT)


# ----------------------------- Pallas kernels ------------------------------

def _conv_patches(xp_ref, row0, tile_h, W):
    """From a per-batch-resident padded image ref (H+2, W+2, Cin) bf16, load
    the (tile_h+2)-row halo band at dynamic offset `row0` and build the
    (thw, 9*Cin) bf16 patch matrix (contraction axis = 9*Cin) for ONE MXU dot."""
    xb = xp_ref[pl.ds(row0, tile_h + 2)]          # (tile_h+2, W+2, Cin) bf16
    cin = xb.shape[-1]
    thw = tile_h * W
    pats = []
    for dh in range(3):
        for dw in range(3):
            pats.append(xb[dh:dh + tile_h, dw:dw + W, :].reshape(thw, cin))
    return jnp.concatenate(pats, axis=-1)         # (thw, 9*Cin) bf16


def _make_conv_kernel(tile_h, W, with_stats):
    """3x3 conv of one row tile as a single K=9*Cin bf16 MXU matmul; optionally
    accumulates per-channel sum / sum^2 (InstanceNorm stats) across tiles."""

    def kernel(xp_ref, w_ref, *out_refs):
        if with_stats:
            raw_ref, stats_ref = out_refs
        else:
            (raw_ref,) = out_refs
        row0 = pl.program_id(1) * tile_h
        pat = _conv_patches(xp_ref, row0, tile_h, W)           # (thw, 9*Cin)
        acc = jnp.dot(pat, w_ref[...], preferred_element_type=jnp.float32)
        raw_ref[...] = acc.astype(raw_ref.dtype)
        if with_stats:
            @pl.when(pl.program_id(1) == 0)
            def _():
                stats_ref[...] = jnp.zeros_like(stats_ref)
            stats_ref[...] += jnp.concatenate(
                [jnp.sum(acc, axis=0, keepdims=True),
                 jnp.sum(acc * acc, axis=0, keepdims=True)], axis=0)
    return kernel


def _make_finalize_kernel(HW, apply_glu, add_residual):
    """InstanceNorm2d (affine=False) from precomputed sum/sum^2, then optional
    GLU and residual add.  Elementwise, bf16 in / bf16 out, f32 math."""
    inv_hw = 1.0 / float(HW)

    def kernel(*refs):
        if add_residual:
            raw_ref, stats_ref, res_ref, o_ref = refs
        else:
            raw_ref, stats_ref, o_ref = refs
        y = raw_ref[...].astype(jnp.float32)                   # (thw, Cout)
        mean = stats_ref[0:1, :] * inv_hw                      # (1, Cout)
        # E[x^2]-E[x]^2 can cancel; clamp to >=0 so rsqrt never sees negatives.
        var = jnp.maximum(stats_ref[1:2, :] * inv_hw - mean * mean, 0.0)
        y = (y - mean) * lax.rsqrt(var + IN_EPS)
        if apply_glu:                                          # a * sigmoid(b)
            c = y.shape[-1] // 2
            y = y[:, :c] * jax.nn.sigmoid(y[:, c:])
        if add_residual:
            y = y + res_ref[...].astype(jnp.float32)
        o_ref[...] = y.astype(o_ref.dtype)
    return kernel


def _make_spatial_att_kernel():
    """Spatial (word) attention for one HW row tile + accumulation of the
    channel-attention reduction cl[t,g] = sum_hw wk[hw,t] * c_sp[hw,g]."""
    f32, bf16 = jnp.float32, jnp.bfloat16

    def kernel(h_ref, w_ref, wt_ref, spm_ref, wc_ref, wct_ref, wkp_ref,
               hcsp_ref, cl_ref):
        h = h_ref[...]                                         # (thw, ngf) bf16
        word = w_ref[...]                                      # (nef, T)  bf16
        word_t = wt_ref[...]                                   # (T, nef)  bf16

        # ---- SPATIAL_ATT stand-in: masked softmax over words per location ---
        src = jnp.dot(wc_ref[...], word, preferred_element_type=f32)      # (ngf,T)
        logits = jnp.dot(h, src.astype(bf16), preferred_element_type=f32)  # (thw,T)
        logits = jnp.where(spm_ref[...] > 0.0, NEG_INF, logits)
        # NOTE: rows with all words masked give a uniform distribution here
        # (torch masked_fill(-inf)+softmax would give NaN).
        logits = logits - jnp.max(logits, axis=-1, keepdims=True)
        e = jnp.exp(logits)
        attn = e * pl.reciprocal(jnp.sum(e, axis=-1, keepdims=True), approx=True)
        src_t = jnp.dot(word_t, wct_ref[...], preferred_element_type=f32)   # (T,ngf)
        c_sp = jnp.dot(attn.astype(bf16), src_t.astype(bf16),
                       preferred_element_type=f32)                          # (thw,ngf)
        hcsp_ref[...] = jnp.concatenate([h, c_sp.astype(bf16)], axis=-1)

        # ---- channel-attention pre-reduction (single wk orientation) --------
        wk = jnp.dot(wkp_ref[...], word, preferred_element_type=f32)        # (thw,T)
        part = lax.dot_general(wk.astype(bf16), c_sp.astype(bf16),
                               dimension_numbers=(((0,), (0,)), ((), ())),
                               preferred_element_type=f32)                   # (T,ngf)

        @pl.when(pl.program_id(1) == 0)
        def _():
            cl_ref[...] = jnp.zeros_like(cl_ref)
        cl_ref[...] += part
    return kernel


def _make_acm_channel_kernel(tile_h, W):
    """Fused DCM channel-attention apply + ACM/SAIN: softmax the accumulated
    (T, ngf) reduction, rebuild wk for this tile, compute c_ch, then apply the
    per-pixel weight/bias maps (one fused K=9*Cf matmul) to concat([h,c_sp,c_ch])."""
    f32, bf16 = jnp.float32, jnp.bfloat16
    thw = tile_h * W

    def kernel(hcsp_ref, cl_ref, chm_ref, w_ref, wkp_ref, fp_ref, wb_ref, o_ref):
        # ---- DCM_CHANNEL_ATT stand-in (word -> spatial projection) ----------
        # TODO(synk): DCM_CHANNEL_ATT source not provided; ControlGAN-style
        # stand-in with parameters tied to the fixed H*W is used.
        cl = jnp.where(chm_ref[...] > 0.0, NEG_INF, cl_ref[...])   # (T, ngf)
        cl = cl - jnp.max(cl, axis=0, keepdims=True)
        e = jnp.exp(cl)
        a_t = e * pl.reciprocal(jnp.sum(e, axis=0, keepdims=True), approx=True)
        wk = jnp.dot(wkp_ref[...], w_ref[...], preferred_element_type=f32)  # (thw,T)
        c_ch = jnp.dot(wk.astype(bf16), a_t.astype(bf16),
                       preferred_element_type=f32)                          # (thw,ngf)

        # ---- ACM / SAIN: out = x * conv_w(feat) + conv_b(feat) --------------
        row0 = pl.program_id(1) * tile_h
        pat = _conv_patches(fp_ref, row0, tile_h, W)                # (thw, 9*Cf)
        maps = jnp.dot(pat, wb_ref[...], preferred_element_type=f32)  # (thw, 6*ngf)
        x = jnp.concatenate([hcsp_ref[...].astype(f32), c_ch], axis=-1)  # (thw,3ngf)
        c3 = x.shape[-1]
        o_ref[...] = (x * maps[:, :c3] + maps[:, c3:]).astype(o_ref.dtype)
    return kernel


# ------------------------------ op wrappers --------------------------------

def _pick_tile_h(H, W, target_hw):
    """Largest divisor of H whose row tile fits the spatial budget and keeps
    the flattened tile 8-sublane aligned."""
    for d in range(H, 0, -1):
        if H % d:
            continue
        if d * W <= target_hw and (d == H or (d * W) % 16 == 0):
            return d
    return H


def _pad_hw(x_flat, H, W):
    """(B, H*W, C) -> zero-padded channels-last image (B, H+2, W+2, C) bf16."""
    B, _, C = x_flat.shape
    x = x_flat.reshape(B, H, W, C)
    return jnp.pad(x, ((0, 0), (1, 1), (1, 1), (0, 0))).astype(jnp.bfloat16)


def _conv3x3(xpad, w, H, W, tile_h, *, with_stats, out_dtype=jnp.bfloat16):
    """3x3 conv over a padded bf16 image; optionally also returns (B,2,Cout)
    per-channel [sum, sum^2] InstanceNorm statistics."""
    B = xpad.shape[0]
    Cin = xpad.shape[-1]
    Cout = w.shape[-1]
    HW, thw, nt = H * W, tile_h * W, H // tile_h

    in_specs = [
        # padded image stays resident per batch (index constant over t)
        pl.BlockSpec((None, H + 2, W + 2, Cin), lambda b, t: (b, 0, 0, 0)),
        pl.BlockSpec((9 * Cin, Cout), lambda b, t: (0, 0)),
    ]
    raw_spec = pl.BlockSpec((None, thw, Cout), lambda b, t: (b, t, 0))
    if with_stats:
        out_shape = (jax.ShapeDtypeStruct((B, HW, Cout), out_dtype),
                     jax.ShapeDtypeStruct((B, 2, Cout), jnp.float32))
        out_specs = (raw_spec,
                     pl.BlockSpec((None, 2, Cout), lambda b, t: (b, 0, 0)))
        dims = ("parallel", "arbitrary")     # stats accumulate across HW tiles
    else:
        out_shape = jax.ShapeDtypeStruct((B, HW, Cout), out_dtype)
        out_specs = raw_spec
        dims = ("parallel", "parallel")
    return pl.pallas_call(
        _make_conv_kernel(tile_h, W, with_stats),
        out_shape=out_shape,
        grid=(B, nt),
        in_specs=in_specs,
        out_specs=out_specs,
        compiler_params=_cparams(dims),
    )(xpad, w)


def _instance_norm_finalize(raw, stats, H, W, tile_h, *, glu, residual=None,
                            out_dtype=jnp.bfloat16):
    B, HW, Cout = raw.shape
    nt, thw = H // tile_h, tile_h * W
    out_c = Cout // 2 if glu else Cout
    args = [raw, stats]
    in_specs = [pl.BlockSpec((None, thw, Cout), lambda b, t: (b, t, 0)),
                pl.BlockSpec((None, 2, Cout), lambda b, t: (b, 0, 0))]
    if residual is not None:
        args.append(residual)
        in_specs.append(pl.BlockSpec((None, thw, out_c), lambda b, t: (b, t, 0)))
    return pl.pallas_call(
        _make_finalize_kernel(HW, glu, residual is not None),
        out_shape=jax.ShapeDtypeStruct((B, HW, out_c), out_dtype),
        grid=(B, nt),
        in_specs=in_specs,
        out_specs=pl.BlockSpec((None, thw, out_c), lambda b, t: (b, t, 0)),
        compiler_params=_cparams(("parallel", "parallel")),
    )(*args)


def spatial_attention_op(h_flat, word, word_t, sp_mask, wc, wc_t, wk,
                         H, W, tile_h):
    B, HW, ngf = h_flat.shape
    nef, T = word.shape[1], word.shape[2]
    nt, thw = H // tile_h, tile_h * W
    return pl.pallas_call(
        _make_spatial_att_kernel(),
        out_shape=(jax.ShapeDtypeStruct((B, HW, 2 * ngf), jnp.bfloat16),
                   jax.ShapeDtypeStruct((B, T, ngf), jnp.float32)),
        grid=(B, nt),
        in_specs=[pl.BlockSpec((None, thw, ngf), lambda b, t: (b, t, 0)),
                  pl.BlockSpec((None, nef, T), lambda b, t: (b, 0, 0)),
                  pl.BlockSpec((None, T, nef), lambda b, t: (b, 0, 0)),
                  pl.BlockSpec((None, 1, T), lambda b, t: (b, 0, 0)),
                  pl.BlockSpec((ngf, nef), lambda b, t: (0, 0)),
                  pl.BlockSpec((nef, ngf), lambda b, t: (0, 0)),
                  pl.BlockSpec((thw, nef), lambda b, t: (t, 0))],
        out_specs=(pl.BlockSpec((None, thw, 2 * ngf), lambda b, t: (b, t, 0)),
                   pl.BlockSpec((None, T, ngf), lambda b, t: (b, 0, 0))),
        compiler_params=_cparams(("parallel", "arbitrary")),
    )(h_flat, word, word_t, sp_mask, wc, wc_t, wk)


def acm_channel_apply_op(hcsp, cl, ch_mask, word, wk, feat_pad, wb,
                         H, W, tile_h):
    B, HW, ngf2 = hcsp.shape
    ngf = ngf2 // 2
    nef, T = word.shape[1], word.shape[2]
    Cf = feat_pad.shape[-1]
    C3 = 3 * ngf
    nt, thw = H // tile_h, tile_h * W
    return pl.pallas_call(
        _make_acm_channel_kernel(tile_h, W),
        out_shape=jax.ShapeDtypeStruct((B, HW, C3), jnp.bfloat16),
        grid=(B, nt),
        in_specs=[pl.BlockSpec((None, thw, ngf2), lambda b, t: (b, t, 0)),
                  pl.BlockSpec((None, T, ngf), lambda b, t: (b, 0, 0)),
                  pl.BlockSpec((T, 1), lambda b, t: (0, 0)),
                  pl.BlockSpec((None, nef, T), lambda b, t: (b, 0, 0)),
                  pl.BlockSpec((thw, nef), lambda b, t: (t, 0)),
                  pl.BlockSpec((None, H + 2, W + 2, Cf),
                               lambda b, t: (b, 0, 0, 0)),
                  pl.BlockSpec((9 * Cf, 2 * C3), lambda b, t: (0, 0))],
        out_specs=pl.BlockSpec((None, thw, C3), lambda b, t: (b, t, 0)),
        compiler_params=_cparams(("parallel", "parallel")),
    )(hcsp, cl, ch_mask, word, wk, feat_pad, wb)


# ------------------------------ parameters ---------------------------------

def _conv_w_to_mat(w):
    """PyTorch conv weight (Cout, Cin, 3, 3) -> (9*Cin, Cout) bf16, row order
    matching the (dh, dw, cin) patch-concat order of the kernels."""
    cout, cin = w.shape[0], w.shape[1]
    return jnp.transpose(w, (2, 3, 1, 0)).reshape(9 * cin, cout).astype(jnp.bfloat16)


def init_params(key, ngf, nef, HW):
    ks = jax.random.split(key, 6 + 2 * R_NUM)

    def nrm(k, shape, scale=0.1):
        return (scale * jax.random.normal(k, shape)).astype(jnp.float32)

    p = {}
    # SPATIAL_ATT stand-in: conv1x1(nef -> ngf), bias=False (both orientations
    # of this tiny weight are stored so no large transpose is needed in-kernel)
    wcv = nrm(ks[0], (ngf, nef))
    p["att_wc"] = wcv.astype(jnp.bfloat16)
    p["att_wc_t"] = wcv.T.astype(jnp.bfloat16)
    # DCM_CHANNEL_ATT stand-in: word -> spatial (nef -> H*W) projection.
    # Only ONE orientation is kept (review item); it is streamed tile-by-tile.
    p["chatt_wk"] = nrm(ks[1], (HW, nef)).astype(jnp.bfloat16)
    # ACM (SAIN): conv3x3(3->128); weight & bias convs fused column-wise
    p["acm_conv"] = _conv_w_to_mat(nrm(ks[2], (128, 3, 3, 3)))
    acm_w = _conv_w_to_mat(nrm(ks[3], (3 * ngf, 128, 3, 3)))
    acm_b = _conv_w_to_mat(nrm(ks[4], (3 * ngf, 128, 3, 3)))
    p["acm_wb"] = jnp.concatenate([acm_w, acm_b], axis=-1)     # (9*128, 6*ngf)
    # ResBlocks on 3*ngf channels
    res = []
    for i in range(R_NUM):
        w1 = _conv_w_to_mat(nrm(ks[5 + 2 * i], (6 * ngf, 3 * ngf, 3, 3)))
        w2 = _conv_w_to_mat(nrm(ks[6 + 2 * i], (3 * ngf, 3 * ngf, 3, 3)))
        res.append((w1, w2))
    p["res"] = res
    # final block: conv3x3(3*ngf -> 2*ngf) + IN + GLU -> ngf
    p["block_w"] = _conv_w_to_mat(nrm(ks[5 + 2 * R_NUM], (2 * ngf, 3 * ngf, 3, 3)))
    return p


# ------------------------------ forward pass --------------------------------

def dcm_next_stage_forward(params, h_code, c_code, word_embs, mask, img,
                           tile_hw=None):
    # TODO(synk): reference forward also prints h_code.shape; omitted so the
    # script prints only KERNEL_OK.
    del c_code  # overwritten by the spatial-attention output in the reference
    if tile_hw is None:
        tile_hw = DEFAULT_TILE_HW
    B, ngf, H, W = h_code.shape
    HW = H * W
    tile_h = _pick_tile_h(H, W, tile_hw)

    # channels-last, spatially flattened bf16 activations (NHWC end to end)
    h_flat = jnp.transpose(h_code, (0, 2, 3, 1)).reshape(B, HW, ngf)
    h_flat = h_flat.astype(jnp.bfloat16)
    img_flat = jnp.transpose(img, (0, 2, 3, 1)).reshape(B, HW, img.shape[1])

    # pad word axis to a lane-friendly width; padded words are masked out so
    # numerics match the unpadded computation.
    nef, T = word_embs.shape[1], word_embs.shape[2]
    T_pad = max(128, ((T + 127) // 128) * 128)
    we = jnp.pad(word_embs, ((0, 0), (0, 0), (0, T_pad - T))).astype(jnp.bfloat16)
    we_t = jnp.transpose(we, (0, 2, 1))
    sp_mask = jnp.pad(mask.astype(jnp.float32).reshape(B, 1, T),
                      ((0, 0), (0, 0), (0, T_pad - T)), constant_values=1.0)
    ch_mask = jnp.concatenate([jnp.zeros((T, 1), jnp.float32),
                               jnp.ones((T_pad - T, 1), jnp.float32)], axis=0)

    # spatial attention (HW-tiled) + channel-attention pre-reduction
    hcsp, cl = spatial_attention_op(h_flat, we, we_t, sp_mask,
                                    params["att_wc"], params["att_wc_t"],
                                    params["chatt_wk"], H, W, tile_h)

    # ACM / SAIN: image-feature conv, then fused channel-att apply + x*w + b
    img_pad = _pad_hw(img_flat, H, W)
    feat = _conv3x3(img_pad, params["acm_conv"], H, W, tile_h, with_stats=False)
    feat_pad = _pad_hw(feat, H, W)
    x = acm_channel_apply_op(hcsp, cl, ch_mask, we, params["chatt_wk"],
                             feat_pad, params["acm_wb"], H, W, tile_h)

    # ResBlocks on 3*ngf channels (two-pass InstanceNorm, bf16 intermediates)
    for w1, w2 in params["res"]:
        raw1, st1 = _conv3x3(_pad_hw(x, H, W), w1, H, W, tile_h, with_stats=True)
        y = _instance_norm_finalize(raw1, st1, H, W, tile_h, glu=True)
        raw2, st2 = _conv3x3(_pad_hw(y, H, W), w2, H, W, tile_h, with_stats=True)
        x = _instance_norm_finalize(raw2, st2, H, W, tile_h, glu=False,
                                    residual=x)

    # final block: conv3x3(3*ngf -> 2*ngf) + IN + GLU
    raw3, st3 = _conv3x3(_pad_hw(x, H, W), params["block_w"], H, W, tile_h,
                         with_stats=True)
    out = _instance_norm_finalize(raw3, st3, H, W, tile_h, glu=True,
                                  out_dtype=jnp.float32)                # (B,HW,ngf)
    return jnp.transpose(out.reshape(B, H, W, ngf), (0, 3, 1, 2))       # NCHW


# ---------------------------------- main ------------------------------------

if __name__ == "__main__":
    key = jax.random.PRNGKey(0)
    B, ngf, nef, ncf = 2, 4, 8, 8
    H = W = 8
    T = 6

    k1, k2, k3, kp = jax.random.split(key, 4)
    h_code = jax.random.normal(k1, (B, ngf, H, W), jnp.float32)
    c_code = jnp.zeros((B, nef), jnp.float32)        # unused by reference forward
    word_embs = jax.random.normal(k2, (B, nef, T), jnp.float32)
    mask = jnp.array([[0, 0, 0, 0, 1, 1],
                      [0, 0, 0, 1, 1, 1]], dtype=jnp.float32)  # 1 == padded word
    img = jax.random.normal(k3, (B, 3, H, W), jnp.float32)

    params = init_params(kp, ngf, nef, H * W)
    fwd = jax.jit(dcm_next_stage_forward, static_argnames=("tile_hw",))
    # tile_hw=32 forces 2 spatial tiles per image so the tiled InstanceNorm /
    # channel-attention accumulator paths are exercised at this tiny test size
    # (production default is generation-aware: 2048 on v5e/v6e, 1024 on v7x).
    out = fwd(params, h_code, c_code, word_embs, mask, img, tile_hw=32)
    jax.block_until_ready(out)
    assert out.shape == (B, ngf, H, W)
    assert bool(jnp.all(jnp.isfinite(out)))
    print("KERNEL_OK")
</pallas_src>

<mosaic_0001>
module attributes {stable_mosaic.version = 11 : i64} {
  func.func @kernel(%arg0: i32, %arg1: i32, %arg2: memref<1x32x4xbf16, #tpu.memory_space<vmem>>, %arg3: memref<1x8x128xbf16, #tpu.memory_space<vmem>>, %arg4: memref<1x128x8xbf16, #tpu.memory_space<vmem>>, %arg5: memref<1x1x128xf32, #tpu.memory_space<vmem>>, %arg6: memref<4x8xbf16, #tpu.memory_space<vmem>>, %arg7: memref<8x4xbf16, #tpu.memory_space<vmem>>, %arg8: memref<32x8xbf16, #tpu.memory_space<vmem>>, %arg9: memref<1x32x8xbf16, #tpu.memory_space<vmem>>, %arg10: memref<1x128x4xf32, #tpu.memory_space<vmem>>) attributes {dimension_semantics = [#tpu.dimension_semantics<parallel>, #tpu.dimension_semantics<arbitrary>], iteration_bounds = array<i64: 2, 2>, scalar_prefetch = 0 : i64, scratch_operands = 0 : i64, tpu.core_type = #tpu.core_type<tc>, window_params = [{transform_indices = @transform_0, window_bounds = array<i64: 1, 32, 4>}, {transform_indices = @transform_1, window_bounds = array<i64: 1, 8, 128>}, {transform_indices = @transform_2, window_bounds = array<i64: 1, 128, 8>}, {transform_indices = @transform_3, window_bounds = array<i64: 1, 1, 128>}, {pipeline_mode = #tpu.pipeline_mode<synchronous>, transform_indices = @transform_4, window_bounds = array<i64: 4, 8>}, {pipeline_mode = #tpu.pipeline_mode<synchronous>, transform_indices = @transform_5, window_bounds = array<i64: 8, 4>}, {transform_indices = @transform_6, window_bounds = array<i64: 32, 8>}, {transform_indices = @transform_7, window_bounds = array<i64: 1, 32, 8>}, {transform_indices = @transform_8, window_bounds = array<i64: 1, 128, 4>}]} {
    %c0 = arith.constant 0 : index
    %c0_0 = arith.constant 0 : index
    %c0_1 = arith.constant 0 : index
    %0 = vector.load %arg2[%c0, %c0_0, %c0_1] : memref<1x32x4xbf16, #tpu.memory_space<vmem>>, vector<1x32x4xbf16>
    %1 = vector.shape_cast %0 : vector<1x32x4xbf16> to vector<32x4xbf16>
    %c0_2 = arith.constant 0 : index
    %c0_3 = arith.constant 0 : index
    %c0_4 = arith.constant 0 : index
    %2 = vector.load %arg3[%c0_2, %c0_3, %c0_4] : memref<1x8x128xbf16, #tpu.memory_space<vmem>>, vector<1x8x128xbf16>
    %3 = vector.shape_cast %2 : vector<1x8x128xbf16> to vector<8x128xbf16>
    %c0_5 = arith.constant 0 : index
    %c0_6 = arith.constant 0 : index
    %c0_7 = arith.constant 0 : index
    %4 = vector.load %arg4[%c0_5, %c0_6, %c0_7] : memref<1x128x8xbf16, #tpu.memory_space<vmem>>, vector<1x128x8xbf16>
    %5 = vector.shape_cast %4 : vector<1x128x8xbf16> to vector<128x8xbf16>
    %c0_8 = arith.constant 0 : index
    %c0_9 = arith.constant 0 : index
    %6 = vector.load %arg6[%c0_8, %c0_9] : memref<4x8xbf16, #tpu.memory_space<vmem>>, vector<4x8xbf16>
    %cst = arith.constant dense<0.000000e+00> : vector<4x128xf32>
    %7 = tpu.matmul %6, %3, %cst {dimension_numbers = #tpu.dot_dimension_numbers<[1], [0], [0], [1], [0, 0, 1, 1], [], []>} : vector<4x8xbf16>, vector<8x128xbf16>, vector<4x128xf32> -> vector<4x128xf32>
    %8 = arith.truncf %7 : vector<4x128xf32> to vector<4x128xbf16>
    %cst_10 = arith.constant dense<0.000000e+00> : vector<32x128xf32>
    %9 = tpu.matmul %1, %8, %cst_10 {dimension_numbers = #tpu.dot_dimension_numbers<[1], [0], [0], [1], [0, 0, 1, 1], [], []>} : vector<32x4xbf16>, vector<4x128xbf16>, vector<32x128xf32> -> vector<32x128xf32>
    %c0_11 = arith.constant 0 : index
    %c0_12 = arith.constant 0 : index
    %c0_13 = arith.constant 0 : index
    %10 = vector.load %arg5[%c0_11, %c0_12, %c0_13] : memref<1x1x128xf32, #tpu.memory_space<vmem>>, vector<1x1x128xf32>
    %11 = vector.shape_cast %10 : vector<1x1x128xf32> to vector<1x128xf32>
    %cst_14 = arith.constant 0.000000e+00 : f32
    %12 = vector.broadcast %cst_14 : f32 to vector<1x128xf32>
    %13 = arith.cmpf ogt, %11, %12 : vector<1x128xf32>
    %cst_15 = arith.constant -1.000000e+30 : f32
    %14 = vector.shape_cast %13 : vector<1x128xi1> to vector<1x128xi1>
    %15 = vector.broadcast %14 : vector<1x128xi1> to vector<32x128xi1>
    %16 = vector.broadcast %cst_15 : f32 to vector<32x128xf32>
    %17 = arith.select %15, %16, %9 : vector<32x128xi1>, vector<32x128xf32>
    %cst_16 = arith.constant dense<0xFF800000> : vector<32xf32>
    %18 = vector.multi_reduction <maximumf>, %17, %cst_16 [1] : vector<32x128xf32> to vector<32xf32>
    %19 = vector.shape_cast %18 : vector<32xf32> to vector<32x1xf32>
    %20 = vector.broadcast %19 : vector<32x1xf32> to vector<32x128xf32>
    %21 = arith.subf %17, %20 : vector<32x128xf32>
    %22 = math.exp %21 : vector<32x128xf32>
    %cst_17 = arith.constant dense<0.000000e+00> : vector<32xf32>
    %23 = vector.multi_reduction <add>, %22, %cst_17 [1] : vector<32x128xf32> to vector<32xf32>
    %24 = vector.shape_cast %23 : vector<32xf32> to vector<32x1xf32>
    %25 = tpu.reciprocal %24 {approx = true} : vector<32x1xf32> -> vector<32x1xf32>
    %26 = vector.broadcast %25 : vector<32x1xf32> to vector<32x128xf32>
    %27 = arith.mulf %22, %26 : vector<32x128xf32>
    %c0_18 = arith.constant 0 : index
    %c0_19 = arith.constant 0 : index
    %28 = vector.load %arg7[%c0_18, %c0_19] : memref<8x4xbf16, #tpu.memory_space<vmem>>, vector<8x4xbf16>
    %cst_20 = arith.constant dense<0.000000e+00> : vector<128x4xf32>
    %29 = tpu.matmul %5, %28, %cst_20 {dimension_numbers = #tpu.dot_dimension_numbers<[1], [0], [0], [1], [0, 0, 1, 1], [], []>} : vector<128x8xbf16>, vector<8x4xbf16>, vector<128x4xf32> -> vector<128x4xf32>
    %30 = arith.truncf %27 : vector<32x128xf32> to vector<32x128xbf16>
    %31 = arith.truncf %29 : vector<128x4xf32> to vector<128x4xbf16>
    %cst_21 = arith.constant dense<0.000000e+00> : vector<32x4xf32>
    %32 = tpu.matmul %30, %31, %cst_21 {dimension_numbers = #tpu.dot_dimension_numbers<[1], [0], [0], [1], [0, 0, 1, 1], [], []>} : vector<32x128xbf16>, vector<128x4xbf16>, vector<32x4xf32> -> vector<32x4xf32>
    %33 = arith.truncf %32 : vector<32x4xf32> to vector<32x4xbf16>
    %34 = tpu.concatenate %1, %33 in 1 : vector<32x4xbf16>, vector<32x4xbf16> -> vector<32x8xbf16>
    %c0_22 = arith.constant 0 : index
    %c0_23 = arith.constant 0 : index
    %c0_24 = arith.constant 0 : index
    %35 = vector.load %arg9[%c0_22, %c0_23, %c0_24] : memref<1x32x8xbf16, #tpu.memory_space<vmem>>, vector<1x32x8xbf16>
    %36 = vector.shape_cast %35 : vector<1x32x8xbf16> to vector<32x8xbf16>
    %37 = vector.shape_cast %34 : vector<32x8xbf16> to vector<1x32x8xbf16>
    tpu.vector_store %arg9[%c0_22, %c0_23, %c0_24], %37 {strides = array<i32>} : memref<1x32x8xbf16, #tpu.memory_space<vmem>>, vector<1x32x8xbf16>,
    %c0_25 = arith.constant 0 : index
    %c0_26 = arith.constant 0 : index
    %38 = vector.load %arg8[%c0_25, %c0_26] : memref<32x8xbf16, #tpu.memory_space<vmem>>, vector<32x8xbf16>
    %cst_27 = arith.constant dense<0.000000e+00> : vector<32x128xf32>
    %39 = tpu.matmul %38, %3, %cst_27 {dimension_numbers = #tpu.dot_dimension_numbers<[1], [0], [0], [1], [0, 0, 1, 1], [], []>} : vector<32x8xbf16>, vector<8x128xbf16>, vector<32x128xf32> -> vector<32x128xf32>
    %40 = arith.truncf %39 : vector<32x128xf32> to vector<32x128xbf16>
    %41 = arith.truncf %32 : vector<32x4xf32> to vector<32x4xbf16>
    %cst_28 = arith.constant dense<0.000000e+00> : vector<128x4xf32>
    %42 = tpu.matmul %40, %41, %cst_28 {dimension_numbers = #tpu.dot_dimension_numbers<[0], [0], [1], [1], [0, 1, 1, 1], [], []>} : vector<32x128xbf16>, vector<32x4xbf16>, vector<128x4xf32> -> vector<128x4xf32>
    %c0_i32 = arith.constant 0 : i32
    %43 = arith.cmpi eq, %arg1, %c0_i32 : i32
    %44 = arith.extui %43 : i1 to i32
    %c0_i32_29 = arith.constant 0 : i32
    %45 = arith.cmpi ne, %44, %c0_i32_29 : i32
    scf.if %45 {
      %cst_36 = arith.constant 0.000000e+00 : f32
      %52 = vector.broadcast %cst_36 : f32 to vector<128x4xf32>
      %c0_37 = arith.constant 0 : index
      %c0_38 = arith.constant 0 : index
      %c0_39 = arith.constant 0 : index
      %53 = vector.load %arg10[%c0_37, %c0_38, %c0_39] : memref<1x128x4xf32, #tpu.memory_space<vmem>>, vector<1x128x4xf32>
      %54 = vector.shape_cast %53 : vector<1x128x4xf32> to vector<128x4xf32>
      %55 = vector.shape_cast %52 : vector<128x4xf32> to vector<1x128x4xf32>
      tpu.vector_store %arg10[%c0_37, %c0_38, %c0_39], %55 {strides = array<i32>} : memref<1x128x4xf32, #tpu.memory_space<vmem>>, vector<1x128x4xf32>,
    } else {
    }
    %c0_30 = arith.constant 0 : index
    %c0_31 = arith.constant 0 : index
    %c0_32 = arith.constant 0 : index
    %46 = vector.load %arg10[%c0_30, %c0_31, %c0_32] : memref<1x128x4xf32, #tpu.memory_space<vmem>>, vector<1x128x4xf32>
    %47 = vector.shape_cast %46 : vector<1x128x4xf32> to vector<128x4xf32>
    %48 = arith.addf %47, %42 : vector<128x4xf32>
    %c0_33 = arith.constant 0 : index
    %c0_34 = arith.constant 0 : index
    %c0_35 = arith.constant 0 : index
    %49 = vector.load %arg10[%c0_33, %c0_34, %c0_35] : memref<1x128x4xf32, #tpu.memory_space<vmem>>, vector<1x128x4xf32>
    %50 = vector.shape_cast %49 : vector<1x128x4xf32> to vector<128x4xf32>
    %51 = vector.shape_cast %48 : vector<128x4xf32> to vector<1x128x4xf32>
    tpu.vector_store %arg10[%c0_33, %c0_34, %c0_35], %51 {strides = array<i32>} : memref<1x128x4xf32, #tpu.memory_space<vmem>>, vector<1x128x4xf32>,
    return
  }
  func.func @transform_0(%arg0: i32, %arg1: i32) -> (i32, i32, i32) {
    %c0_i32 = arith.constant 0 : i32
    %c0_i32_0 = arith.constant 0 : i32
    return %arg0, %arg1, %c0_i32 : i32, i32, i32
  }
  func.func @transform_1(%arg0: i32, %arg1: i32) -> (i32, i32, i32) {
    %c0_i32 = arith.constant 0 : i32
    %c0_i32_0 = arith.constant 0 : i32
    %c0_i32_1 = arith.constant 0 : i32
    return %arg0, %c0_i32, %c0_i32_0 : i32, i32, i32
  }
  func.func @transform_2(%arg0: i32, %arg1: i32) -> (i32, i32, i32) {
    %c0_i32 = arith.constant 0 : i32
    %c0_i32_0 = arith.constant 0 : i32
    %c0_i32_1 = arith.constant 0 : i32
    return %arg0, %c0_i32, %c0_i32_0 : i32, i32, i32
  }
  func.func @transform_3(%arg0: i32, %arg1: i32) -> (i32, i32, i32) {
    %c0_i32 = arith.constant 0 : i32
    %c0_i32_0 = arith.constant 0 : i32
    %c0_i32_1 = arith.constant 0 : i32
    return %arg0, %c0_i32, %c0_i32_0 : i32, i32, i32
  }
  func.func @transform_4(%arg0: i32, %arg1: i32) -> (i32, i32) {
    %c0_i32 = arith.constant 0 : i32
    %c0_i32_0 = arith.constant 0 : i32
    %c0_i32_1 = arith.constant 0 : i32
    return %c0_i32, %c0_i32_0 : i32, i32
  }
  func.func @transform_5(%arg0: i32, %arg1: i32) -> (i32, i32) {
    %c0_i32 = arith.constant 0 : i32
    %c0_i32_0 = arith.constant 0 : i32
    %c0_i32_1 = arith.constant 0 : i32
    return %c0_i32, %c0_i32_0 : i32, i32
  }
  func.func @transform_6(%arg0: i32, %arg1: i32) -> (i32, i32) {
    %c0_i32 = arith.constant 0 : i32
    %c0_i32_0 = arith.constant 0 : i32
    return %arg1, %c0_i32 : i32, i32
  }
  func.func @transform_7(%arg0: i32, %arg1: i32) -> (i32, i32, i32) {
    %c0_i32 = arith.constant 0 : i32
    %c0_i32_0 = arith.constant 0 : i32
    return %arg0, %arg1, %c0_i32 : i32, i32, i32
  }
  func.func @transform_8(%arg0: i32, %arg1: i32) -> (i32, i32, i32) {
    %c0_i32 = arith.constant 0 : i32
    %c0_i32_0 = arith.constant 0 : i32
    %c0_i32_1 = arith.constant 0 : i32
    return %arg0, %c0_i32, %c0_i32_0 : i32, i32, i32
  }
}

module attributes {stable_mosaic.version = 11 : i64} {
  func.func @kernel(%arg0: i32, %arg1: i32, %arg2: memref<1x10x10x3xbf16, #tpu.memory_space<vmem>>, %arg3: memref<27x128xbf16, #tpu.memory_space<vmem>>, %arg4: memref<1x32x128xbf16, #tpu.memory_space<vmem>>) attributes {dimension_semantics = [#tpu.dimension_semantics<parallel>, #tpu.dimension_semantics<parallel>], iteration_bounds = array<i64: 2, 2>, scalar_prefetch = 0 : i64, scratch_operands = 0 : i64, tpu.core_type = #tpu.core_type<tc>, window_params = [{transform_indices = @transform_0, window_bounds = array<i64: 1, 10, 10, 3>}, {pipeline_mode = #tpu.pipeline_mode<synchronous>, transform_indices = @transform_1, window_bounds = array<i64: 27, 128>}, {transform_indices = @transform_2, window_bounds = array<i64: 1, 32, 128>}]} {
    %c4_i32 = arith.constant 4 : i32
    %0 = arith.muli %arg1, %c4_i32 : i32
    %c0 = arith.constant 0 : index
    %1 = arith.index_cast %0 : i32 to index
    %c0_0 = arith.constant 0 : index
    %c0_1 = arith.constant 0 : index
    %2 = vector.load %arg2[%c0, %1, %c0_0, %c0_1] : memref<1x10x10x3xbf16, #tpu.memory_space<vmem>>, vector<1x6x10x3xbf16>
    %3 = vector.shape_cast %2 : vector<1x6x10x3xbf16> to vector<6x10x3xbf16>
    %4 = vector.extract_strided_slice %3 {offsets = [0, 0, 0], sizes = [4, 8, 3], strides = [1, 1, 1]} : vector<6x10x3xbf16> to vector<4x8x3xbf16>
    %5 = vector.shape_cast %4 : vector<4x8x3xbf16> to vector<32x3xbf16>
    %6 = vector.extract_strided_slice %3 {offsets = [0, 1, 0], sizes = [4, 8, 3], strides = [1, 1, 1]} : vector<6x10x3xbf16> to vector<4x8x3xbf16>
    %7 = vector.shape_cast %6 : vector<4x8x3xbf16> to vector<32x3xbf16>
    %8 = vector.extract_strided_slice %3 {offsets = [0, 2, 0], sizes = [4, 8, 3], strides = [1, 1, 1]} : vector<6x10x3xbf16> to vector<4x8x3xbf16>
    %9 = vector.shape_cast %8 : vector<4x8x3xbf16> to vector<32x3xbf16>
    %10 = vector.extract_strided_slice %3 {offsets = [1, 0, 0], sizes = [4, 8, 3], strides = [1, 1, 1]} : vector<6x10x3xbf16> to vector<4x8x3xbf16>
    %11 = vector.shape_cast %10 : vector<4x8x3xbf16> to vector<32x3xbf16>
    %12 = vector.extract_strided_slice %3 {offsets = [1, 1, 0], sizes = [4, 8, 3], strides = [1, 1, 1]} : vector<6x10x3xbf16> to vector<4x8x3xbf16>
    %13 = vector.shape_cast %12 : vector<4x8x3xbf16> to vector<32x3xbf16>
    %14 = vector.extract_strided_slice %3 {offsets = [1, 2, 0], sizes = [4, 8, 3], strides = [1, 1, 1]} : vector<6x10x3xbf16> to vector<4x8x3xbf16>
    %15 = vector.shape_cast %14 : vector<4x8x3xbf16> to vector<32x3xbf16>
    %16 = vector.extract_strided_slice %3 {offsets = [2, 0, 0], sizes = [4, 8, 3], strides = [1, 1, 1]} : vector<6x10x3xbf16> to vector<4x8x3xbf16>
    %17 = vector.shape_cast %16 : vector<4x8x3xbf16> to vector<32x3xbf16>
    %18 = vector.extract_strided_slice %3 {offsets = [2, 1, 0], sizes = [4, 8, 3], strides = [1, 1, 1]} : vector<6x10x3xbf16> to vector<4x8x3xbf16>
    %19 = vector.shape_cast %18 : vector<4x8x3xbf16> to vector<32x3xbf16>
    %20 = vector.extract_strided_slice %3 {offsets = [2, 2, 0], sizes = [4, 8, 3], strides = [1, 1, 1]} : vector<6x10x3xbf16> to vector<4x8x3xbf16>
    %21 = vector.shape_cast %20 : vector<4x8x3xbf16> to vector<32x3xbf16>
    %22 = tpu.concatenate %5, %7, %9, %11, %13, %15, %17, %19, %21 in 1 : vector<32x3xbf16>, vector<32x3xbf16>, vector<32x3xbf16>, vector<32x3xbf16>, vector<32x3xbf16>, vector<32x3xbf16>, vector<32x3xbf16>, vector<32x3xbf16>, vector<32x3xbf16> -> vector<32x27xbf16>
    %c0_2 = arith.constant 0 : index
    %c0_3 = arith.constant 0 : index
    %23 = vector.load %arg3[%c0_2, %c0_3] : memref<27x128xbf16, #tpu.memory_space<vmem>>, vector<27x128xbf16>
    %cst = arith.constant dense<0.000000e+00> : vector<32x128xf32>
    %24 = tpu.matmul %22, %23, %cst {dimension_numbers = #tpu.dot_dimension_numbers<[1], [0], [0], [1], [0, 0, 1, 1], [], []>} : vector<32x27xbf16>, vector<27x128xbf16>, vector<32x128xf32> -> vector<32x128xf32>
    %25 = arith.truncf %24 : vector<32x128xf32> to vector<32x128xbf16>
    %c0_4 = arith.constant 0 : index
    %c0_5 = arith.constant 0 : index
    %c0_6 = arith.constant 0 : index
    %26 = vector.load %arg4[%c0_4, %c0_5, %c0_6] : memref<1x32x128xbf16, #tpu.memory_space<vmem>>, vector<1x32x128xbf16>
    %27 = vector.shape_cast %26 : vector<1x32x128xbf16> to vector<32x128xbf16>
    %28 = vector.shape_cast %25 : vector<32x128xbf16> to vector<1x32x128xbf16>
    tpu.vector_store %arg4[%c0_4, %c0_5, %c0_6], %28 {strides = array<i32>} : memref<1x32x128xbf16, #tpu.memory_space<vmem>>, vector<1x32x128xbf16>,
    return
  }
  func.func @transform_0(%arg0: i32, %arg1: i32) -> (i32, i32, i32, i32) {
    %c0_i32 = arith.constant 0 : i32
    %c0_i32_0 = arith.constant 0 : i32
    %c0_i32_1 = arith.constant 0 : i32
    %c0_i32_2 = arith.constant 0 : i32
    return %arg0, %c0_i32, %c0_i32_0, %c0_i32_1 : i32, i32, i32, i32
  }
  func.func @transform_1(%arg0: i32, %arg1: i32) -> (i32, i32) {
    %c0_i32 = arith.constant 0 : i32
    %c0_i32_0 = arith.constant 0 : i32
    %c0_i32_1 = arith.constant 0 : i32
    return %c0_i32, %c0_i32_0 : i32, i32
  }
  func.func @transform_2(%arg0: i32, %arg1: i32) -> (i32, i32, i32) {
    %c0_i32 = arith.constant 0 : i32
    %c0_i32_0 = arith.constant 0 : i32
    return %arg0, %arg1, %c0_i32 : i32, i32, i32
  }
}

module attributes {stable_mosaic.version = 11 : i64} {
  func.func @kernel(%arg0: i32, %arg1: i32, %arg2: memref<1x32x8xbf16, #tpu.memory_space<vmem>>, %arg3: memref<1x128x4xf32, #tpu.memory_space<vmem>>, %arg4: memref<128x1xf32, #tpu.memory_space<vmem>>, %arg5: memref<1x8x128xbf16, #tpu.memory_space<vmem>>, %arg6: memref<32x8xbf16, #tpu.memory_space<vmem>>, %arg7: memref<1x10x10x128xbf16, #tpu.memory_space<vmem>>, %arg8: memref<1152x24xbf16, #tpu.memory_space<vmem>>, %arg9: memref<1x32x12xbf16, #tpu.memory_space<vmem>>) attributes {dimension_semantics = [#tpu.dimension_semantics<parallel>, #tpu.dimension_semantics<parallel>], iteration_bounds = array<i64: 2, 2>, scalar_prefetch = 0 : i64, scratch_operands = 0 : i64, tpu.core_type = #tpu.core_type<tc>, window_params = [{transform_indices = @transform_0, window_bounds = array<i64: 1, 32, 8>}, {transform_indices = @transform_1, window_bounds = array<i64: 1, 128, 4>}, {pipeline_mode = #tpu.pipeline_mode<synchronous>, transform_indices = @transform_2, window_bounds = array<i64: 128, 1>}, {transform_indices = @transform_3, window_bounds = array<i64: 1, 8, 128>}, {transform_indices = @transform_4, window_bounds = array<i64: 32, 8>}, {transform_indices = @transform_5, window_bounds = array<i64: 1, 10, 10, 128>}, {pipeline_mode = #tpu.pipeline_mode<synchronous>, transform_indices = @transform_6, window_bounds = array<i64: 1152, 24>}, {transform_indices = @transform_7, window_bounds = array<i64: 1, 32, 12>}]} {
    %c0 = arith.constant 0 : index
    %c0_0 = arith.constant 0 : index
    %0 = vector.load %arg4[%c0, %c0_0] : memref<128x1xf32, #tpu.memory_space<vmem>>, vector<128x1xf32>
    %cst = arith.constant 0.000000e+00 : f32
    %1 = vector.broadcast %cst : f32 to vector<128x1xf32>
    %2 = arith.cmpf ogt, %0, %1 : vector<128x1xf32>
    %c0_1 = arith.constant 0 : index
    %c0_2 = arith.constant 0 : index
    %c0_3 = arith.constant 0 : index
    %3 = vector.load %arg3[%c0_1, %c0_2, %c0_3] : memref<1x128x4xf32, #tpu.memory_space<vmem>>, vector<1x128x4xf32>
    %4 = vector.shape_cast %3 : vector<1x128x4xf32> to vector<128x4xf32>
    %cst_4 = arith.constant -1.000000e+30 : f32
    %5 = vector.shape_cast %2 : vector<128x1xi1> to vector<128x1xi1>
    %6 = vector.broadcast %5 : vector<128x1xi1> to vector<128x4xi1>
    %7 = vector.broadcast %cst_4 : f32 to vector<128x4xf32>
    %8 = arith.select %6, %7, %4 : vector<128x4xi1>, vector<128x4xf32>
    %cst_5 = arith.constant dense<0xFF800000> : vector<4xf32>
    %9 = vector.multi_reduction <maximumf>, %8, %cst_5 [0] : vector<128x4xf32> to vector<4xf32>
    %10 = vector.shape_cast %9 : vector<4xf32> to vector<1x4xf32>
    %11 = vector.broadcast %10 : vector<1x4xf32> to vector<128x4xf32>
    %12 = arith.subf %8, %11 : vector<128x4xf32>
    %13 = math.exp %12 : vector<128x4xf32>
    %cst_6 = arith.constant dense<0.000000e+00> : vector<4xf32>
    %14 = vector.multi_reduction <add>, %13, %cst_6 [0] : vector<128x4xf32> to vector<4xf32>
    %15 = vector.shape_cast %14 : vector<4xf32> to vector<1x4xf32>
    %16 = tpu.reciprocal %15 {approx = true} : vector<1x4xf32> -> vector<1x4xf32>
    %17 = vector.broadcast %16 : vector<1x4xf32> to vector<128x4xf32>
    %18 = arith.mulf %13, %17 : vector<128x4xf32>
    %c0_7 = arith.constant 0 : index
    %c0_8 = arith.constant 0 : index
    %19 = vector.load %arg6[%c0_7, %c0_8] : memref<32x8xbf16, #tpu.memory_space<vmem>>, vector<32x8xbf16>
    %c0_9 = arith.constant 0 : index
    %c0_10 = arith.constant 0 : index
    %c0_11 = arith.constant 0 : index
    %20 = vector.load %arg5[%c0_9, %c0_10, %c0_11] : memref<1x8x128xbf16, #tpu.memory_space<vmem>>, vector<1x8x128xbf16>
    %21 = vector.shape_cast %20 : vector<1x8x128xbf16> to vector<8x128xbf16>
    %cst_12 = arith.constant dense<0.000000e+00> : vector<32x128xf32>
    %22 = tpu.matmul %19, %21, %cst_12 {dimension_numbers = #tpu.dot_dimension_numbers<[1], [0], [0], [1], [0, 0, 1, 1], [], []>} : vector<32x8xbf16>, vector<8x128xbf16>, vector<32x128xf32> -> vector<32x128xf32>
    %23 = arith.truncf %22 : vector<32x128xf32> to vector<32x128xbf16>
    %24 = arith.truncf %18 : vector<128x4xf32> to vector<128x4xbf16>
    %cst_13 = arith.constant dense<0.000000e+00> : vector<32x4xf32>
    %25 = tpu.matmul %23, %24, %cst_13 {dimension_numbers = #tpu.dot_dimension_numbers<[1], [0], [0], [1], [0, 0, 1, 1], [], []>} : vector<32x128xbf16>, vector<128x4xbf16>, vector<32x4xf32> -> vector<32x4xf32>
    %c4_i32 = arith.constant 4 : i32
    %26 = arith.muli %arg1, %c4_i32 : i32
    %c0_14 = arith.constant 0 : index
    %27 = arith.index_cast %26 : i32 to index
    %c0_15 = arith.constant 0 : index
    %c0_16 = arith.constant 0 : index
    %28 = vector.load %arg7[%c0_14, %27, %c0_15, %c0_16] : memref<1x10x10x128xbf16, #tpu.memory_space<vmem>>, vector<1x6x10x128xbf16>
    %29 = vector.shape_cast %28 : vector<1x6x10x128xbf16> to vector<6x10x128xbf16>
    %30 = vector.extract_strided_slice %29 {offsets = [0, 0, 0], sizes = [4, 8, 128], strides = [1, 1, 1]} : vector<6x10x128xbf16> to vector<4x8x128xbf16>
    %31 = vector.shape_cast %30 : vector<4x8x128xbf16> to vector<32x128xbf16>
    %32 = vector.extract_strided_slice %29 {offsets = [0, 1, 0], sizes = [4, 8, 128], strides = [1, 1, 1]} : vector<6x10x128xbf16> to vector<4x8x128xbf16>
    %33 = vector.shape_cast %32 : vector<4x8x128xbf16> to vector<32x128xbf16>
    %34 = vector.extract_strided_slice %29 {offsets = [0, 2, 0], sizes = [4, 8, 128], strides = [1, 1, 1]} : vector<6x10x128xbf16> to vector<4x8x128xbf16>
    %35 = vector.shape_cast %34 : vector<4x8x128xbf16> to vector<32x128xbf16>
    %36 = vector.extract_strided_slice %29 {offsets = [1, 0, 0], sizes = [4, 8, 128], strides = [1, 1, 1]} : vector<6x10x128xbf16> to vector<4x8x128xbf16>
    %37 = vector.shape_cast %36 : vector<4x8x128xbf16> to vector<32x128xbf16>
    %38 = vector.extract_strided_slice %29 {offsets = [1, 1, 0], sizes = [4, 8, 128], strides = [1, 1, 1]} : vector<6x10x128xbf16> to vector<4x8x128xbf16>
    %39 = vector.shape_cast %38 : vector<4x8x128xbf16> to vector<32x128xbf16>
    %40 = vector.extract_strided_slice %29 {offsets = [1, 2, 0], sizes = [4, 8, 128], strides = [1, 1, 1]} : vector<6x10x128xbf16> to vector<4x8x128xbf16>
    %41 = vector.shape_cast %40 : vector<4x8x128xbf16> to vector<32x128xbf16>
    %42 = vector.extract_strided_slice %29 {offsets = [2, 0, 0], sizes = [4, 8, 128], strides = [1, 1, 1]} : vector<6x10x128xbf16> to vector<4x8x128xbf16>
    %43 = vector.shape_cast %42 : vector<4x8x128xbf16> to vector<32x128xbf16>
    %44 = vector.extract_strided_slice %29 {offsets = [2, 1, 0], sizes = [4, 8, 128], strides = [1, 1, 1]} : vector<6x10x128xbf16> to vector<4x8x128xbf16>
    %45 = vector.shape_cast %44 : vector<4x8x128xbf16> to vector<32x128xbf16>
    %46 = vector.extract_strided_slice %29 {offsets = [2, 2, 0], sizes = [4, 8, 128], strides = [1, 1, 1]} : vector<6x10x128xbf16> to vector<4x8x128xbf16>
    %47 = vector.shape_cast %46 : vector<4x8x128xbf16> to vector<32x128xbf16>
    %48 = tpu.concatenate %31, %33, %35, %37, %39, %41, %43, %45, %47 in 1 : vector<32x128xbf16>, vector<32x128xbf16>, vector<32x128xbf16>, vector<32x128xbf16>, vector<32x128xbf16>, vector<32x128xbf16>, vector<32x128xbf16>, vector<32x128xbf16>, vector<32x128xbf16> -> vector<32x1152xbf16>
    %c0_17 = arith.constant 0 : index
    %c0_18 = arith.constant 0 : index
    %49 = vector.load %arg8[%c0_17, %c0_18] : memref<1152x24xbf16, #tpu.memory_space<vmem>>, vector<1152x24xbf16>
    %cst_19 = arith.constant dense<0.000000e+00> : vector<32x24xf32>
    %50 = tpu.matmul %48, %49, %cst_19 {dimension_numbers = #tpu.dot_dimension_numbers<[1], [0], [0], [1], [0, 0, 1, 1], [], []>} : vector<32x1152xbf16>, vector<1152x24xbf16>, vector<32x24xf32> -> vector<32x24xf32>
    %c0_20 = arith.constant 0 : index
    %c0_21 = arith.constant 0 : index
    %c0_22 = arith.constant 0 : index
    %51 = vector.load %arg2[%c0_20, %c0_21, %c0_22] : memref<1x32x8xbf16, #tpu.memory_space<vmem>>, vector<1x32x8xbf16>
    %52 = vector.shape_cast %51 : vector<1x32x8xbf16> to vector<32x8xbf16>
    %53 = arith.extf %52 : vector<32x8xbf16> to vector<32x8xf32>
    %54 = tpu.concatenate %53, %25 in 1 : vector<32x8xf32>, vector<32x4xf32> -> vector<32x12xf32>
    %55 = vector.extract_strided_slice %50 {offsets = [0, 0], sizes = [32, 12], strides = [1, 1]} : vector<32x24xf32> to vector<32x12xf32>
    %56 = arith.mulf %54, %55 : vector<32x12xf32>
    %57 = vector.extract_strided_slice %50 {offsets = [0, 12], sizes = [32, 12], strides = [1, 1]} : vector<32x24xf32> to vector<32x12xf32>
    %58 = arith.addf %56, %57 : vector<32x12xf32>
    %59 = arith.truncf %58 : vector<32x12xf32> to vector<32x12xbf16>
    %c0_23 = arith.constant 0 : index
    %c0_24 = arith.constant 0 : index
    %c0_25 = arith.constant 0 : index
    %60 = vector.load %arg9[%c0_23, %c0_24, %c0_25] : memref<1x32x12xbf16, #tpu.memory_space<vmem>>, vector<1x32x12xbf16>
    %61 = vector.shape_cast %60 : vector<1x32x12xbf16> to vector<32x12xbf16>
    %62 = vector.shape_cast %59 : vector<32x12xbf16> to vector<1x32x12xbf16>
    tpu.vector_store %arg9[%c0_23, %c0_24, %c0_25], %62 {strides = array<i32>} : memref<1x32x12xbf16, #tpu.memory_space<vmem>>, vector<1x32x12xbf16>,
    return
  }
  func.func @transform_0(%arg0: i32, %arg1: i32) -> (i32, i32, i32) {
    %c0_i32 = arith.constant 0 : i32
    %c0_i32_0 = arith.constant 0 : i32
    return %arg0, %arg1, %c0_i32 : i32, i32, i32
  }
  func.func @transform_1(%arg0: i32, %arg1: i32) -> (i32, i32, i32) {
    %c0_i32 = arith.constant 0 : i32
    %c0_i32_0 = arith.constant 0 : i32
    %c0_i32_1 = arith.constant 0 : i32
    return %arg0, %c0_i32, %c0_i32_0 : i32, i32, i32
  }
  func.func @transform_2(%arg0: i32, %arg1: i32) -> (i32, i32) {
    %c0_i32 = arith.constant 0 : i32
    %c0_i32_0 = arith.constant 0 : i32
    %c0_i32_1 = arith.constant 0 : i32
    return %c0_i32, %c0_i32_0 : i32, i32
  }
  func.func @transform_3(%arg0: i32, %arg1: i32) -> (i32, i32, i32) {
    %c0_i32 = arith.constant 0 : i32
    %c0_i32_0 = arith.constant 0 : i32
    %c0_i32_1 = arith.constant 0 : i32
    return %arg0, %c0_i32, %c0_i32_0 : i32, i32, i32
  }
  func.func @transform_4(%arg0: i32, %arg1: i32) -> (i32, i32) {
    %c0_i32 = arith.constant 0 : i32
    %c0_i32_0 = arith.constant 0 : i32
    return %arg1, %c0_i32 : i32, i32
  }
  func.func @transform_5(%arg0: i32, %arg1: i32) -> (i32, i32, i32, i32) {
    %c0_i32 = arith.constant 0 : i32
    %c0_i32_0 = arith.constant 0 : i32
    %c0_i32_1 = arith.constant 0 : i32
    %c0_i32_2 = arith.constant 0 : i32
    return %arg0, %c0_i32, %c0_i32_0, %c0_i32_1 : i32, i32, i32, i32
  }
  func.func @transform_6(%arg0: i32, %arg1: i32) -> (i32, i32) {
    %c0_i32 = arith.constant 0 : i32
    %c0_i32_0 = arith.constant 0 : i32
    %c0_i32_1 = arith.constant 0 : i32
    return %c0_i32, %c0_i32_0 : i32, i32
  }
  func.func @transform_7(%arg0: i32, %arg1: i32) -> (i32, i32, i32) {
    %c0_i32 = arith.constant 0 : i32
    %c0_i32_0 = arith.constant 0 : i32
    return %arg0, %arg1, %c0_i32 : i32, i32, i32
  }
}

module attributes {stable_mosaic.version = 11 : i64} {
  func.func @kernel(%arg0: i32, %arg1: i32, %arg2: memref<1x10x10x12xbf16, #tpu.memory_space<vmem>>, %arg3: memref<108x24xbf16, #tpu.memory_space<vmem>>, %arg4: memref<1x32x24xbf16, #tpu.memory_space<vmem>>, %arg5: memref<1x2x24xf32, #tpu.memory_space<vmem>>) attributes {dimension_semantics = [#tpu.dimension_semantics<parallel>, #tpu.dimension_semantics<arbitrary>], iteration_bounds = array<i64: 2, 2>, scalar_prefetch = 0 : i64, scratch_operands = 0 : i64, tpu.core_type = #tpu.core_type<tc>, window_params = [{transform_indices = @transform_0, window_bounds = array<i64: 1, 10, 10, 12>}, {pipeline_mode = #tpu.pipeline_mode<synchronous>, transform_indices = @transform_1, window_bounds = array<i64: 108, 24>}, {transform_indices = @transform_2, window_bounds = array<i64: 1, 32, 24>}, {transform_indices = @transform_3, window_bounds = array<i64: 1, 2, 24>}]} {
    %c4_i32 = arith.constant 4 : i32
    %0 = arith.muli %arg1, %c4_i32 : i32
    %c0 = arith.constant 0 : index
    %1 = arith.index_cast %0 : i32 to index
    %c0_0 = arith.constant 0 : index
    %c0_1 = arith.constant 0 : index
    %2 = vector.load %arg2[%c0, %1, %c0_0, %c0_1] : memref<1x10x10x12xbf16, #tpu.memory_space<vmem>>, vector<1x6x10x12xbf16>
    %3 = vector.shape_cast %2 : vector<1x6x10x12xbf16> to vector<6x10x12xbf16>
    %4 = vector.extract_strided_slice %3 {offsets = [0, 0, 0], sizes = [4, 8, 12], strides = [1, 1, 1]} : vector<6x10x12xbf16> to vector<4x8x12xbf16>
    %5 = vector.shape_cast %4 : vector<4x8x12xbf16> to vector<32x12xbf16>
    %6 = vector.extract_strided_slice %3 {offsets = [0, 1, 0], sizes = [4, 8, 12], strides = [1, 1, 1]} : vector<6x10x12xbf16> to vector<4x8x12xbf16>
    %7 = vector.shape_cast %6 : vector<4x8x12xbf16> to vector<32x12xbf16>
    %8 = vector.extract_strided_slice %3 {offsets = [0, 2, 0], sizes = [4, 8, 12], strides = [1, 1, 1]} : vector<6x10x12xbf16> to vector<4x8x12xbf16>
    %9 = vector.shape_cast %8 : vector<4x8x12xbf16> to vector<32x12xbf16>
    %10 = vector.extract_strided_slice %3 {offsets = [1, 0, 0], sizes = [4, 8, 12], strides = [1, 1, 1]} : vector<6x10x12xbf16> to vector<4x8x12xbf16>
    %11 = vector.shape_cast %10 : vector<4x8x12xbf16> to vector<32x12xbf16>
    %12 = vector.extract_strided_slice %3 {offsets = [1, 1, 0], sizes = [4, 8, 12], strides = [1, 1, 1]} : vector<6x10x12xbf16> to vector<4x8x12xbf16>
    %13 = vector.shape_cast %12 : vector<4x8x12xbf16> to vector<32x12xbf16>
    %14 = vector.extract_strided_slice %3 {offsets = [1, 2, 0], sizes = [4, 8, 12], strides = [1, 1, 1]} : vector<6x10x12xbf16> to vector<4x8x12xbf16>
    %15 = vector.shape_cast %14 : vector<4x8x12xbf16> to vector<32x12xbf16>
    %16 = vector.extract_strided_slice %3 {offsets = [2, 0, 0], sizes = [4, 8, 12], strides = [1, 1, 1]} : vector<6x10x12xbf16> to vector<4x8x12xbf16>
    %17 = vector.shape_cast %16 : vector<4x8x12xbf16> to vector<32x12xbf16>
    %18 = vector.extract_strided_slice %3 {offsets = [2, 1, 0], sizes = [4, 8, 12], strides = [1, 1, 1]} : vector<6x10x12xbf16> to vector<4x8x12xbf16>
    %19 = vector.shape_cast %18 : vector<4x8x12xbf16> to vector<32x12xbf16>
    %20 = vector.extract_strided_slice %3 {offsets = [2, 2, 0], sizes = [4, 8, 12], strides = [1, 1, 1]} : vector<6x10x12xbf16> to vector<4x8x12xbf16>
    %21 = vector.shape_cast %20 : vector<4x8x12xbf16> to vector<32x12xbf16>
    %22 = tpu.concatenate %5, %7, %9, %11, %13, %15, %17, %19, %21 in 1 : vector<32x12xbf16>, vector<32x12xbf16>, vector<32x12xbf16>, vector<32x12xbf16>, vector<32x12xbf16>, vector<32x12xbf16>, vector<32x12xbf16>, vector<32x12xbf16>, vector<32x12xbf16> -> vector<32x108xbf16>
    %c0_2 = arith.constant 0 : index
    %c0_3 = arith.constant 0 : index
    %23 = vector.load %arg3[%c0_2, %c0_3] : memref<108x24xbf16, #tpu.memory_space<vmem>>, vector<108x24xbf16>
    %cst = arith.constant dense<0.000000e+00> : vector<32x24xf32>
    %24 = tpu.matmul %22, %23, %cst {dimension_numbers = #tpu.dot_dimension_numbers<[1], [0], [0], [1], [0, 0, 1, 1], [], []>} : vector<32x108xbf16>, vector<108x24xbf16>, vector<32x24xf32> -> vector<32x24xf32>
    %25 = arith.truncf %24 : vector<32x24xf32> to vector<32x24xbf16>
    %c0_4 = arith.constant 0 : index
    %c0_5 = arith.constant 0 : index
    %c0_6 = arith.constant 0 : index
    %26 = vector.load %arg4[%c0_4, %c0_5, %c0_6] : memref<1x32x24xbf16, #tpu.memory_space<vmem>>, vector<1x32x24xbf16>
    %27 = vector.shape_cast %26 : vector<1x32x24xbf16> to vector<32x24xbf16>
    %28 = vector.shape_cast %25 : vector<32x24xbf16> to vector<1x32x24xbf16>
    tpu.vector_store %arg4[%c0_4, %c0_5, %c0_6], %28 {strides = array<i32>} : memref<1x32x24xbf16, #tpu.memory_space<vmem>>, vector<1x32x24xbf16>,
    %c0_i32 = arith.constant 0 : i32
    %29 = arith.cmpi eq, %arg1, %c0_i32 : i32
    %30 = arith.extui %29 : i1 to i32
    %c0_i32_7 = arith.constant 0 : i32
    %31 = arith.cmpi ne, %30, %c0_i32_7 : i32
    scf.if %31 {
      %cst_16 = arith.constant 0.000000e+00 : f32
      %44 = vector.broadcast %cst_16 : f32 to vector<2x24xf32>
      %c0_17 = arith.constant 0 : index
      %c0_18 = arith.constant 0 : index
      %c0_19 = arith.constant 0 : index
      %45 = vector.load %arg5[%c0_17, %c0_18, %c0_19] : memref<1x2x24xf32, #tpu.memory_space<vmem>>, vector<1x2x24xf32>
      %46 = vector.shape_cast %45 : vector<1x2x24xf32> to vector<2x24xf32>
      %47 = vector.shape_cast %44 : vector<2x24xf32> to vector<1x2x24xf32>
      tpu.vector_store %arg5[%c0_17, %c0_18, %c0_19], %47 {strides = array<i32>} : memref<1x2x24xf32, #tpu.memory_space<vmem>>, vector<1x2x24xf32>,
    } else {
    }
    %c0_8 = arith.constant 0 : index
    %c0_9 = arith.constant 0 : index
    %c0_10 = arith.constant 0 : index
    %32 = vector.load %arg5[%c0_8, %c0_9, %c0_10] : memref<1x2x24xf32, #tpu.memory_space<vmem>>, vector<1x2x24xf32>
    %33 = vector.shape_cast %32 : vector<1x2x24xf32> to vector<2x24xf32>
    %cst_11 = arith.constant dense<0.000000e+00> : vector<24xf32>
    %34 = vector.multi_reduction <add>, %24, %cst_11 [0] : vector<32x24xf32> to vector<24xf32>
    %35 = vector.shape_cast %34 : vector<24xf32> to vector<1x24xf32>
    %36 = arith.mulf %24, %24 : vector<32x24xf32>
    %cst_12 = arith.constant dense<0.000000e+00> : vector<24xf32>
    %37 = vector.multi_reduction <add>, %36, %cst_12 [0] : vector<32x24xf32> to vector<24xf32>
    %38 = vector.shape_cast %37 : vector<24xf32> to vector<1x24xf32>
    %39 = tpu.concatenate %35, %38 in 0 : vector<1x24xf32>, vector<1x24xf32> -> vector<2x24xf32>
    %40 = arith.addf %33, %39 : vector<2x24xf32>
    %c0_13 = arith.constant 0 : index
    %c0_14 = arith.constant 0 : index
    %c0_15 = arith.constant 0 : index
    %41 = vector.load %arg5[%c0_13, %c0_14, %c0_15] : memref<1x2x24xf32, #tpu.memory_space<vmem>>, vector<1x2x24xf32>
    %42 = vector.shape_cast %41 : vector<1x2x24xf32> to vector<2x24xf32>
    %43 = vector.shape_cast %40 : vector<2x24xf32> to vector<1x2x24xf32>
    tpu.vector_store %arg5[%c0_13, %c0_14, %c0_15], %43 {strides = array<i32>} : memref<1x2x24xf32, #tpu.memory_space<vmem>>, vector<1x2x24xf32>,
    return
  }
  func.func @transform_0(%arg0: i32, %arg1: i32) -> (i32, i32, i32, i32) {
    %c0_i32 = arith.constant 0 : i32
    %c0_i32_0 = arith.constant 0 : i32
    %c0_i32_1 = arith.constant 0 : i32
    %c0_i32_2 = arith.constant 0 : i32
    return %arg0, %c0_i32, %c0_i32_0, %c0_i32_1 : i32, i32, i32, i32
  }
  func.func @transform_1(%arg0: i32, %arg1: i32) -> (i32, i32) {
    %c0_i32 = arith.constant 0 : i32
    %c0_i32_0 = arith.constant 0 : i32
    %c0_i32_1 = arith.constant 0 : i32
    return %c0_i32, %c0_i32_0 : i32, i32
  }
  func.func @transform_2(%arg0: i32, %arg1: i32) -> (i32, i32, i32) {
    %c0_i32 = arith.constant 0 : i32
    %c0_i32_0 = arith.constant 0 : i32
    return %arg0, %arg1, %c0_i32 : i32, i32, i32
  }
  func.func @transform_3(%arg0: i32, %arg1: i32) -> (i32, i32, i32) {
    %c0_i32 = arith.constant 0 : i32
    %c0_i32_0 = arith.constant 0 : i32
    %c0_i32_1 = arith.constant 0 : i32
    return %arg0, %c0_i32, %c0_i32_0 : i32, i32, i32
  }
}

module attributes {stable_mosaic.version = 11 : i64} {
  func.func @kernel(%arg0: i32, %arg1: i32, %arg2: memref<1x32x24xbf16, #tpu.memory_space<vmem>>, %arg3: memref<1x2x24xf32, #tpu.memory_space<vmem>>, %arg4: memref<1x32x12xbf16, #tpu.memory_space<vmem>>) attributes {dimension_semantics = [#tpu.dimension_semantics<parallel>, #tpu.dimension_semantics<parallel>], iteration_bounds = array<i64: 2, 2>, scalar_prefetch = 0 : i64, scratch_operands = 0 : i64, tpu.core_type = #tpu.core_type<tc>, window_params = [{transform_indices = @transform_0, window_bounds = array<i64: 1, 32, 24>}, {transform_indices = @transform_1, window_bounds = array<i64: 1, 2, 24>}, {transform_indices = @transform_2, window_bounds = array<i64: 1, 32, 12>}]} {
    %c0 = arith.constant 0 : index
    %c0_0 = arith.constant 0 : index
    %c0_1 = arith.constant 0 : index
    %0 = vector.load %arg2[%c0, %c0_0, %c0_1] : memref<1x32x24xbf16, #tpu.memory_space<vmem>>, vector<1x32x24xbf16>
    %1 = vector.shape_cast %0 : vector<1x32x24xbf16> to vector<32x24xbf16>
    %2 = arith.extf %1 : vector<32x24xbf16> to vector<32x24xf32>
    %c0_2 = arith.constant 0 : index
    %c0_3 = arith.constant 0 : index
    %c0_4 = arith.constant 0 : index
    %3 = vector.load %arg3[%c0_2, %c0_3, %c0_4] : memref<1x2x24xf32, #tpu.memory_space<vmem>>, vector<1x1x24xf32>
    %4 = vector.shape_cast %3 : vector<1x1x24xf32> to vector<1x24xf32>
    %cst = arith.constant 1.562500e-02 : f32
    %5 = vector.broadcast %cst : f32 to vector<1x24xf32>
    %6 = arith.mulf %4, %5 : vector<1x24xf32>
    %c0_5 = arith.constant 0 : index
    %c1 = arith.constant 1 : index
    %c0_6 = arith.constant 0 : index
    %7 = vector.load %arg3[%c0_5, %c1, %c0_6] : memref<1x2x24xf32, #tpu.memory_space<vmem>>, vector<1x1x24xf32>
    %8 = vector.shape_cast %7 : vector<1x1x24xf32> to vector<1x24xf32>
    %cst_7 = arith.constant 1.562500e-02 : f32
    %9 = vector.broadcast %cst_7 : f32 to vector<1x24xf32>
    %10 = arith.mulf %8, %9 : vector<1x24xf32>
    %11 = arith.mulf %6, %6 : vector<1x24xf32>
    %12 = arith.subf %10, %11 : vector<1x24xf32>
    %cst_8 = arith.constant 0.000000e+00 : f32
    %13 = vector.broadcast %cst_8 : f32 to vector<1x24xf32>
    %14 = arith.maximumf %12, %13 : vector<1x24xf32>
    %15 = vector.broadcast %6 : vector<1x24xf32> to vector<32x24xf32>
    %16 = arith.subf %2, %15 : vector<32x24xf32>
    %cst_9 = arith.constant 9.99999974E-6 : f32
    %17 = vector.broadcast %cst_9 : f32 to vector<1x24xf32>
    %18 = arith.addf %14, %17 : vector<1x24xf32>
    %19 = math.rsqrt %18 : vector<1x24xf32>
    %20 = vector.broadcast %19 : vector<1x24xf32> to vector<32x24xf32>
    %21 = arith.mulf %16, %20 : vector<32x24xf32>
    %22 = vector.extract_strided_slice %21 {offsets = [0, 0], sizes = [32, 12], strides = [1, 1]} : vector<32x24xf32> to vector<32x12xf32>
    %23 = vector.extract_strided_slice %21 {offsets = [0, 12], sizes = [32, 12], strides = [1, 1]} : vector<32x24xf32> to vector<32x12xf32>
    %24 = arith.negf %23 : vector<32x12xf32>
    %25 = math.exp %24 : vector<32x12xf32>
    %cst_10 = arith.constant 1.000000e+00 : f32
    %26 = vector.broadcast %cst_10 : f32 to vector<32x12xf32>
    %27 = arith.addf %26, %25 : vector<32x12xf32>
    %28 = arith.divf %26, %27 : vector<32x12xf32>
    %29 = arith.mulf %22, %28 : vector<32x12xf32>
    %30 = arith.truncf %29 : vector<32x12xf32> to vector<32x12xbf16>
    %c0_11 = arith.constant 0 : index
    %c0_12 = arith.constant 0 : index
    %c0_13 = arith.constant 0 : index
    %31 = vector.load %arg4[%c0_11, %c0_12, %c0_13] : memref<1x32x12xbf16, #tpu.memory_space<vmem>>, vector<1x32x12xbf16>
    %32 = vector.shape_cast %31 : vector<1x32x12xbf16> to vector<32x12xbf16>
    %33 = vector.shape_cast %30 : vector<32x12xbf16> to vector<1x32x12xbf16>
    tpu.vector_store %arg4[%c0_11, %c0_12, %c0_13], %33 {strides = array<i32>} : memref<1x32x12xbf16, #tpu.memory_space<vmem>>, vector<1x32x12xbf16>,
    return
  }
  func.func @transform_0(%arg0: i32, %arg1: i32) -> (i32, i32, i32) {
    %c0_i32 = arith.constant 0 : i32
    %c0_i32_0 = arith.constant 0 : i32
    return %arg0, %arg1, %c0_i32 : i32, i32, i32
  }
  func.func @transform_1(%arg0: i32, %arg1: i32) -> (i32, i32, i32) {
    %c0_i32 = arith.constant 0 : i32
    %c0_i32_0 = arith.constant 0 : i32
    %c0_i32_1 = arith.constant 0 : i32
    return %arg0, %c0_i32, %c0_i32_0 : i32, i32, i32
  }
  func.func @transform_2(%arg0: i32, %arg1: i32) -> (i32, i32, i32) {
    %c0_i32 = arith.constant 0 : i32
    %c0_i32_0 = arith.constant 0 : i32
    return %arg0, %arg1, %c0_i32 : i32, i32, i32
  }
}

module attributes {stable_mosaic.version = 11 : i64} {
  func.func @kernel(%arg0: i32, %arg1: i32, %arg2: memref<1x10x10x12xbf16, #tpu.memory_space<vmem>>, %arg3: memref<108x12xbf16, #tpu.memory_space<vmem>>, %arg4: memref<1x32x12xbf16, #tpu.memory_space<vmem>>, %arg5: memref<1x2x12xf32, #tpu.memory_space<vmem>>) attributes {dimension_semantics = [#tpu.dimension_semantics<parallel>, #tpu.dimension_semantics<arbitrary>], iteration_bounds = array<i64: 2, 2>, scalar_prefetch = 0 : i64, scratch_operands = 0 : i64, tpu.core_type = #tpu.core_type<tc>, window_params = [{transform_indices = @transform_0, window_bounds = array<i64: 1, 10, 10, 12>}, {pipeline_mode = #tpu.pipeline_mode<synchronous>, transform_indices = @transform_1, window_bounds = array<i64: 108, 12>}, {transform_indices = @transform_2, window_bounds = array<i64: 1, 32, 12>}, {transform_indices = @transform_3, window_bounds = array<i64: 1, 2, 12>}]} {
    %c4_i32 = arith.constant 4 : i32
    %0 = arith.muli %arg1, %c4_i32 : i32
    %c0 = arith.constant 0 : index
    %1 = arith.index_cast %0 : i32 to index
    %c0_0 = arith.constant 0 : index
    %c0_1 = arith.constant 0 : index
    %2 = vector.load %arg2[%c0, %1, %c0_0, %c0_1] : memref<1x10x10x12xbf16, #tpu.memory_space<vmem>>, vector<1x6x10x12xbf16>
    %3 = vector.shape_cast %2 : vector<1x6x10x12xbf16> to vector<6x10x12xbf16>
    %4 = vector.extract_strided_slice %3 {offsets = [0, 0, 0], sizes = [4, 8, 12], strides = [1, 1, 1]} : vector<6x10x12xbf16> to vector<4x8x12xbf16>
    %5 = vector.shape_cast %4 : vector<4x8x12xbf16> to vector<32x12xbf16>
    %6 = vector.extract_strided_slice %3 {offsets = [0, 1, 0], sizes = [4, 8, 12], strides = [1, 1, 1]} : vector<6x10x12xbf16> to vector<4x8x12xbf16>
    %7 = vector.shape_cast %6 : vector<4x8x12xbf16> to vector<32x12xbf16>
    %8 = vector.extract_strided_slice %3 {offsets = [0, 2, 0], sizes = [4, 8, 12], strides = [1, 1, 1]} : vector<6x10x12xbf16> to vector<4x8x12xbf16>
    %9 = vector.shape_cast %8 : vector<4x8x12xbf16> to vector<32x12xbf16>
    %10 = vector.extract_strided_slice %3 {offsets = [1, 0, 0], sizes = [4, 8, 12], strides = [1, 1, 1]} : vector<6x10x12xbf16> to vector<4x8x12xbf16>
    %11 = vector.shape_cast %10 : vector<4x8x12xbf16> to vector<32x12xbf16>
    %12 = vector.extract_strided_slice %3 {offsets = [1, 1, 0], sizes = [4, 8, 12], strides = [1, 1, 1]} : vector<6x10x12xbf16> to vector<4x8x12xbf16>
    %13 = vector.shape_cast %12 : vector<4x8x12xbf16> to vector<32x12xbf16>
    %14 = vector.extract_strided_slice %3 {offsets = [1, 2, 0], sizes = [4, 8, 12], strides = [1, 1, 1]} : vector<6x10x12xbf16> to vector<4x8x12xbf16>
    %15 = vector.shape_cast %14 : vector<4x8x12xbf16> to vector<32x12xbf16>
    %16 = vector.extract_strided_slice %3 {offsets = [2, 0, 0], sizes = [4, 8, 12], strides = [1, 1, 1]} : vector<6x10x12xbf16> to vector<4x8x12xbf16>
    %17 = vector.shape_cast %16 : vector<4x8x12xbf16> to vector<32x12xbf16>
    %18 = vector.extract_strided_slice %3 {offsets = [2, 1, 0], sizes = [4, 8, 12], strides = [1, 1, 1]} : vector<6x10x12xbf16> to vector<4x8x12xbf16>
    %19 = vector.shape_cast %18 : vector<4x8x12xbf16> to vector<32x12xbf16>
    %20 = vector.extract_strided_slice %3 {offsets = [2, 2, 0], sizes = [4, 8, 12], strides = [1, 1, 1]} : vector<6x10x12xbf16> to vector<4x8x12xbf16>
    %21 = vector.shape_cast %20 : vector<4x8x12xbf16> to vector<32x12xbf16>
    %22 = tpu.concatenate %5, %7, %9, %11, %13, %15, %17, %19, %21 in 1 : vector<32x12xbf16>, vector<32x12xbf16>, vector<32x12xbf16>, vector<32x12xbf16>, vector<32x12xbf16>, vector<32x12xbf16>, vector<32x12xbf16>, vector<32x12xbf16>, vector<32x12xbf16> -> vector<32x108xbf16>
    %c0_2 = arith.constant 0 : index
    %c0_3 = arith.constant 0 : index
    %23 = vector.load %arg3[%c0_2, %c0_3] : memref<108x12xbf16, #tpu.memory_space<vmem>>, vector<108x12xbf16>
    %cst = arith.constant dense<0.000000e+00> : vector<32x12xf32>
    %24 = tpu.matmul %22, %23, %cst {dimension_numbers = #tpu.dot_dimension_numbers<[1], [0], [0], [1], [0, 0, 1, 1], [], []>} : vector<32x108xbf16>, vector<108x12xbf16>, vector<32x12xf32> -> vector<32x12xf32>
    %25 = arith.truncf %24 : vector<32x12xf32> to vector<32x12xbf16>
    %c0_4 = arith.constant 0 : index
    %c0_5 = arith.constant 0 : index
    %c0_6 = arith.constant 0 : index
    %26 = vector.load %arg4[%c0_4, %c0_5, %c0_6] : memref<1x32x12xbf16, #tpu.memory_space<vmem>>, vector<1x32x12xbf16>
    %27 = vector.shape_cast %26 : vector<1x32x12xbf16> to vector<32x12xbf16>
    %28 = vector.shape_cast %25 : vector<32x12xbf16> to vector<1x32x12xbf16>
    tpu.vector_store %arg4[%c0_4, %c0_5, %c0_6], %28 {strides = array<i32>} : memref<1x32x12xbf16, #tpu.memory_space<vmem>>, vector<1x32x12xbf16>,
    %c0_i32 = arith.constant 0 : i32
    %29 = arith.cmpi eq, %arg1, %c0_i32 : i32
    %30 = arith.extui %29 : i1 to i32
    %c0_i32_7 = arith.constant 0 : i32
    %31 = arith.cmpi ne, %30, %c0_i32_7 : i32
    scf.if %31 {
      %cst_16 = arith.constant 0.000000e+00 : f32
      %44 = vector.broadcast %cst_16 : f32 to vector<2x12xf32>
      %c0_17 = arith.constant 0 : index
      %c0_18 = arith.constant 0 : index
      %c0_19 = arith.constant 0 : index
      %45 = vector.load %arg5[%c0_17, %c0_18, %c0_19] : memref<1x2x12xf32, #tpu.memory_space<vmem>>, vector<1x2x12xf32>
      %46 = vector.shape_cast %45 : vector<1x2x12xf32> to vector<2x12xf32>
      %47 = vector.shape_cast %44 : vector<2x12xf32> to vector<1x2x12xf32>
      tpu.vector_store %arg5[%c0_17, %c0_18, %c0_19], %47 {strides = array<i32>} : memref<1x2x12xf32, #tpu.memory_space<vmem>>, vector<1x2x12xf32>,
    } else {
    }
    %c0_8 = arith.constant 0 : index
    %c0_9 = arith.constant 0 : index
    %c0_10 = arith.constant 0 : index
    %32 = vector.load %arg5[%c0_8, %c0_9, %c0_10] : memref<1x2x12xf32, #tpu.memory_space<vmem>>, vector<1x2x12xf32>
    %33 = vector.shape_cast %32 : vector<1x2x12xf32> to vector<2x12xf32>
    %cst_11 = arith.constant dense<0.000000e+00> : vector<12xf32>
    %34 = vector.multi_reduction <add>, %24, %cst_11 [0] : vector<32x12xf32> to vector<12xf32>
    %35 = vector.shape_cast %34 : vector<12xf32> to vector<1x12xf32>
    %36 = arith.mulf %24, %24 : vector<32x12xf32>
    %cst_12 = arith.constant dense<0.000000e+00> : vector<12xf32>
    %37 = vector.multi_reduction <add>, %36, %cst_12 [0] : vector<32x12xf32> to vector<12xf32>
    %38 = vector.shape_cast %37 : vector<12xf32> to vector<1x12xf32>
    %39 = tpu.concatenate %35, %38 in 0 : vector<1x12xf32>, vector<1x12xf32> -> vector<2x12xf32>
    %40 = arith.addf %33, %39 : vector<2x12xf32>
    %c0_13 = arith.constant 0 : index
    %c0_14 = arith.constant 0 : index
    %c0_15 = arith.constant 0 : index
    %41 = vector.load %arg5[%c0_13, %c0_14, %c0_15] : memref<1x2x12xf32, #tpu.memory_space<vmem>>, vector<1x2x12xf32>
    %42 = vector.shape_cast %41 : vector<1x2x12xf32> to vector<2x12xf32>
    %43 = vector.shape_cast %40 : vector<2x12xf32> to vector<1x2x12xf32>
    tpu.vector_store %arg5[%c0_13, %c0_14, %c0_15], %43 {strides = array<i32>} : memref<1x2x12xf32, #tpu.memory_space<vmem>>, vector<1x2x12xf32>,
    return
  }
  func.func @transform_0(%arg0: i32, %arg1: i32) -> (i32, i32, i32, i32) {
    %c0_i32 = arith.constant 0 : i32
    %c0_i32_0 = arith.constant 0 : i32
    %c0_i32_1 = arith.constant 0 : i32
    %c0_i32_2 = arith.constant 0 : i32
    return %arg0, %c0_i32, %c0_i32_0, %c0_i32_1 : i32, i32, i32, i32
  }
  func.func @transform_1(%arg0: i32, %arg1: i32) -> (i32, i32) {
    %c0_i32 = arith.constant 0 : i32
    %c0_i32_0 = arith.constant 0 : i32
    %c0_i32_1 = arith.constant 0 : i32
    return %c0_i32, %c0_i32_0 : i32, i32
  }
  func.func @transform_2(%arg0: i32, %arg1: i32) -> (i32, i32, i32) {
    %c0_i32 = arith.constant 0 : i32
    %c0_i32_0 = arith.constant 0 : i32
    return %arg0, %arg1, %c0_i32 : i32, i32, i32
  }
  func.func @transform_3(%arg0: i32, %arg1: i32) -> (i32, i32, i32) {
    %c0_i32 = arith.constant 0 : i32
    %c0_i32_0 = arith.constant 0 : i32
    %c0_i32_1 = arith.constant 0 : i32
    return %arg0, %c0_i32, %c0_i32_0 : i32, i32, i32
  }
}

module attributes {stable_mosaic.version = 11 : i64} {
  func.func @kernel(%arg0: i32, %arg1: i32, %arg2: memref<1x32x12xbf16, #tpu.memory_space<vmem>>, %arg3: memref<1x2x12xf32, #tpu.memory_space<vmem>>, %arg4: memref<1x32x12xbf16, #tpu.memory_space<vmem>>, %arg5: memref<1x32x12xbf16, #tpu.memory_space<vmem>>) attributes {dimension_semantics = [#tpu.dimension_semantics<parallel>, #tpu.dimension_semantics<parallel>], iteration_bounds = array<i64: 2, 2>, scalar_prefetch = 0 : i64, scratch_operands = 0 : i64, tpu.core_type = #tpu.core_type<tc>, window_params = [{transform_indices = @transform_0, window_bounds = array<i64: 1, 32, 12>}, {transform_indices = @transform_1, window_bounds = array<i64: 1, 2, 12>}, {transform_indices = @transform_2, window_bounds = array<i64: 1, 32, 12>}, {transform_indices = @transform_3, window_bounds = array<i64: 1, 32, 12>}]} {
    %c0 = arith.constant 0 : index
    %c0_0 = arith.constant 0 : index
    %c0_1 = arith.constant 0 : index
    %0 = vector.load %arg2[%c0, %c0_0, %c0_1] : memref<1x32x12xbf16, #tpu.memory_space<vmem>>, vector<1x32x12xbf16>
    %1 = vector.shape_cast %0 : vector<1x32x12xbf16> to vector<32x12xbf16>
    %2 = arith.extf %1 : vector<32x12xbf16> to vector<32x12xf32>
    %c0_2 = arith.constant 0 : index
    %c0_3 = arith.constant 0 : index
    %c0_4 = arith.constant 0 : index
    %3 = vector.load %arg3[%c0_2, %c0_3, %c0_4] : memref<1x2x12xf32, #tpu.memory_space<vmem>>, vector<1x1x12xf32>
    %4 = vector.shape_cast %3 : vector<1x1x12xf32> to vector<1x12xf32>
    %cst = arith.constant 1.562500e-02 : f32
    %5 = vector.broadcast %cst : f32 to vector<1x12xf32>
    %6 = arith.mulf %4, %5 : vector<1x12xf32>
    %c0_5 = arith.constant 0 : index
    %c1 = arith.constant 1 : index
    %c0_6 = arith.constant 0 : index
    %7 = vector.load %arg3[%c0_5, %c1, %c0_6] : memref<1x2x12xf32, #tpu.memory_space<vmem>>, vector<1x1x12xf32>
    %8 = vector.shape_cast %7 : vector<1x1x12xf32> to vector<1x12xf32>
    %cst_7 = arith.constant 1.562500e-02 : f32
    %9 = vector.broadcast %cst_7 : f32 to vector<1x12xf32>
    %10 = arith.mulf %8, %9 : vector<1x12xf32>
    %11 = arith.mulf %6, %6 : vector<1x12xf32>
    %12 = arith.subf %10, %11 : vector<1x12xf32>
    %cst_8 = arith.constant 0.000000e+00 : f32
    %13 = vector.broadcast %cst_8 : f32 to vector<1x12xf32>
    %14 = arith.maximumf %12, %13 : vector<1x12xf32>
    %15 = vector.broadcast %6 : vector<1x12xf32> to vector<32x12xf32>
    %16 = arith.subf %2, %15 : vector<32x12xf32>
    %cst_9 = arith.constant 9.99999974E-6 : f32
    %17 = vector.broadcast %cst_9 : f32 to vector<1x12xf32>
    %18 = arith.addf %14, %17 : vector<1x12xf32>
    %19 = math.rsqrt %18 : vector<1x12xf32>
    %20 = vector.broadcast %19 : vector<1x12xf32> to vector<32x12xf32>
    %21 = arith.mulf %16, %20 : vector<32x12xf32>
    %c0_10 = arith.constant 0 : index
    %c0_11 = arith.constant 0 : index
    %c0_12 = arith.constant 0 : index
    %22 = vector.load %arg4[%c0_10, %c0_11, %c0_12] : memref<1x32x12xbf16, #tpu.memory_space<vmem>>, vector<1x32x12xbf16>
    %23 = vector.shape_cast %22 : vector<1x32x12xbf16> to vector<32x12xbf16>
    %24 = arith.extf %23 : vector<32x12xbf16> to vector<32x12xf32>
    %25 = arith.addf %21, %24 : vector<32x12xf32>
    %26 = arith.truncf %25 : vector<32x12xf32> to vector<32x12xbf16>
    %c0_13 = arith.constant 0 : index
    %c0_14 = arith.constant 0 : index
    %c0_15 = arith.constant 0 : index
    %27 = vector.load %arg5[%c0_13, %c0_14, %c0_15] : memref<1x32x12xbf16, #tpu.memory_space<vmem>>, vector<1x32x12xbf16>
    %28 = vector.shape_cast %27 : vector<1x32x12xbf16> to vector<32x12xbf16>
    %29 = vector.shape_cast %26 : vector<32x12xbf16> to vector<1x32x12xbf16>
    tpu.vector_store %arg5[%c0_13, %c0_14, %c0_15], %29 {strides = array<i32>} : memref<1x32x12xbf16, #tpu.memory_space<vmem>>, vector<1x32x12xbf16>,
    return
  }
  func.func @transform_0(%arg0: i32, %arg1: i32) -> (i32, i32, i32) {
    %c0_i32 = arith.constant 0 : i32
    %c0_i32_0 = arith.constant 0 : i32
    return %arg0, %arg1, %c0_i32 : i32, i32, i32
  }
  func.func @transform_1(%arg0: i32, %arg1: i32) -> (i32, i32, i32) {
    %c0_i32 = arith.constant 0 : i32
    %c0_i32_0 = arith.constant 0 : i32
    %c0_i32_1 = arith.constant 0 : i32
    return %arg0, %c0_i32, %c0_i32_0 : i32, i32, i32
  }
  func.func @transform_2(%arg0: i32, %arg1: i32) -> (i32, i32, i32) {
    %c0_i32 = arith.constant 0 : i32
    %c0_i32_0 = arith.constant 0 : i32
    return %arg0, %arg1, %c0_i32 : i32, i32, i32
  }
  func.func @transform_3(%arg0: i32, %arg1: i32) -> (i32, i32, i32) {
    %c0_i32 = arith.constant 0 : i32
    %c0_i32_0 = arith.constant 0 : i32
    return %arg0, %arg1, %c0_i32 : i32, i32, i32
  }
}

module attributes {stable_mosaic.version = 11 : i64} {
  func.func @kernel(%arg0: i32, %arg1: i32, %arg2: memref<1x32x8xbf16, #tpu.memory_space<vmem>>, %arg3: memref<1x2x8xf32, #tpu.memory_space<vmem>>, %arg4: memref<1x32x4xf32, #tpu.memory_space<vmem>>) attributes {dimension_semantics = [#tpu.dimension_semantics<parallel>, #tpu.dimension_semantics<parallel>], iteration_bounds = array<i64: 2, 2>, scalar_prefetch = 0 : i64, scratch_operands = 0 : i64, tpu.core_type = #tpu.core_type<tc>, window_params = [{transform_indices = @transform_0, window_bounds = array<i64: 1, 32, 8>}, {transform_indices = @transform_1, window_bounds = array<i64: 1, 2, 8>}, {transform_indices = @transform_2, window_bounds = array<i64: 1, 32, 4>}]} {
    %c0 = arith.constant 0 : index
    %c0_0 = arith.constant 0 : index
    %c0_1 = arith.constant 0 : index
    %0 = vector.load %arg2[%c0, %c0_0, %c0_1] : memref<1x32x8xbf16, #tpu.memory_space<vmem>>, vector<1x32x8xbf16>
    %1 = vector.shape_cast %0 : vector<1x32x8xbf16> to vector<32x8xbf16>
    %2 = arith.extf %1 : vector<32x8xbf16> to vector<32x8xf32>
    %c0_2 = arith.constant 0 : index
    %c0_3 = arith.constant 0 : index
    %c0_4 = arith.constant 0 : index
    %3 = vector.load %arg3[%c0_2, %c0_3, %c0_4] : memref<1x2x8xf32, #tpu.memory_space<vmem>>, vector<1x1x8xf32>
    %4 = vector.shape_cast %3 : vector<1x1x8xf32> to vector<1x8xf32>
    %cst = arith.constant 1.562500e-02 : f32
    %5 = vector.broadcast %cst : f32 to vector<1x8xf32>
    %6 = arith.mulf %4, %5 : vector<1x8xf32>
    %c0_5 = arith.constant 0 : index
    %c1 = arith.constant 1 : index
    %c0_6 = arith.constant 0 : index
    %7 = vector.load %arg3[%c0_5, %c1, %c0_6] : memref<1x2x8xf32, #tpu.memory_space<vmem>>, vector<1x1x8xf32>
    %8 = vector.shape_cast %7 : vector<1x1x8xf32> to vector<1x8xf32>
    %cst_7 = arith.constant 1.562500e-02 : f32
    %9 = vector.broadcast %cst_7 : f32 to vector<1x8xf32>
    %10 = arith.mulf %8, %9 : vector<1x8xf32>
    %11 = arith.mulf %6, %6 : vector<1x8xf32>
    %12 = arith.subf %10, %11 : vector<1x8xf32>
    %cst_8 = arith.constant 0.000000e+00 : f32
    %13 = vector.broadcast %cst_8 : f32 to vector<1x8xf32>
    %14 = arith.maximumf %12, %13 : vector<1x8xf32>
    %15 = vector.broadcast %6 : vector<1x8xf32> to vector<32x8xf32>
    %16 = arith.subf %2, %15 : vector<32x8xf32>
    %cst_9 = arith.constant 9.99999974E-6 : f32
    %17 = vector.broadcast %cst_9 : f32 to vector<1x8xf32>
    %18 = arith.addf %14, %17 : vector<1x8xf32>
    %19 = math.rsqrt %18 : vector<1x8xf32>
    %20 = vector.broadcast %19 : vector<1x8xf32> to vector<32x8xf32>
    %21 = arith.mulf %16, %20 : vector<32x8xf32>
    %22 = vector.extract_strided_slice %21 {offsets = [0, 0], sizes = [32, 4], strides = [1, 1]} : vector<32x8xf32> to vector<32x4xf32>
    %23 = vector.extract_strided_slice %21 {offsets = [0, 4], sizes = [32, 4], strides = [1, 1]} : vector<32x8xf32> to vector<32x4xf32>
    %24 = arith.negf %23 : vector<32x4xf32>
    %25 = math.exp %24 : vector<32x4xf32>
    %cst_10 = arith.constant 1.000000e+00 : f32
    %26 = vector.broadcast %cst_10 : f32 to vector<32x4xf32>
    %27 = arith.addf %26, %25 : vector<32x4xf32>
    %28 = arith.divf %26, %27 : vector<32x4xf32>
    %29 = arith.mulf %22, %28 : vector<32x4xf32>
    %c0_11 = arith.constant 0 : index
    %c0_12 = arith.constant 0 : index
    %c0_13 = arith.constant 0 : index
    %30 = vector.load %arg4[%c0_11, %c0_12, %c0_13] : memref<1x32x4xf32, #tpu.memory_space<vmem>>, vector<1x32x4xf32>
    %31 = vector.shape_cast %30 : vector<1x32x4xf32> to vector<32x4xf32>
    %32 = vector.shape_cast %29 : vector<32x4xf32> to vector<1x32x4xf32>
    tpu.vector_store %arg4[%c0_11, %c0_12, %c0_13], %32 {strides = array<i32>} : memref<1x32x4xf32, #tpu.memory_space<vmem>>, vector<1x32x4xf32>,
    return
  }
  func.func @transform_0(%arg0: i32, %arg1: i32) -> (i32, i32, i32) {
    %c0_i32 = arith.constant 0 : i32
    %c0_i32_0 = arith.constant 0 : i32
    return %arg0, %arg1, %c0_i32 : i32, i32, i32
  }
  func.func @transform_1(%arg0: i32, %arg1: i32) -> (i32, i32, i32) {
    %c0_i32 = arith.constant 0 : i32
    %c0_i32_0 = arith.constant 0 : i32
    %c0_i32_1 = arith.constant 0 : i32
    return %arg0, %c0_i32, %c0_i32_0 : i32, i32, i32
  }
  func.func @transform_2(%arg0: i32, %arg1: i32) -> (i32, i32, i32) {
    %c0_i32 = arith.constant 0 : i32
    %c0_i32_0 = arith.constant 0 : i32
    return %arg0, %arg1, %c0_i32 : i32, i32, i32
  }
}

module attributes {stable_mosaic.version = 11 : i64} {
  func.func @kernel(%arg0: i32, %arg1: i32, %arg2: memref<1x10x10x12xbf16, #tpu.memory_space<vmem>>, %arg3: memref<108x8xbf16, #tpu.memory_space<vmem>>, %arg4: memref<1x32x8xbf16, #tpu.memory_space<vmem>>, %arg5: memref<1x2x8xf32, #tpu.memory_space<vmem>>) attributes {dimension_semantics = [#tpu.dimension_semantics<parallel>, #tpu.dimension_semantics<arbitrary>], iteration_bounds = array<i64: 2, 2>, scalar_prefetch = 0 : i64, scratch_operands = 0 : i64, tpu.core_type = #tpu.core_type<tc>, window_params = [{transform_indices = @transform_0, window_bounds = array<i64: 1, 10, 10, 12>}, {pipeline_mode = #tpu.pipeline_mode<synchronous>, transform_indices = @transform_1, window_bounds = array<i64: 108, 8>}, {transform_indices = @transform_2, window_bounds = array<i64: 1, 32, 8>}, {transform_indices = @transform_3, window_bounds = array<i64: 1, 2, 8>}]} {
    %c4_i32 = arith.constant 4 : i32
    %0 = arith.muli %arg1, %c4_i32 : i32
    %c0 = arith.constant 0 : index
    %1 = arith.index_cast %0 : i32 to index
    %c0_0 = arith.constant 0 : index
    %c0_1 = arith.constant 0 : index
    %2 = vector.load %arg2[%c0, %1, %c0_0, %c0_1] : memref<1x10x10x12xbf16, #tpu.memory_space<vmem>>, vector<1x6x10x12xbf16>
    %3 = vector.shape_cast %2 : vector<1x6x10x12xbf16> to vector<6x10x12xbf16>
    %4 = vector.extract_strided_slice %3 {offsets = [0, 0, 0], sizes = [4, 8, 12], strides = [1, 1, 1]} : vector<6x10x12xbf16> to vector<4x8x12xbf16>
    %5 = vector.shape_cast %4 : vector<4x8x12xbf16> to vector<32x12xbf16>
    %6 = vector.extract_strided_slice %3 {offsets = [0, 1, 0], sizes = [4, 8, 12], strides = [1, 1, 1]} : vector<6x10x12xbf16> to vector<4x8x12xbf16>
    %7 = vector.shape_cast %6 : vector<4x8x12xbf16> to vector<32x12xbf16>
    %8 = vector.extract_strided_slice %3 {offsets = [0, 2, 0], sizes = [4, 8, 12], strides = [1, 1, 1]} : vector<6x10x12xbf16> to vector<4x8x12xbf16>
    %9 = vector.shape_cast %8 : vector<4x8x12xbf16> to vector<32x12xbf16>
    %10 = vector.extract_strided_slice %3 {offsets = [1, 0, 0], sizes = [4, 8, 12], strides = [1, 1, 1]} : vector<6x10x12xbf16> to vector<4x8x12xbf16>
    %11 = vector.shape_cast %10 : vector<4x8x12xbf16> to vector<32x12xbf16>
    %12 = vector.extract_strided_slice %3 {offsets = [1, 1, 0], sizes = [4, 8, 12], strides = [1, 1, 1]} : vector<6x10x12xbf16> to vector<4x8x12xbf16>
    %13 = vector.shape_cast %12 : vector<4x8x12xbf16> to vector<32x12xbf16>
    %14 = vector.extract_strided_slice %3 {offsets = [1, 2, 0], sizes = [4, 8, 12], strides = [1, 1, 1]} : vector<6x10x12xbf16> to vector<4x8x12xbf16>
    %15 = vector.shape_cast %14 : vector<4x8x12xbf16> to vector<32x12xbf16>
    %16 = vector.extract_strided_slice %3 {offsets = [2, 0, 0], sizes = [4, 8, 12], strides = [1, 1, 1]} : vector<6x10x12xbf16> to vector<4x8x12xbf16>
    %17 = vector.shape_cast %16 : vector<4x8x12xbf16> to vector<32x12xbf16>
    %18 = vector.extract_strided_slice %3 {offsets = [2, 1, 0], sizes = [4, 8, 12], strides = [1, 1, 1]} : vector<6x10x12xbf16> to vector<4x8x12xbf16>
    %19 = vector.shape_cast %18 : vector<4x8x12xbf16> to vector<32x12xbf16>
    %20 = vector.extract_strided_slice %3 {offsets = [2, 2, 0], sizes = [4, 8, 12], strides = [1, 1, 1]} : vector<6x10x12xbf16> to vector<4x8x12xbf16>
    %21 = vector.shape_cast %20 : vector<4x8x12xbf16> to vector<32x12xbf16>
    %22 = tpu.concatenate %5, %7, %9, %11, %13, %15, %17, %19, %21 in 1 : vector<32x12xbf16>, vector<32x12xbf16>, vector<32x12xbf16>, vector<32x12xbf16>, vector<32x12xbf16>, vector<32x12xbf16>, vector<32x12xbf16>, vector<32x12xbf16>, vector<32x12xbf16> -> vector<32x108xbf16>
    %c0_2 = arith.constant 0 : index
    %c0_3 = arith.constant 0 : index
    %23 = vector.load %arg3[%c0_2, %c0_3] : memref<108x8xbf16, #tpu.memory_space<vmem>>, vector<108x8xbf16>
    %cst = arith.constant dense<0.000000e+00> : vector<32x8xf32>
    %24 = tpu.matmul %22, %23, %cst {dimension_numbers = #tpu.dot_dimension_numbers<[1], [0], [0], [1], [0, 0, 1, 1], [], []>} : vector<32x108xbf16>, vector<108x8xbf16>, vector<32x8xf32> -> vector<32x8xf32>
    %25 = arith.truncf %24 : vector<32x8xf32> to vector<32x8xbf16>
    %c0_4 = arith.constant 0 : index
    %c0_5 = arith.constant 0 : index
    %c0_6 = arith.constant 0 : index
    %26 = vector.load %arg4[%c0_4, %c0_5, %c0_6] : memref<1x32x8xbf16, #tpu.memory_space<vmem>>, vector<1x32x8xbf16>
    %27 = vector.shape_cast %26 : vector<1x32x8xbf16> to vector<32x8xbf16>
    %28 = vector.shape_cast %25 : vector<32x8xbf16> to vector<1x32x8xbf16>
    tpu.vector_store %arg4[%c0_4, %c0_5, %c0_6], %28 {strides = array<i32>} : memref<1x32x8xbf16, #tpu.memory_space<vmem>>, vector<1x32x8xbf16>,
    %c0_i32 = arith.constant 0 : i32
    %29 = arith.cmpi eq, %arg1, %c0_i32 : i32
    %30 = arith.extui %29 : i1 to i32
    %c0_i32_7 = arith.constant 0 : i32
    %31 = arith.cmpi ne, %30, %c0_i32_7 : i32
    scf.if %31 {
      %cst_16 = arith.constant 0.000000e+00 : f32
      %44 = vector.broadcast %cst_16 : f32 to vector<2x8xf32>
      %c0_17 = arith.constant 0 : index
      %c0_18 = arith.constant 0 : index
      %c0_19 = arith.constant 0 : index
      %45 = vector.load %arg5[%c0_17, %c0_18, %c0_19] : memref<1x2x8xf32, #tpu.memory_space<vmem>>, vector<1x2x8xf32>
      %46 = vector.shape_cast %45 : vector<1x2x8xf32> to vector<2x8xf32>
      %47 = vector.shape_cast %44 : vector<2x8xf32> to vector<1x2x8xf32>
      tpu.vector_store %arg5[%c0_17, %c0_18, %c0_19], %47 {strides = array<i32>} : memref<1x2x8xf32, #tpu.memory_space<vmem>>, vector<1x2x8xf32>,
    } else {
    }
    %c0_8 = arith.constant 0 : index
    %c0_9 = arith.constant 0 : index
    %c0_10 = arith.constant 0 : index
    %32 = vector.load %arg5[%c0_8, %c0_9, %c0_10] : memref<1x2x8xf32, #tpu.memory_space<vmem>>, vector<1x2x8xf32>
    %33 = vector.shape_cast %32 : vector<1x2x8xf32> to vector<2x8xf32>
    %cst_11 = arith.constant dense<0.000000e+00> : vector<8xf32>
    %34 = vector.multi_reduction <add>, %24, %cst_11 [0] : vector<32x8xf32> to vector<8xf32>
    %35 = vector.shape_cast %34 : vector<8xf32> to vector<1x8xf32>
    %36 = arith.mulf %24, %24 : vector<32x8xf32>
    %cst_12 = arith.constant dense<0.000000e+00> : vector<8xf32>
    %37 = vector.multi_reduction <add>, %36, %cst_12 [0] : vector<32x8xf32> to vector<8xf32>
    %38 = vector.shape_cast %37 : vector<8xf32> to vector<1x8xf32>
    %39 = tpu.concatenate %35, %38 in 0 : vector<1x8xf32>, vector<1x8xf32> -> vector<2x8xf32>
    %40 = arith.addf %33, %39 : vector<2x8xf32>
    %c0_13 = arith.constant 0 : index
    %c0_14 = arith.constant 0 : index
    %c0_15 = arith.constant 0 : index
    %41 = vector.load %arg5[%c0_13, %c0_14, %c0_15] : memref<1x2x8xf32, #tpu.memory_space<vmem>>, vector<1x2x8xf32>
    %42 = vector.shape_cast %41 : vector<1x2x8xf32> to vector<2x8xf32>
    %43 = vector.shape_cast %40 : vector<2x8xf32> to vector<1x2x8xf32>
    tpu.vector_store %arg5[%c0_13, %c0_14, %c0_15], %43 {strides = array<i32>} : memref<1x2x8xf32, #tpu.memory_space<vmem>>, vector<1x2x8xf32>,
    return
  }
  func.func @transform_0(%arg0: i32, %arg1: i32) -> (i32, i32, i32, i32) {
    %c0_i32 = arith.constant 0 : i32
    %c0_i32_0 = arith.constant 0 : i32
    %c0_i32_1 = arith.constant 0 : i32
    %c0_i32_2 = arith.constant 0 : i32
    return %arg0, %c0_i32, %c0_i32_0, %c0_i32_1 : i32, i32, i32, i32
  }
  func.func @transform_1(%arg0: i32, %arg1: i32) -> (i32, i32) {
    %c0_i32 = arith.constant 0 : i32
    %c0_i32_0 = arith.constant 0 : i32
    %c0_i32_1 = arith.constant 0 : i32
    return %c0_i32, %c0_i32_0 : i32, i32
  }
  func.func @transform_2(%arg0: i32, %arg1: i32) -> (i32, i32, i32) {
    %c0_i32 = arith.constant 0 : i32
    %c0_i32_0 = arith.constant 0 : i32
    return %arg0, %arg1, %c0_i32 : i32, i32, i32
  }
  func.func @transform_3(%arg0: i32, %arg1: i32) -> (i32, i32, i32) {
    %c0_i32 = arith.constant 0 : i32
    %c0_i32_0 = arith.constant 0 : i32
    %c0_i32_1 = arith.constant 0 : i32
    return %arg0, %c0_i32, %c0_i32_0 : i32, i32, i32
  }
}

</mosaic_0001>

<bundles_post_ra>
// kernel: dcm_next_stage_forward.14
= control target key start
LH: loop header
LB: loop body
LE: loop exit
PB: predicated region body
PF: predicated region fallthrough
CT: control target
= control target key end

     0   :  { %s718_s9 = smov 0   ;;  %s720_s10 = smov 0   ;;  %s900_s0 = inlined_call_operand.vmem [shape: bf16[2,10,10,3], index: 0, kind: input, shape index: {}]   ;;  %s901_s1 = inlined_call_operand.vmem [shape: bf16[27,128], index: 1, kind: input, shape index: {}]   ;;  %s902_s2 = inlined_call_operand.vmem [shape: bf16[2,64,128], index: 2, kind: output, shape index: {}]  }
   0x1   :  { %s722_s11 = smov 0   ;;  %s724_s12 = smov 0  }
   0x2   :  { %s726_s13 = smov 0  }
   0x3 LB: > { %s21_s14 = sadd.s32 1, %s684_s11  ;;  %s24_s15 = sadd.s32 1, %s688_s12  ;;  %s692_s13 = sphi %s726_s13, %s12_s13   ;;  %s688_s12 = sphi %s724_s12, %s910_s12   ;;  %s684_s11 = sphi %s722_s11, %s909_s11   ;;  %s680_s10 = sphi %s720_s10, %s908_s10   ;;  %s676_s9 = sphi %s718_s9, %s907_s9  }
   0x4   : > { %p22_p0 = scmp.ge.s32.totalorder %s21_s14, 2  ;;  %p561_p1 = scmp.ge.s32.totalorder %s692_s13, 1 }
   0x5   : > { %p126_p2 = scmp.lt.s32.totalorder %s692_s13, 5 }
   0x6   : > { %s912_s14 = smov (%p22_p0, %s21_s14), 0  ;;  %s914_s15 = smov (!%p22_p0, %s24_s15), %s688_s12 }
   0x7   : > { %p127_p3 = pnand %p561_p1, %p126_p2  ;;  %p26_p4 = scmp.ge.s32.totalorder %s914_s15, 2 }
   0x8   : > { %p152_p5 = scmp.lt.s32.totalorder (!%p127_p3), %s680_s10, 1  ;;  %s588_s17 = sshll.u32 (!%p127_p3), %s676_s9, 5 }
   0x9   : > { %s916_s15 = smov (%p26_p4, %s914_s15), 0  ;;  %130 = sbr.rel (%p127_p3) target bundleno = 328 (0x148), region = 28 }
   0xa   : > { %s694_s22 = smov (!%p127_p3), 6   ;;  %s695_s23 = smov (!%p127_p3), 3  }
   0xb   : > { %s696_s24 = smov (!%p127_p3), 9   ;;  %s697_s25 = smov (!%p127_p3), 12  }
   0xc   : > { %s698_s26 = smov (!%p127_p3), 18   ;;  %s699_s27 = smov (!%p127_p3), 15  }
   0xd   : > { %s700_s28 = smov (!%p127_p3), 21   ;;  %s701_s29 = smov (!%p127_p3), 24  }
   0xe   : > { %s918_s10 = smov (!%p152_p5, %s680_s10), 1  ;;  %vm251_vm0 = vcmask 1042432   ;;  %vm252_vm1 = vcmask 1046532   ;;  %vm184_vm3 = vsmask.f32 3328  ;;  %vm437_vm6 = vcmask 1044480  }
   0xf   : > { %s604_s16 = smul.u32 80, %s918_s10  ;;  %vm759_vm2 = vmor %vm251_vm0, %vm252_vm1  ;;  %vm185_vm4 = vsmask.f32 7440  ;;  %vm438_vm7 = vcmask 1045504   ;;  %vm375_vm8 = vcmask 23552   ;;  %vm382_vm9 = vcmask 48128  }
  0x10   : > { %vm798_vm5 = vmor %vm184_vm3, %vm185_vm4  ;;  %vm387_vm10 = vcmask 72704   ;;  %vm392_vm11 = vcmask 97280   ;;  %vm397_vm12 = vcmask 121856   ;;  %vm402_vm13 = vcmask 146432   ;;  %s563_s8 = sshll.u32 %s676_s9, 2 }
  0x11   : > { %s156_s20 = scalar_lea.vmem %s900_s0, %s604_s16  ;;  %vm412_vm14 = vcmask 195584   ;;  %vm407_vm15 = vcmask 171008   ;;  %vm432_vm0 = vcmask 220160   ;;  %p160_p6 = scmp.lt.s32.totalorder %s563_s8, 7 }
  0x12   : > { %s757_s21 = scalar_lea.vmem %s156_s20, %s588_s17  ;;  %s564_s16 = sshll.u32 %s918_s10, 3 }
  0x13   : > { %v764_v1 = vld [vmem:[%s757_s21] sm:$0xf]  ;;  %v173_v2 = vld [vmem:[%s757_s21 + $0x4] sm:$0x1]  ;;  %v768_v3 = vld [vmem:[%s757_s21 + $0x8] sm:$0xf] }
  0x14   : > { %v175_v4 = vld [vmem:[%s757_s21 + $0xc] sm:$0x1]  ;;  %v569_v5 = vrot.slane %v764_v1, 9  ;;  %v256_v6 = vrot.slane %v173_v2, 5  ;;  %v570_v7 = vrot.slane %v768_v3, 9  ;;  %v188_v8 = vshrl.u32 %v764_v1, 16 }
  0x15   : > { %v260_v9 = vrot.slane %v175_v4, 5  ;;  %v191_v10 = vshll.u32 %v764_v1, 16  ;;  %v197_v11 = vshll.u32 %v173_v2, 16  ;;  %v202_v12 = vshrl.u32 %v768_v3, 16  ;;  %v777_v13 = vld [vmem:[%s757_s21 + $0x10] sm:$0xf] }
  0x16   : > { %v257_v14 = vsel %vm759_vm2, %v569_v5, %v256_v6  ;;  %v190_v15 = vrot.slane %v188_v8, 4  ;;  %v205_v16 = vshll.u32 %v768_v3, 16  ;;  %v211_v17 = vshll.u32 %v175_v4, 16  ;;  %v177_v18 = vld [vmem:[%s757_s21 + $0x14] sm:$0x1]  ;;  %s920_s8 = smov (!%p160_p6, %s563_s8), 7 }
  0x17   : > { %v785_v19 = vsel %vm759_vm2, %v570_v7, %v260_v9  ;;  %v326_v20 = vunpack.c.l.b16 %v257_v14  ;;  %v193_v21 = vrot.slane %v191_v10, 5  ;;  %v199_v22 = vrot.slane %v197_v11, 5  ;;  %v788_v23 = vld [vmem:[%s757_s21 + $0x18] sm:$0xf]  ;;  %v179_v24 = vld [vmem:[%s757_s21 + $0x1c] sm:$0x1]  ;;  %s163_s17 = sadd.s32 %s564_s16, %s920_s8 }
  0x18   : > { %v327_v25 = vunpack.c.l.b16 %v785_v19  ;;  %v204_v26 = vrot.slane %v202_v12, 4  ;;  %v207_v27 = vrot.slane %v205_v16, 5  ;;  %v213_v28 = vrot.slane %v211_v17, 5  ;;  %v818_v50 = vld [vmem:[%s757_s21 + $0x20] sm:$0xf]  ;;  %s565_s18 = sshll.u32 %s163_s17, 2 }
  0x19   : > { %v194_v29 = vor.u32 %v193_v21, %v190_v15  ;;  %v571_v30 = vrot.slane %v777_v13, 9  ;;  %v264_v31 = vrot.slane %v177_v18, 5  ;;  %v572_v32 = vrot.slane %v788_v23, 9  ;;  %v181_v55 = vld [vmem:[%s757_s21 + $0x24] sm:$0x1] }
  0x1a   : > { %v330_v33 = vpack.c.b16 %v327_v25, %v326_v20  ;;  %v208_v35 = vor.u32 %v207_v27, %v204_v26  ;;  %v268_v36 = vrot.slane %v179_v24, 5  ;;  %v216_v37 = vshrl.u32 %v777_v13, 16  ;;  %v834_v10 = vld [vmem:[%s757_s21 + $0x28] sm:$0xf] }
  0x1b   : > { %v195_v38 = vrot.slane %v194_v29, 4  ;;  %v805_v39 = vsel %vm759_vm2, %v571_v30, %v264_v31  ;;  %v219_v40 = vshll.u32 %v777_v13, 16  ;;  %v225_v41 = vshll.u32 %v177_v18, 16  ;;  %v183_v29 = vld [vmem:[%s757_s21 + $0x2c] sm:$0x1]  ;;  %s165_s21 = scalar_lea.vmem %s902_s2, %s565_s18 }
  0x1c   : > { %332 = vrot.lane.b32.xlu1 %v330_v33, %s694_s22  ;;  %v209_v42 = vrot.slane %v208_v35, 4  ;;  %v811_v43 = vsel %vm759_vm2, %v572_v32, %v268_v36  ;;  %v328_v44 = vunpack.c.l.b16 %v805_v39  ;;  %v218_v45 = vrot.slane %v216_v37, 4 }
  0x1d   : > { %v200_v46 = vsel %vm798_vm5, %v195_v38, %v199_v22  ;;  %v329_v47 = vunpack.c.l.b16 %v811_v43  ;;  %v221_v48 = vrot.slane %v219_v40, 5  ;;  %v227_v49 = vrot.slane %v225_v41, 5 }
  0x1e   : > { %v214_v51 = vsel %vm798_vm5, %v209_v42, %v213_v28  ;;  %v316_v52 = vunpack.c.l.b16 %v200_v46  ;;  %v230_v53 = vshrl.u32 %v788_v23, 16  ;;  %v233_v54 = vshll.u32 %v788_v23, 16 }
  0x1f   : > { %v317_v56 = vunpack.c.l.b16 %v214_v51  ;;  %v829_v57 = vpack.c.b16 %v329_v47, %v328_v44  ;;  %v222_v58 = vor.u32 %v221_v48, %v218_v45  ;;  %v239_v59 = vshll.u32 %v179_v24, 16 }
  0x20   : > { %v232_v60 = vrot.slane %v230_v53, 4  ;;  %v235_v61 = vrot.slane %v233_v54, 5  ;;  %v271_v62 = vshrl.u32 %v818_v50, 16  ;;  %v274_v63 = vshll.u32 %v818_v50, 16 }
  0x21   : > { %v320_v2 = vpack.c.b16 %v317_v56, %v316_v52  ;;  %v223_v4 = vrot.slane %v222_v58, 4  ;;  %v280_v5 = vshll.u32 %v181_v55, 16  ;;  %v241_v7 = vrot.slane %v239_v59, 5 }
  0x22   : > { %v236_v6 = vor.u32 %v235_v61, %v232_v60  ;;  %v273_v8 = vrot.slane %v271_v62, 4  ;;  %v276_v9 = vrot.slane %v274_v63, 5  ;;  %v312_v16 = vunpack.c.l.b16 %v777_v13 }
  0x23   : > { %322 = vrot.lane.b32.xlu0 %v320_v2, %s695_s23  ;;  %v228_v11 = vsel %vm798_vm5, %v223_v4, %v227_v49  ;;  %v282_v15 = vrot.slane %v280_v5, 5  ;;  %v311_v18 = vunpack.c.l.b16 %v768_v3  ;;  %v310_v20 = vunpack.c.l.b16 %v764_v1 }
  0x24   : > { %334 = vrot.lane.b32.xlu1 %v829_v57, %s694_s22  ;;  %v237_v12 = vrot.slane %v236_v6, 4  ;;  %v277_v14 = vor.u32 %v276_v9, %v273_v8  ;;  %v318_v17 = vunpack.c.l.b16 %v228_v11  ;;  %v291_v21 = vshrl.u32 %v834_v10, 16 }
  0x25   : > { %v337_v27 = vpack.c.b16 %v312_v16, %v311_v18  ;;  %v846_v28 = vpack.c.b16 %v311_v18, %v310_v20  ;;  %v294_v31 = vshll.u32 %v834_v10, 16  ;;  %v336_v1 = vunpack.c.l.b16 %v818_v50 }
  0x26   : > { %v242_v22 = vsel %vm798_vm5, %v237_v12, %v241_v7  ;;  %v278_v24 = vrot.slane %v277_v14, 4  ;;  %v293_v13 = vrot.slane %v291_v21, 4  ;;  %v300_v35 = vshll.u32 %v183_v29, 16 }
  0x27   : > { %v319_v26 = vunpack.c.l.b16 %v242_v22  ;;  %339 = vrot.lane.b32.xlu2 %v337_v27, %s696_s24  ;;  %v296_v33 = vrot.slane %v294_v31, 5  ;;  %v313_v37 = vunpack.c.l.b16 %v788_v23  ;;  %v573_v38 = vrot.slane %v818_v50, 9 }
  0x28   : > { %v283_v30 = vsel %vm798_vm5, %v278_v24, %v282_v15  ;;  %v288_v40 = vrot.slane %v181_v55, 5  ;;  %v302_v46 = vrot.slane %v300_v35, 5  ;;  %v344_v48 = vpack.c.b16 %v318_v17, %v317_v56 }
  0x29   : > { %v321_v3 = vpack.c.b16 %v319_v26, %v318_v17  ;;  %v343_v32 = vunpack.c.l.b16 %v283_v30  ;;  %v297_v41 = vor.u32 %v296_v33, %v293_v13  ;;  %v338_v42 = vpack.c.b16 %v336_v1, %v313_v37 }
  0x2a   : > { %v289_v49 = vsel %vm759_vm2, %v573_v38, %v288_v40  ;;  %v315_v51 = vpack.c.b16 %v313_v37, %v312_v16  ;;  %v351_v53 = vpack.c.b16 %v328_v44, %v327_v25  ;;  %v357_v56 = vunpack.c.l.b16 %v834_v10  ;;  %v581_v44 = vld [vmem:[%s901_s1 + $0x8] sm:$0xf] }
  0x2b   : > { %324 = vrot.lane.b32.xlu0 %v321_v3, %s695_s23  ;;  %v345_v36 = vpack.c.b16 %v343_v32, %v319_v26  ;;  %v298_v45 = vrot.slane %v297_v41, 4  ;;  %v350_v23 = vunpack.c.l.b16 %v289_v49  ;;  %v574_v34 = vrot.slane %v834_v10, 9 }
  0x2c   : > { %v308_v58 = vrot.slane %v183_v29, 5  ;;  %v358_v59 = vpack.c.b16 %v357_v56, %v336_v1  ;;  %v702_v60 = vmov 65535  }
  0x2d   : > { %348 = vrot.lane.b32.xlu1 %v345_v36, %s697_s25  ;;  %v303_v52 = vsel %vm798_vm5, %v298_v45, %v302_v46  ;;  %v352_v54 = vpack.c.b16 %v350_v23, %v329_v47  ;;  %v590_v47 = vld [vmem:[%s901_s1 + $0x8] sm:$0x30]  ;;  %v439_v61 = vsel %vm437_vm6, 4294967295, %v702_v60 }
  0x2e   : > { %v363_v50 = vunpack.c.l.b16 %v303_v52  ;;  %v309_v19 = vsel %vm759_vm2, %v574_v34, %v308_v58  ;;  %v582_v0 = vor.u32 %v590_v47, %v581_v44  ;;  %v440_v62 = vsel %vm438_vm7, %v439_v61, 0 }
  0x2f   : > { %341 = vrot.lane.b32.xlu2 %v338_v42, %s696_s24  ;;  %v369_v25 = vunpack.c.l.b16 %v309_v19 }
  0x30   : > { %v364_v55 = vpack.c.b16 %v363_v50, %v343_v32  ;;  %v442_v63 = vand.u32 %v582_v0, %v440_v62 }
  0x31   : > { %v370_v39 = vpack.c.b16 %v369_v25, %v350_v23 }
  0x32   : > { %450 = vmatpush.bf16.msra.mxu0 %v442_v63  ;;  %602 = vmatpush.bf16.msra.mxu1 %v442_v63 }
  0x33   : > { %346 = vrot.lane.b32.xlu0 %v344_v48, %s697_s25 }
  0x35   : > { %359 = vrot.lane.b32.xlu1 %v315_v51, %s698_s26 }
  0x37   : > { %353 = vrot.lane.b32.xlu2 %v351_v53, %s699_s27 }
  0x3b   : > { %355 = vrot.lane.b32.xlu0 %v352_v54, %s699_s27 }
  0x3d   : > { %367 = vrot.lane.b32.xlu1 %v364_v55, %s700_s28 }
  0x3f   : > { %361 = vrot.lane.b32.xlu2 %v358_v59, %s698_s26 }
  0x43   : > { %365 = vrot.lane.b32.xlu0 %v321_v3, %s700_s28 }
  0x47   : > { %371 = vrot.lane.b32.xlu2 %v829_v57, %s701_s29  ;;  %v589_v57 = vld [vmem:[%s901_s1] sm:$0xff] }
  0x48   : > { %451 = vmatpush.bf16.msra.mxu0 %v589_v57  ;;  %603 = vmatpush.bf16.msra.mxu1 %v589_v57 }
  0x4b   : > { %373 = vrot.lane.b32.xlu0 %v370_v39, %s701_s29 }
  0x81   : > { %v340_v43 = vpop.permute.xlu2 %339 }
  0x89   : > { %v342_v5 = vpop.permute.xlu2 %341 }
  0x8e   : > { %v333_v2 = vpop.permute.xlu1 %332 }
  0x91   : > { %v354_v8 = vpop.permute.xlu2 %353 }
  0x95   : > { %v323_v4 = vpop.permute.xlu0 %322 }
  0x96   : > { %v335_v6 = vpop.permute.xlu1 %334  ;;  %v378_v11 = vsel %vm375_vm8, %v846_v28, %v323_v4 }
  0x97   : > { %v384_v14 = vsel %vm382_vm9, %v378_v11, %v333_v2 }
  0x98   : > { %v389_v17 = vsel %vm387_vm10, %v384_v14, %v340_v43 }
  0x99   : > { %v362_v12 = vpop.permute.xlu2 %361 }
  0x9d   : > { %v325_v7 = vpop.permute.xlu0 %324 }
  0x9e   : > { %v381_v15 = vsel %vm375_vm8, %v315_v51, %v325_v7 }
  0x9f   : > { %v349_v10 = vpop.permute.xlu1 %348  ;;  %v386_v20 = vsel %vm382_vm9, %v381_v15, %v335_v6 }
  0xa0   : > { %v391_v24 = vsel %vm387_vm10, %v386_v20, %v342_v5 }
  0xa1   : > { %v372_v26 = vpop.permute.xlu2 %371  ;;  %v396_v29 = vsel %vm392_vm11, %v391_v24, %v349_v10 }
  0xa5   : > { %v347_v9 = vpop.permute.xlu0 %346 }
  0xa6   : > { %v394_v18 = vsel %vm392_vm11, %v389_v17, %v347_v9 }
  0xa7   : > { %v360_v21 = vpop.permute.xlu1 %359  ;;  %v399_v22 = vsel %vm397_vm12, %v394_v18, %v354_v8 }
  0xa8   : > { %v404_v27 = vsel %vm402_vm13, %v399_v22, %v360_v21 }
  0xad   : > { %v356_v16 = vpop.permute.xlu0 %355 }
  0xae   : > { %v401_v13 = vsel %vm397_vm12, %v396_v29, %v356_v16 }
  0xaf   : > { %v406_v3 = vsel %vm402_vm13, %v401_v13, %v362_v12  ;;  %v368_v32 = vpop.permute.xlu1 %367 }
  0xb0   : > { %v411_v1 = vsel %vm407_vm15, %v406_v3, %v368_v32 }
  0xb5   : > { %v366_v28 = vpop.permute.xlu0 %365 }
  0xb6   : > { %v409_v30 = vsel %vm407_vm15, %v404_v27, %v366_v28 }
  0xb7   : > { %v414_v31 = vsel %vm412_vm14, %v409_v30, %v372_v26 }
  0xb8   : > { %583 = vmatmul.msk.bf16.vlgmr.msra.gmra.mxu0 %vm432_vm0, %v414_v31 }
  0xbd   : > { %v374_v33 = vpop.permute.xlu0 %373 }
  0xbe   : > { %v416_v35 = vsel %vm412_vm14, %v411_v1, %v374_v33 }
  0xbf   : > { %584 = vmatmul.msk.bf16.vlgmr.msra.gmra.mxu1 %vm432_vm0, %v416_v35 }
 0x135   : > { %v453_v36 = vpop.f32.mrf.mxu0 }
 0x13c   : > { %v458_v37 = vpop.f32.mrf.mxu1 }
 0x13d   : > { %v455_v38 = vpop.f32.mrf.mxu0 }
 0x13e   : > { %v594_v40 = vpack.c.bf16 %v455_v38, %v453_v36 }
 0x140   : > { %595 = vst [vmem:[%s165_s21] sm:$0xff] %v594_v40  }
 0x144   : > { %v460_v41 = vpop.f32.mrf.mxu1 }
 0x145   : > { %v599_v42 = vpack.c.bf16 %v460_v41, %v458_v37 }
 0x147   : > { %601 = vst [vmem:[%s165_s21 + $0x8] sm:$0xff] %v599_v42  }
 0x148 PF: > { %s12_s13 = sadd.s32 1, %s692_s13   ;;  %s907_s9 = smov %s684_s11 }
 0x149   : > { %p9_p7 = scmp.ge.s32.totalorder %s12_s13, 6   ;;  %s908_s10 = smov %s688_s12 }
 0x14a   : > { %s909_s11 = smov %s912_s14  ;;  %s910_s12 = smov %s916_s15 }
 0x14b   :  { %11 = sbr.rel (!%p9_p7) target bundleno = 3 (0x3), region = 59 }

// kernel: dcm_next_stage_forward.13
= control target key start
LH: loop header
LB: loop body
LE: loop exit
PB: predicated region body
PF: predicated region fallthrough
CT: control target
= control target key end

     0   :  { %s1371_s27 = smov 0   ;;  %s1373_s28 = smov 0   ;;  %s1600_s0 = inlined_call_operand.vmem [shape: bf16[2,64,4], index: 0, kind: input, shape index: {}]   ;;  %s1601_s1 = inlined_call_operand.vmem [shape: bf16[2,8,128], index: 1, kind: input, shape index: {}]   ;;  %s1602_s2 = inlined_call_operand.vmem [shape: bf16[2,128,8], index: 2, kind: input, shape index: {}]   ;;  %s1603_s3 = inlined_call_operand.vmem [shape: f32[2,1,128], index: 3, kind: input, shape index: {}]   ;;  %s1604_s4 = inlined_call_operand.vmem [shape: bf16[4,8], index: 4, kind: input, shape index: {}]   ;;  %s1605_s5 = inlined_call_operand.vmem [shape: bf16[8,4], index: 5, kind: input, shape index: {}]   ;;  %s1606_s6 = inlined_call_operand.vmem [shape: bf16[64,8], index: 6, kind: input, shape index: {}]   ;;  %s1607_s7 = inlined_call_operand.vmem [shape: bf16[2,64,8], index: 7, kind: output, shape index: {0}]   ;;  %s1608_s8 = inlined_call_operand.vmem [shape: f32[2,128,4], index: 8, kind: output, shape index: {1}]  }
   0x1   :  { %s1375_s29 = smov 0   ;;  %s1377_s30 = smov 0  }
   0x2   :  { %s1379_s9 = smov 0  }
   0x3 LB: > { %s28_s10 = sadd.s32 1, %s1313_s29  ;;  %s31_s11 = sadd.s32 1, %s1317_s30  ;;  %s1321_s9 = sphi %s1379_s9, %s19_s9   ;;  %s1317_s30 = sphi %s1377_s30, %s1614_s30   ;;  %s1313_s29 = sphi %s1375_s29, %s1613_s29   ;;  %s1309_s28 = sphi %s1373_s28, %s1612_s28   ;;  %s1305_s27 = sphi %s1371_s27, %s1611_s27  }
   0x4   : > { %p29_p0 = scmp.ge.s32.totalorder %s28_s10, 2  ;;  %p1121_p1 = scmp.ge.s32.totalorder %s1321_s9, 1 }
   0x5   : > { %p324_p2 = scmp.lt.s32.totalorder %s1321_s9, 5 }
   0x6   : > { %s1616_s10 = smov (%p29_p0, %s28_s10), 0  ;;  %s1618_s11 = smov (!%p29_p0, %s31_s11), %s1317_s30 }
   0x7   : > { %p325_p3 = pnand %p1121_p1, %p324_p2  ;;  %p33_p4 = scmp.ge.s32.totalorder %s1618_s11, 2 }
   0x8   : > { %p389_p5 = scmp.lt.s32.totalorder (!%p325_p3), %s1309_s28, 1  ;;  %s1122_s22 = sshll.u32 (!%p325_p3), %s1305_s27, 2 }
   0x9   : > { %s1620_s11 = smov (%p33_p4, %s1618_s11), 0  ;;  %328 = sbr.rel (%p325_p3) target bundleno = 953 (0x3b9), region = 48 }
   0xa   : > { %p391_p6 = scmp.lt.s32.totalorder (!%p325_p3), %s1122_s22, 7  ;;  %p1204_p7 = scmp.ne.s32.totalorder (!%p325_p3), %s1305_s27, 0 }
   0xe   : > { %s1622_s28 = smov (!%p389_p5, %s1309_s28), 1  ;;  %vm458_vm0 = vcmask 1043456   ;;  %v453_v2 = vld [vmem:[%s1604_s4] sm:$0x3]  ;;  %vm454_vm1 = vcmask 64512   ;;  %s1624_s22 = smov (!%p391_p6, %s1122_s22), 7 }
   0xf   : > { %s1125_s12 = sshll.u32 %s1622_s28, 2  ;;  %s1208_s16 = sshll.u32 %s1622_s28, 7  ;;  %v561_v3 = vld [vmem:[%s1605_s5] sm:$0xf]  ;;  %vm493_vm2 = vcmask 1041408   ;;  %vm486_vm3 = vcmask 31744  }
  0x10   : > { %s401_s15 = scalar_lea.vmem %s1601_s1, %s1125_s12  ;;  %s1413_s19 = scalar_lea.vmem %s1608_s8, %s1208_s16  ;;  %v627_v4 = vsel %vm458_vm0, %v561_v3, 0  ;;  %v1323_v20 = vmov 0   ;;  %vm807_vm6 = vcmask 261120   ;;  %vm743_vm7 = vcmask 60416  }
  0x11   : > { %v436_v0 = vld [vmem:[%s401_s15] sm:$0xf]  ;;  %s1207_s23 = sshll.u32 %s1622_s28, 6  ;;  %s1123_s12 = sshll.u32 %s1622_s28, 3  ;;  %636 = vmatpush.bf16.msra.mxu2 %v627_v4 }
  0x12   : > { %v460_v1 = vsel %vm458_vm0, %v436_v0, 0  ;;  %s1425_s26 = scalar_lea.vmem %s1602_s2, %s1207_s23  ;;  %s1436_s15 = sadd.s32 %s1123_s12, %s1624_s22 }
  0x13   : > { %469 = vmatpush.bf16.msra.mxu0 %v460_v1  ;;  %v1211_v5 = vld [vmem:[%s1425_s26] sm:$0xff]  ;;  %s1124_s16 = sshll.u32 %s1436_s15, 2  ;;  %v1212_v11 = vld [vmem:[%s1425_s26 + $0x8] sm:$0xff]  ;;  %v1213_v13 = vld [vmem:[%s1425_s26 + $0x10] sm:$0xff]  ;;  %s409_s24 = scalar_lea.vmem %s1603_s3, %s1622_s28 }
  0x14   : > { %1178 = vmatmul.msk.bf16.vlgmr.msra.gmra.mxu2 %vm454_vm1, %v1211_v5  ;;  %s396_s20 = scalar_lea.vmem %s1600_s0, %s1124_s16  ;;  %v1217_v14 = vld [vmem:[%s1425_s26 + $0x30] sm:$0xff]  ;;  %v1214_v15 = vld [vmem:[%s1425_s26 + $0x18] sm:$0xff]  ;;  %v1215_v17 = vld [vmem:[%s1425_s26 + $0x20] sm:$0xff]  ;;  %s1129_s25 = sshll.u32 %s1624_s22, 2 }
  0x15   : > { %v1445_v9 = vld [vmem:[%s396_s20] sm:$0xff]  ;;  %v1451_v12 = vld [vmem:[%s396_s20 + $0x8] sm:$0xff]  ;;  %v1218_v16 = vld [vmem:[%s1425_s26 + $0x38] sm:$0xff]  ;;  %s414_s14 = scalar_lea.vmem %s1606_s6, %s1129_s25  ;;  %s1324_s28 = smov 4  }
  0x16   : > { %1135 = vmatmul.msk.bf16.vlgmr.msra.gmra.mxu0 %vm454_vm1, %v453_v2  ;;  %v1216_v18 = vld [vmem:[%s1425_s26 + $0x28] sm:$0xff]  ;;  %v516_v19 = vld [vmem:[%s409_s24] sm:$0x1]  ;;  %s424_s17 = scalar_lea.vmem %s1607_s7, %s1124_s16 }
  0x17   : > { %775 = vmatpush.bf16.msrb.mxu0 %v460_v1  ;;  %vm517_vm4 = vcmp.gt.f32.partialorder %v516_v19, 0.0  ;;  %v1219_v24 = vld [vmem:[%s414_s14] sm:$0xff]  ;;  %v1220_v33 = vld [vmem:[%s414_s14 + $0x8] sm:$0xff] }
  0x18   : > { %v518_v21 = vsel %vm517_vm4, 1, %v1323_v20 }
  0x19   : > { %v519_v22 = vperm.slane %v518_v21, 0 }
  0x1b   : > { %vm1476_vm5 = vcmp.eq.s32.totalorder %v519_v22, 1 }
  0x24   : > { %1179 = vmatmul.msk.bf16.gmra.mxu2 %vm454_vm1, %v1212_v11 }
  0x26   : > { %1194 = vmatmul.msk.bf16.vlgmr.msrb.gmra.mxu0 %vm454_vm1, %v1219_v24 }
  0x34   : > { %1180 = vmatmul.msk.bf16.gmra.mxu2 %vm454_vm1, %v1213_v13 }
  0x36   : > { %1195 = vmatmul.msk.bf16.gmra.mxu0 %vm454_vm1, %v1220_v33 }
  0x44   : > { %1181 = vmatmul.msk.bf16.gmra.mxu2 %vm454_vm1, %v1214_v15 }
  0x54   : > { %1182 = vmatmul.msk.bf16.gmra.mxu2 %vm454_vm1, %v1215_v17 }
  0x64   : > { %1183 = vmatmul.msk.bf16.gmra.mxu2 %vm454_vm1, %v1216_v18 }
  0x93   : > { %v471_v6 = vpop.f32.mrf.mxu0 }
  0x94   : > { %v475_v7 = vpack.c.bf16 %v471_v6, %v471_v6 }
  0x96   : > { %v495_v8 = vsel %vm493_vm2, %v475_v7, 0 }
  0x97   : > { %504 = vmatpush.bf16.msra.mxu3 %v495_v8  ;;  %v638_v23 = vpop.f32.mrf.mxu2 }
  0x9a   : > { %1144 = vmatmul.msk.bf16.vlgmr.msra.gmra.mxu3 %vm486_vm3, %v1445_v9 }
  0x9b   : > { %1221 = vmatpush.bf16.msrb.mxu3 %v627_v4  ;;  %v473_v10 = vpop.f32.mrf.mxu0 }
  0x9f   : > { %v640_v28 = vpop.f32.mrf.mxu2 }
  0xa0   : > { %v680_v29 = vpack.c.bf16 %v640_v28, %v638_v23 }
  0xa3   : > { %v777_v11 = vpop.f32.mrf.mxu0 }
  0xa7   : > { %v643_v32 = vpop.f32.mrf.mxu2 }
  0xaa   : > { %1145 = vmatmul.msk.bf16.gmra.mxu3 %vm486_vm3, %v1451_v12 }
  0xab   : > { %v779_v13 = vpop.f32.mrf.mxu0 }
  0xaf   : > { %v645_v36 = vpop.f32.mrf.mxu2 }
  0xb0   : > { %v681_v37 = vpack.c.bf16 %v645_v36, %v643_v32 }
  0xb3   : > { %v782_v15 = vpop.f32.mrf.mxu0 }
  0xb7   : > { %v648_v40 = vpop.f32.mrf.mxu2 }
  0xba   : > { %1184 = vmatmul.msk.bf16.vlgmr.msrb.gmra.mxu3 %vm454_vm1, %v1217_v14  ;;  %v787_v14 = vpack.c.bf16 %v779_v13, %v777_v11 }
  0xbf   : > { %v650_v41 = vpop.f32.mrf.mxu2 }
  0xc0   : > { %v682_v57 = vpack.c.bf16 %v650_v41, %v648_v40 }
  0xc7   : > { %v653_v42 = vpop.f32.mrf.mxu2 }
  0xca   : > { %1185 = vmatmul.msk.bf16.gmra.mxu3 %vm454_vm1, %v1218_v16  ;;  %v784_v16 = vpop.f32.mrf.mxu0 }
  0xcb   : > { %v788_v17 = vpack.c.bf16 %v784_v16, %v782_v15 }
  0xcf   : > { %v655_v43 = vpop.f32.mrf.mxu2 }
  0xd0   : > { %v683_v56 = vpack.c.bf16 %v655_v43, %v653_v42 }
  0xd7   : > { %v658_v45 = vpop.f32.mrf.mxu2 }
  0xdf   : > { %v660_v47 = vpop.f32.mrf.mxu2 }
  0xe0   : > { %v684_v55 = vpack.c.bf16 %v660_v47, %v658_v45 }
  0xe7   : > { %v663_v49 = vpop.f32.mrf.mxu2 }
  0xef   : > { %v665_v53 = vpop.f32.mrf.mxu2 }
  0xf0   : > { %v685_v54 = vpack.c.bf16 %v665_v53, %v663_v49 }
 0x11d   : > { %v506_v26 = vpop.f32.mrf.mxu3 }
 0x11e   : > { %v521_v27 = vsel %vm1476_vm5, -1e+30, %v506_v26 }
 0x11f   : > { %525 = vmax.xlane.f32.xlu0 %v521_v27 }
 0x125   : > { %v508_v30 = vpop.f32.mrf.mxu3 }
 0x126   : > { %v522_v31 = vsel %vm1476_vm5, -1e+30, %v508_v30 }
 0x127   : > { %527 = vmax.xlane.f32.xlu0 %v522_v31 }
 0x12d   : > { %v511_v34 = vpop.f32.mrf.mxu3 }
 0x12e   : > { %v523_v35 = vsel %vm1476_vm5, -1e+30, %v511_v34 }
 0x12f   : > { %529 = vmax.xlane.f32.xlu1 %v523_v35 }
 0x135   : > { %v513_v38 = vpop.f32.mrf.mxu3 }
 0x136   : > { %v524_v39 = vsel %vm1476_vm5, -1e+30, %v513_v38 }
 0x137   : > { %531 = vmax.xlane.f32.xlu1 %v524_v39 }
 0x13d   : > { %v668_v44 = vpop.f32.mrf.mxu3 }
 0x145   : > { %v670_v46 = vpop.f32.mrf.mxu3 }
 0x146   : > { %v686_v52 = vpack.c.bf16 %v670_v46, %v668_v44 }
 0x14d   : > { %v673_v48 = vpop.f32.mrf.mxu3 }
 0x155   : > { %v675_v50 = vpop.f32.mrf.mxu3 }
 0x156   : > { %v687_v51 = vpack.c.bf16 %v675_v50, %v673_v48 }
 0x158   : > { %688 = vmatpush.bf16.msra.mxu3 %v687_v51 }
 0x15c   : > { %689 = vmatpush.bf16.msra.mxu3 %v686_v52 }
 0x160   : > { %690 = vmatpush.bf16.msra.mxu3 %v685_v54 }
 0x164   : > { %691 = vmatpush.bf16.msra.mxu3 %v684_v55 }
 0x168   : > { %692 = vmatpush.bf16.msra.mxu3 %v683_v56 }
 0x16c   : > { %693 = vmatpush.bf16.msra.mxu3 %v682_v57 }
 0x170   : > { %694 = vmatpush.bf16.msra.mxu3 %v681_v37 }
 0x174   : > { %695 = vmatpush.bf16.msra.mxu3 %v680_v29 }
 0x192   : > { %v526_v58 = vpop.xlane.xlu0 %525 }
 0x193   : > { %v533_v59 = vsub.f32 %v521_v27, %v526_v58 }
 0x195   : > { %v537_v60 = vmul.f32 1.442695, %v533_v59 }
 0x197   : > { %1267 = vpow2.f32 %v537_v60 }
 0x19a   : > { %v528_v61 = vpop.xlane.xlu0 %527 }
 0x19b   : > { %v534_v62 = vsub.f32 %v522_v31, %v528_v61 }
 0x19d   : > { %v1268_v63 = vpop.eup %1267  ;;  %v539_v0 = vmul.f32 1.442695, %v534_v62 }
 0x19e   : > { %545 = vadd.xlane.f32.xlu2 %v1268_v63 }
 0x19f   : > { %1269 = vpow2.f32 %v539_v0 }
 0x1a2   : > { %v530_v1 = vpop.xlane.xlu1 %529 }
 0x1a3   : > { %v535_v2 = vsub.f32 %v523_v35, %v530_v1 }
 0x1a5   : > { %v1270_v3 = vpop.eup %1269  ;;  %v541_v4 = vmul.f32 1.442695, %v535_v2 }
 0x1a6   : > { %547 = vadd.xlane.f32.xlu2 %v1270_v3 }
 0x1a7   : > { %1271 = vpow2.f32 %v541_v4 }
 0x1aa   : > { %v532_v5 = vpop.xlane.xlu1 %531 }
 0x1ab   : > { %v536_v6 = vsub.f32 %v524_v39, %v532_v5 }
 0x1ad   : > { %v1272_v7 = vpop.eup %1271  ;;  %v543_v8 = vmul.f32 1.442695, %v536_v6 }
 0x1ae   : > { %549 = vadd.xlane.f32.xlu0 %v1272_v7 }
 0x1af   : > { %1273 = vpow2.f32 %v543_v8 }
 0x1b5   : > { %v1274_v10 = vpop.eup %1273 }
 0x1b6   : > { %551 = vadd.xlane.f32.xlu1 %v1274_v10 }
 0x1cf   : > { %789 = vxpose.xlu2.c.b16.start [1/2] (short) %v787_v14, 128 }
 0x1df   : > { %790 = vxpose.xlu2.c.b16.end [2/2] (short) %v788_v17, 128 }
 0x211   : > { %v546_v18 = vpop.xlane.xlu2 %545 }
 0x212   : > { %1275 = vrcp.f32 %v546_v18 }
 0x218   : > { %v1276_v20 = vpop.eup %1275 }
 0x219   : > { %v548_v19 = vpop.xlane.xlu2 %547  ;;  %v557_v22 = vmul.f32 %v1276_v20, %v1268_v63 }
 0x21a   : > { %1277 = vrcp.f32 %v548_v19 }
 0x220   : > { %v1278_v21 = vpop.eup %1277 }
 0x221   : > { %v558_v23 = vmul.f32 %v1278_v21, %v1270_v3  ;;  %v550_v25 = vpop.xlane.xlu0 %549 }
 0x222   : > { %1279 = vrcp.f32 %v550_v25 }
 0x223   : > { %v678_v24 = vpack.c.bf16 %v558_v23, %v557_v22 }
 0x225   : > { %696 = vmatmul.bf16.vlgmr.msra.gmra.mxu3 %v678_v24 }
 0x228   : > { %v1280_v27 = vpop.eup %1279 }
 0x229   : > { %v552_v26 = vpop.xlane.xlu1 %551  ;;  %v559_v29 = vmul.f32 %v1280_v27, %v1272_v7 }
 0x22a   : > { %1281 = vrcp.f32 %v552_v26 }
 0x230   : > { %v1282_v28 = vpop.eup %1281 }
 0x231   : > { %v560_v30 = vmul.f32 %v1282_v28, %v1274_v10 }
 0x233   : > { %v679_v31 = vpack.c.bf16 %v560_v30, %v559_v29 }
 0x235   : > { %701 = vmatmul.bf16.gmra.mxu3 %v679_v31 }
 0x270   : > { %v797_v33 = vpop.trf.xlu2 }
 0x280   : > { %v798_v41 = vpop.trf.xlu2 }
 0x290   : > { %v799_v45 = vpop.trf.xlu2 }
 0x2a0   : > { %v800_v49 = vpop.trf.xlu2 }
 0x2a8   : > { %v697_v32 = vpop.f32.mrf.mxu3 }
 0x2a9   : > { %v707_v34 = vpack.c.bf16 %v697_v32, %v697_v32 }
 0x2ab   : > { %v715_v37 = vunpack.c.l.b16 %v707_v34 }
 0x2b0   : > { %v699_v35 = vpop.f32.mrf.mxu3  ;;  %v801_v50 = vpop.trf.xlu2 }
 0x2b1   : > { %v708_v36 = vpack.c.bf16 %v699_v35, %v699_v35 }
 0x2b3   : > { %v716_v38 = vunpack.c.l.b16 %v708_v36 }
 0x2b5   : > { %v719_v39 = vpack.c.b16 %v716_v38, %v715_v37 }
 0x2b7   : > { %721 = vrot.lane.b32.xlu0 %v719_v39, %s1324_s28 }
 0x2b8   : > { %v702_v40 = vpop.f32.mrf.mxu3 }
 0x2b9   : > { %v709_v42 = vpack.c.bf16 %v702_v40, %v702_v40 }
 0x2bb   : > { %v717_v46 = vunpack.c.l.b16 %v709_v42 }
 0x2c0   : > { %v704_v43 = vpop.f32.mrf.mxu3  ;;  %v802_v51 = vpop.trf.xlu2 }
 0x2c1   : > { %v710_v44 = vpack.c.bf16 %v704_v43, %v704_v43 }
 0x2c3   : > { %v718_v47 = vunpack.c.l.b16 %v710_v44 }
 0x2c5   : > { %v720_v48 = vpack.c.b16 %v718_v47, %v717_v46 }
 0x2c7   : > { %723 = vrot.lane.b32.xlu1 %v720_v48, %s1324_s28  ;;  %838 = vmatpush.bf16.msra.mxu0 %v720_v48 }
 0x2c8   : > { %1222 = vmatpush.bf16.msra.mxu1 %v720_v48 }
 0x2cb   : > { %839 = vmatpush.bf16.msra.mxu0 %v719_v39 }
 0x2cc   : > { %1223 = vmatpush.bf16.msra.mxu1 %v719_v39 }
 0x2ce   : > { %1196 = vmatmul.msk.bf16.vlgmr.msra.gmra.mxu0 %vm807_vm6, %v797_v33 }
 0x2cf   : > { %1199 = vmatmul.msk.bf16.vlgmr.msra.gmra.mxu1 %vm807_vm6, %v800_v49 }
 0x2d0   : > { %v803_v52 = vpop.trf.xlu2 }
 0x2de   : > { %1197 = vmatmul.msk.bf16.gmra.mxu0 %vm807_vm6, %v798_v41 }
 0x2df   : > { %1200 = vmatmul.msk.bf16.gmra.mxu1 %vm807_vm6, %v801_v50 }
 0x2e0   : > { %v804_v53 = vpop.trf.xlu2 }
 0x2ee   : > { %1198 = vmatmul.msk.bf16.gmra.mxu0 %vm807_vm6, %v799_v45 }
 0x2ef   : > { %1201 = vmatmul.msk.bf16.gmra.mxu1 %vm807_vm6, %v802_v51 }
 0x2ff   : > { %1202 = vmatmul.msk.bf16.gmra.mxu1 %vm807_vm6, %v803_v52 }
 0x30f   : > { %1203 = vmatmul.msk.bf16.gmra.mxu1 %vm807_vm6, %v804_v53 }
 0x329   : > { %v722_v54 = vpop.permute.xlu0 %721 }
 0x32a   : > { %v726_v55 = vsel %vm486_vm3, %v1445_v9, %v722_v54 }
 0x32b   : > { %v731_v56 = vunpack.c.l.b16 %v726_v55  ;;  %v732_v57 = vunpack.c.h.b16 %v726_v55 }
 0x32d   : > { %v735_v58 = vpack.c.b16 %v731_v56, %v731_v56  ;;  %v736_v59 = vpack.c.b16 %v732_v57, %v732_v57 }
 0x32f   : > { %744 = vst.msk [vmem:[%s424_s17] sm:$0xf] %vm743_vm7, %v735_v58 }
 0x330   : > { %745 = vst.msk [vmem:[%s424_s17 + $0x4] sm:$0xf] %vm743_vm7, %v736_v59 }
 0x339   : > { %v724_v60 = vpop.permute.xlu1 %723 }
 0x33a   : > { %v728_v61 = vsel %vm486_vm3, %v1451_v12, %v724_v60 }
 0x33b   : > { %v733_v62 = vunpack.c.l.b16 %v728_v61  ;;  %v734_v63 = vunpack.c.h.b16 %v728_v61 }
 0x33d   : > { %v737_v0 = vpack.c.b16 %v733_v62, %v733_v62  ;;  %v738_v9 = vpack.c.b16 %v734_v63, %v734_v63 }
 0x33f   : > { %746 = vst.msk [vmem:[%s424_s17 + $0x8] sm:$0xf] %vm743_vm7, %v737_v0 }
 0x340   : > { %747 = vst.msk [vmem:[%s424_s17 + $0xc] sm:$0xf] %vm743_vm7, %v738_v9 }
 0x34b   : > { %v841_v1 = vpop.f32.mrf.mxu0 }
 0x34c   : > { %v856_v2 = vpop.f32.mrf.mxu1 }
 0x353   : > { %v843_v3 = vpop.f32.mrf.mxu0 }
 0x354   : > { %v858_v4 = vpop.f32.mrf.mxu1 }
 0x35b   : > { %v846_v5 = vpop.f32.mrf.mxu0 }
 0x35c   : > { %v861_v6 = vpop.f32.mrf.mxu1 }
 0x363   : > { %v848_v7 = vpop.f32.mrf.mxu0 }
 0x364   : > { %v863_v8 = vpop.f32.mrf.mxu1 }
 0x36b   : > { %v851_v10 = vpop.f32.mrf.mxu0 }
 0x36c   : > { %v866_v11 = vpop.f32.mrf.mxu1 }
 0x373   : > { %v853_v13 = vpop.f32.mrf.mxu0 }
 0x374   : > { %v868_v14 = vpop.f32.mrf.mxu1 }
 0x37c   : > { %v871_v15 = vpop.f32.mrf.mxu1 }
 0x384   : > { %v873_v12 = vpop.f32.mrf.mxu1 }
 0x38c   : > { %v1498_v16 = vpop.f32.mrf.mxu1 }
 0x390   : > { %884 = sbr.rel (%p1204_p7) target bundleno = 934 (0x3a6), region = 52 }
 0x394   : > { %v1500_v17 = vpop.f32.mrf.mxu1 }
 0x395   : > { %v1325_v18 = vmov 0.0  }
 0x396   : > { %885 = vst.msk [vmem:[%s1413_s19] sm:$0xff] %vm486_vm3, %v1325_v18 }
 0x397   : > { %886 = vst.msk [vmem:[%s1413_s19 + $0x8] sm:$0xff] %vm486_vm3, %v1325_v18 }
 0x398   : > { %887 = vst.msk [vmem:[%s1413_s19 + $0x10] sm:$0xff] %vm486_vm3, %v1325_v18 }
 0x399   : > { %888 = vst.msk [vmem:[%s1413_s19 + $0x18] sm:$0xff] %vm486_vm3, %v1325_v18 }
 0x39a   : > { %889 = vst.msk [vmem:[%s1413_s19 + $0x20] sm:$0xff] %vm486_vm3, %v1325_v18 }
 0x39b   : > { %890 = vst.msk [vmem:[%s1413_s19 + $0x28] sm:$0xff] %vm486_vm3, %v1325_v18 }
 0x39c   : > { %891 = vst.msk [vmem:[%s1413_s19 + $0x30] sm:$0xff] %vm486_vm3, %v1325_v18 }
 0x39d   : > { %892 = vst.msk [vmem:[%s1413_s19 + $0x38] sm:$0xff] %vm486_vm3, %v1325_v18 }
 0x39e   : > { %893 = vst.msk [vmem:[%s1413_s19 + $0x40] sm:$0xff] %vm486_vm3, %v1325_v18 }
 0x39f   : > { %894 = vst.msk [vmem:[%s1413_s19 + $0x48] sm:$0xff] %vm486_vm3, %v1325_v18 }
 0x3a0   : > { %895 = vst.msk [vmem:[%s1413_s19 + $0x50] sm:$0xff] %vm486_vm3, %v1325_v18 }
 0x3a1   : > { %896 = vst.msk [vmem:[%s1413_s19 + $0x58] sm:$0xff] %vm486_vm3, %v1325_v18 }
 0x3a2   : > { %897 = vst.msk [vmem:[%s1413_s19 + $0x60] sm:$0xff] %vm486_vm3, %v1325_v18 }
 0x3a3   : > { %898 = vst.msk [vmem:[%s1413_s19 + $0x68] sm:$0xff] %vm486_vm3, %v1325_v18 }
 0x3a4   : > { %899 = vst.msk [vmem:[%s1413_s19 + $0x70] sm:$0xff] %vm486_vm3, %v1325_v18 }
 0x3a5   : > { %900 = vst.msk [vmem:[%s1413_s19 + $0x78] sm:$0xff] %vm486_vm3, %v1325_v18 }
 0x3a6 PF: > { %v901_v19 = vld [vmem:[%s1413_s19] sm:$0xff]  ;;  %v902_v20 = vld [vmem:[%s1413_s19 + $0x8] sm:$0xff]  ;;  %v903_v21 = vld [vmem:[%s1413_s19 + $0x10] sm:$0xff] }
 0x3a7   : > { %v917_v22 = vadd.f32 %v901_v19, %v841_v1  ;;  %v918_v23 = vadd.f32 %v902_v20, %v843_v3  ;;  %v919_v24 = vadd.f32 %v903_v21, %v846_v5  ;;  %v904_v25 = vld [vmem:[%s1413_s19 + $0x18] sm:$0xff]  ;;  %v905_v26 = vld [vmem:[%s1413_s19 + $0x20] sm:$0xff]  ;;  %v906_v27 = vld [vmem:[%s1413_s19 + $0x28] sm:$0xff] }
 0x3a8   : > { %v920_v28 = vadd.f32 %v904_v25, %v848_v7  ;;  %v907_v29 = vld [vmem:[%s1413_s19 + $0x30] sm:$0xff]  ;;  %v921_v30 = vadd.f32 %v905_v26, %v851_v10  ;;  %v908_v31 = vld [vmem:[%s1413_s19 + $0x38] sm:$0xff]  ;;  %v922_v32 = vadd.f32 %v906_v27, %v853_v13  ;;  %v909_v33 = vld [vmem:[%s1413_s19 + $0x40] sm:$0xff] }
 0x3a9   : > { %933 = vst.msk [vmem:[%s1413_s19] sm:$0xff] %vm486_vm3, %v917_v22  ;;  %v923_v34 = vadd.f32 %v907_v29, %v856_v2  ;;  %v910_v35 = vld [vmem:[%s1413_s19 + $0x48] sm:$0xff]  ;;  %v924_v36 = vadd.f32 %v908_v31, %v858_v4  ;;  %v911_v37 = vld [vmem:[%s1413_s19 + $0x50] sm:$0xff]  ;;  %v925_v38 = vadd.f32 %v909_v33, %v861_v6  ;;  %v912_v39 = vld [vmem:[%s1413_s19 + $0x58] sm:$0xff] }
 0x3aa   : > { %934 = vst.msk [vmem:[%s1413_s19 + $0x8] sm:$0xff] %vm486_vm3, %v918_v23  ;;  %v926_v40 = vadd.f32 %v910_v35, %v863_v8  ;;  %v913_v41 = vld [vmem:[%s1413_s19 + $0x60] sm:$0xff]  ;;  %v927_v42 = vadd.f32 %v911_v37, %v866_v11  ;;  %v914_v43 = vld [vmem:[%s1413_s19 + $0x68] sm:$0xff]  ;;  %v928_v44 = vadd.f32 %v912_v39, %v868_v14 }
 0x3ab   : > { %935 = vst.msk [vmem:[%s1413_s19 + $0x10] sm:$0xff] %vm486_vm3, %v919_v24  ;;  %v915_v45 = vld [vmem:[%s1413_s19 + $0x70] sm:$0xff]  ;;  %v929_v46 = vadd.f32 %v913_v41, %v871_v15  ;;  %v930_v48 = vadd.f32 %v914_v43, %v873_v12 }
 0x3ac   : > { %936 = vst.msk [vmem:[%s1413_s19 + $0x18] sm:$0xff] %vm486_vm3, %v920_v28  ;;  %v916_v47 = vld [vmem:[%s1413_s19 + $0x78] sm:$0xff]  ;;  %v931_v49 = vadd.f32 %v915_v45, %v1498_v16 }
 0x3ad   : > { %937 = vst.msk [vmem:[%s1413_s19 + $0x20] sm:$0xff] %vm486_vm3, %v921_v30  ;;  %v932_v50 = vadd.f32 %v916_v47, %v1500_v17 }
 0x3ae   : > { %938 = vst.msk [vmem:[%s1413_s19 + $0x28] sm:$0xff] %vm486_vm3, %v922_v32 }
 0x3af   : > { %939 = vst.msk [vmem:[%s1413_s19 + $0x30] sm:$0xff] %vm486_vm3, %v923_v34 }
 0x3b0   : > { %940 = vst.msk [vmem:[%s1413_s19 + $0x38] sm:$0xff] %vm486_vm3, %v924_v36 }
 0x3b1   : > { %941 = vst.msk [vmem:[%s1413_s19 + $0x40] sm:$0xff] %vm486_vm3, %v925_v38 }
 0x3b2   : > { %942 = vst.msk [vmem:[%s1413_s19 + $0x48] sm:$0xff] %vm486_vm3, %v926_v40 }
 0x3b3   : > { %943 = vst.msk [vmem:[%s1413_s19 + $0x50] sm:$0xff] %vm486_vm3, %v927_v42 }
 0x3b4   : > { %944 = vst.msk [vmem:[%s1413_s19 + $0x58] sm:$0xff] %vm486_vm3, %v928_v44 }
 0x3b5   : > { %945 = vst.msk [vmem:[%s1413_s19 + $0x60] sm:$0xff] %vm486_vm3, %v929_v46 }
 0x3b6   : > { %946 = vst.msk [vmem:[%s1413_s19 + $0x68] sm:$0xff] %vm486_vm3, %v930_v48 }
 0x3b7   : > { %947 = vst.msk [vmem:[%s1413_s19 + $0x70] sm:$0xff] %vm486_vm3, %v931_v49 }
 0x3b8   : > { %948 = vst.msk [vmem:[%s1413_s19 + $0x78] sm:$0xff] %vm486_vm3, %v932_v50 }
 0x3b9 PF: > { %s19_s9 = sadd.s32 1, %s1321_s9   ;;  %s1611_s27 = smov %s1313_s29 }
 0x3ba   : > { %p16_p8 = scmp.ge.s32.totalorder %s19_s9, 6   ;;  %s1612_s28 = smov %s1317_s30 }
 0x3bb   : > { %s1613_s29 = smov %s1616_s10  ;;  %s1614_s30 = smov %s1620_s11 }
 0x3bc   :  { %18 = sbr.rel (!%p16_p8) target bundleno = 3 (0x3), region = 106 }

// kernel: dcm_next_stage_forward.16
= control target key start
LH: loop header
LB: loop body
LE: loop exit
PB: predicated region body
PF: predicated region fallthrough
CT: control target
= control target key end

     0   :  { %s893_s12 = smov 0   ;;  %s895_s13 = smov 0   ;;  %s1114_s0 = inlined_call_operand.vmem [shape: bf16[2,10,10,12], index: 0, kind: input, shape index: {}]   ;;  %s1115_s1 = inlined_call_operand.vmem [shape: bf16[108,24], index: 1, kind: input, shape index: {}]   ;;  %s1116_s2 = inlined_call_operand.vmem [shape: bf16[2,64,24], index: 2, kind: output, shape index: {0}]   ;;  %s1117_s3 = inlined_call_operand.vmem [shape: f32[2,2,24], index: 3, kind: output, shape index: {1}]  }
   0x1   :  { %s897_s14 = smov 0   ;;  %s899_s15 = smov 0  }
   0x2   :  { %s901_s16 = smov 0  }
   0x3 LB: > { %s23_s17 = sadd.s32 1, %s854_s14  ;;  %s26_s18 = sadd.s32 1, %s858_s15  ;;  %s862_s16 = sphi %s901_s16, %s14_s16   ;;  %s858_s15 = sphi %s899_s15, %s1125_s15   ;;  %s854_s14 = sphi %s897_s14, %s1124_s14   ;;  %s850_s13 = sphi %s895_s13, %s1123_s13   ;;  %s846_s12 = sphi %s893_s12, %s1122_s12  }
   0x4   : > { %p24_p0 = scmp.ge.s32.totalorder %s23_s17, 2  ;;  %p710_p1 = scmp.ge.s32.totalorder %s862_s16, 1 }
   0x5   : > { %p154_p2 = scmp.lt.s32.totalorder %s862_s16, 5 }
   0x6   : > { %s1127_s17 = smov (%p24_p0, %s23_s17), 0  ;;  %s1129_s18 = smov (!%p24_p0, %s26_s18), %s858_s15 }
   0x7   : > { %p155_p3 = pnand %p710_p1, %p154_p2  ;;  %p28_p4 = scmp.ge.s32.totalorder %s1129_s18, 2 }
   0x8   : > { %p186_p5 = scmp.lt.s32.totalorder (!%p155_p3), %s850_s13, 1  ;;  %s759_s19 = sshll.u32 (!%p155_p3), %s846_s12, 5 }
   0x9   : > { %s1131_s18 = smov (%p28_p4, %s1129_s18), 0  ;;  %158 = sbr.rel (%p155_p3) target bundleno = 356 (0x164), region = 28 }
   0xa   : > { %s864_s29 = smov (!%p155_p3), 24   ;;  %s865_s30 = smov (!%p155_p3), 12  }
   0xb   : > { %s866_s4 = smov (!%p155_p3), 36   ;;  %s867_s5 = smov (!%p155_p3), 48  }
   0xc   : > { %s868_s6 = smov (!%p155_p3), 72   ;;  %s869_s7 = smov (!%p155_p3), 60  }
   0xd   : > { %s870_s8 = smov (!%p155_p3), 84   ;;  %s871_s9 = smov (!%p155_p3), 96  }
   0xe   : > { %s1133_s13 = smov (!%p186_p5, %s850_s13), 1  ;;  %vm289_vm0 = vcmask 1042432   ;;  %vm290_vm1 = vcmask 1046532   ;;  %vm222_vm3 = vsmask.f32 3328  ;;  %vm515_vm6 = vcmask 1045504  }
   0xf   : > { %s774_s20 = smul.u32 80, %s1133_s13  ;;  %s715_s21 = sshll.u32 %s1133_s13, 1  ;;  %vm940_vm2 = vmor %vm289_vm0, %vm290_vm1  ;;  %vm223_vm4 = vsmask.f32 7440  ;;  %vm413_vm7 = vcmask 97280   ;;  %vm420_vm8 = vcmask 195584  }
  0x10   : > { %s933_s24 = scalar_lea.vmem %s1117_s3, %s715_s21  ;;  %vm979_vm5 = vmor %vm222_vm3, %vm223_vm4  ;;  %vm425_vm9 = vcmask 293888   ;;  %vm430_vm10 = vcmask 392192   ;;  %vm435_vm11 = vcmask 490496   ;;  %vm440_vm12 = vcmask 588800   ;;  %p755_p7 = scmp.ne.s32.totalorder %s846_s12, 0 }
  0x11   : > { %s190_s27 = scalar_lea.vmem %s1114_s0, %s774_s20  ;;  %vm450_vm13 = vcmask 785408   ;;  %vm445_vm14 = vcmask 687104   ;;  %vm510_vm15 = vcmask 883712   ;;  %vm542_vm0 = vcmask 191488  }
  0x12   : > { %s938_s28 = scalar_lea.vmem %s190_s27, %s759_s19 }
  0x13   : > { %v945_v1 = vld [vmem:[%s938_s28] sm:$0xf]  ;;  %v211_v2 = vld [vmem:[%s938_s28 + $0x4] sm:$0x1]  ;;  %v949_v3 = vld [vmem:[%s938_s28 + $0x8] sm:$0xf] }
  0x14   : > { %v213_v4 = vld [vmem:[%s938_s28 + $0xc] sm:$0x1]  ;;  %v719_v5 = vrot.slane %v945_v1, 9  ;;  %v294_v6 = vrot.slane %v211_v2, 5  ;;  %v720_v7 = vrot.slane %v949_v3, 9  ;;  %v226_v8 = vshrl.u32 %v945_v1, 16 }
  0x15   : > { %v298_v9 = vrot.slane %v213_v4, 5  ;;  %v229_v10 = vshll.u32 %v945_v1, 16  ;;  %v235_v11 = vshll.u32 %v211_v2, 16  ;;  %v240_v12 = vshrl.u32 %v949_v3, 16  ;;  %v958_v13 = vld [vmem:[%s938_s28 + $0x10] sm:$0xf] }
  0x16   : > { %v295_v14 = vsel %vm940_vm2, %v719_v5, %v294_v6  ;;  %v228_v15 = vrot.slane %v226_v8, 4  ;;  %v243_v16 = vshll.u32 %v949_v3, 16  ;;  %v249_v17 = vshll.u32 %v213_v4, 16  ;;  %v215_v18 = vld [vmem:[%s938_s28 + $0x14] sm:$0x1] }
  0x17   : > { %v966_v19 = vsel %vm940_vm2, %v720_v7, %v298_v9  ;;  %v364_v20 = vunpack.c.l.b16 %v295_v14  ;;  %v231_v21 = vrot.slane %v229_v10, 5  ;;  %v237_v22 = vrot.slane %v235_v11, 5  ;;  %v969_v23 = vld [vmem:[%s938_s28 + $0x18] sm:$0xf]  ;;  %v217_v24 = vld [vmem:[%s938_s28 + $0x1c] sm:$0x1] }
  0x18   : > { %v365_v25 = vunpack.c.l.b16 %v966_v19  ;;  %v242_v26 = vrot.slane %v240_v12, 4  ;;  %v245_v27 = vrot.slane %v243_v16, 5  ;;  %v251_v28 = vrot.slane %v249_v17, 5  ;;  %v999_v50 = vld [vmem:[%s938_s28 + $0x20] sm:$0xf] }
  0x19   : > { %v232_v29 = vor.u32 %v231_v21, %v228_v15  ;;  %v721_v30 = vrot.slane %v958_v13, 9  ;;  %v302_v31 = vrot.slane %v215_v18, 5  ;;  %v722_v32 = vrot.slane %v969_v23, 9  ;;  %v219_v55 = vld [vmem:[%s938_s28 + $0x24] sm:$0x1] }
  0x1a   : > { %v368_v33 = vpack.c.b16 %v365_v25, %v364_v20  ;;  %v246_v35 = vor.u32 %v245_v27, %v242_v26  ;;  %v306_v36 = vrot.slane %v217_v24, 5  ;;  %v254_v37 = vshrl.u32 %v958_v13, 16  ;;  %v1015_v10 = vld [vmem:[%s938_s28 + $0x28] sm:$0xf] }
  0x1b   : > { %v233_v38 = vrot.slane %v232_v29, 4  ;;  %v986_v39 = vsel %vm940_vm2, %v721_v30, %v302_v31  ;;  %v257_v40 = vshll.u32 %v958_v13, 16  ;;  %v263_v41 = vshll.u32 %v215_v18, 16  ;;  %v221_v29 = vld [vmem:[%s938_s28 + $0x2c] sm:$0x1] }
  0x1c   : > { %370 = vrot.lane.b32.xlu1 %v368_v33, %s864_s29  ;;  %v247_v42 = vrot.slane %v246_v35, 4  ;;  %v992_v43 = vsel %vm940_vm2, %v722_v32, %v306_v36  ;;  %v366_v44 = vunpack.c.l.b16 %v986_v39  ;;  %v256_v45 = vrot.slane %v254_v37, 4 }
  0x1d   : > { %v238_v46 = vsel %vm979_vm5, %v233_v38, %v237_v22  ;;  %v367_v47 = vunpack.c.l.b16 %v992_v43  ;;  %v259_v48 = vrot.slane %v257_v40, 5  ;;  %v265_v49 = vrot.slane %v263_v41, 5  ;;  %v751_v43 = vld [vmem:[%s1115_s1 + $0x30] sm:$0xf] }
  0x1e   : > { %v252_v51 = vsel %vm979_vm5, %v247_v42, %v251_v28  ;;  %v354_v52 = vunpack.c.l.b16 %v238_v46  ;;  %v268_v53 = vshrl.u32 %v969_v23, 16  ;;  %v271_v54 = vshll.u32 %v969_v23, 16 }
  0x1f   : > { %v355_v56 = vunpack.c.l.b16 %v252_v51  ;;  %v1010_v57 = vpack.c.b16 %v367_v47, %v366_v44  ;;  %v260_v58 = vor.u32 %v259_v48, %v256_v45  ;;  %v277_v59 = vshll.u32 %v217_v24, 16 }
  0x20   : > { %v270_v60 = vrot.slane %v268_v53, 4  ;;  %v273_v61 = vrot.slane %v271_v54, 5  ;;  %v309_v62 = vshrl.u32 %v999_v50, 16  ;;  %v312_v63 = vshll.u32 %v999_v50, 16 }
  0x21   : > { %v358_v2 = vpack.c.b16 %v355_v56, %v354_v52  ;;  %v261_v4 = vrot.slane %v260_v58, 4  ;;  %v318_v5 = vshll.u32 %v219_v55, 16  ;;  %v279_v7 = vrot.slane %v277_v59, 5 }
  0x22   : > { %v274_v6 = vor.u32 %v273_v61, %v270_v60  ;;  %v311_v8 = vrot.slane %v309_v62, 4  ;;  %v314_v9 = vrot.slane %v312_v63, 5  ;;  %v350_v16 = vunpack.c.l.b16 %v958_v13  ;;  %v765_v60 = vld [vmem:[%s1115_s1 + $0x28] sm:$0xff]  ;;  %v763_v61 = vld [vmem:[%s1115_s1 + $0x18] sm:$0xff]  ;;  %v762_v62 = vld [vmem:[%s1115_s1 + $0x10] sm:$0xff] }
  0x23   : > { %360 = vrot.lane.b32.xlu0 %v358_v2, %s865_s30  ;;  %v266_v11 = vsel %vm979_vm5, %v261_v4, %v265_v49  ;;  %v320_v15 = vrot.slane %v318_v5, 5  ;;  %v349_v18 = vunpack.c.l.b16 %v949_v3  ;;  %v348_v20 = vunpack.c.l.b16 %v945_v1  ;;  %v761_v2 = vld [vmem:[%s1115_s1 + $0x8] sm:$0xff]  ;;  %v760_v4 = vld [vmem:[%s1115_s1] sm:$0xff] }
  0x24   : > { %372 = vrot.lane.b32.xlu1 %v1010_v57, %s864_s29  ;;  %v275_v12 = vrot.slane %v274_v6, 4  ;;  %v315_v14 = vor.u32 %v314_v9, %v311_v8  ;;  %v356_v17 = vunpack.c.l.b16 %v266_v11  ;;  %v329_v21 = vshrl.u32 %v1015_v10, 16 }
  0x25   : > { %v375_v27 = vpack.c.b16 %v350_v16, %v349_v18  ;;  %v1027_v28 = vpack.c.b16 %v349_v18, %v348_v20  ;;  %v332_v31 = vshll.u32 %v1015_v10, 16  ;;  %v374_v1 = vunpack.c.l.b16 %v999_v50 }
  0x26   : > { %v280_v22 = vsel %vm979_vm5, %v275_v12, %v279_v7  ;;  %v316_v24 = vrot.slane %v315_v14, 4  ;;  %v331_v13 = vrot.slane %v329_v21, 4  ;;  %v338_v35 = vshll.u32 %v221_v29, 16 }
  0x27   : > { %v357_v26 = vunpack.c.l.b16 %v280_v22  ;;  %377 = vrot.lane.b32.xlu2 %v375_v27, %s866_s4  ;;  %v334_v33 = vrot.slane %v332_v31, 5  ;;  %v351_v37 = vunpack.c.l.b16 %v969_v23  ;;  %v723_v38 = vrot.slane %v999_v50, 9 }
  0x28   : > { %v321_v30 = vsel %vm979_vm5, %v316_v24, %v320_v15  ;;  %v326_v40 = vrot.slane %v219_v55, 5  ;;  %v340_v46 = vrot.slane %v338_v35, 5  ;;  %v382_v48 = vpack.c.b16 %v356_v17, %v355_v56 }
  0x29   : > { %v359_v3 = vpack.c.b16 %v357_v26, %v356_v17  ;;  %v381_v32 = vunpack.c.l.b16 %v321_v30  ;;  %v335_v41 = vor.u32 %v334_v33, %v331_v13  ;;  %v376_v42 = vpack.c.b16 %v374_v1, %v351_v37 }
  0x2a   : > { %v327_v49 = vsel %vm940_vm2, %v723_v38, %v326_v40  ;;  %v1038_v51 = vpack.c.b16 %v351_v37, %v350_v16  ;;  %v389_v53 = vpack.c.b16 %v366_v44, %v365_v25  ;;  %v395_v34 = vunpack.c.l.b16 %v1015_v10  ;;  %v766_v44 = vld [vmem:[%s1115_s1 + $0x30] sm:$0x30] }
  0x2b   : > { %362 = vrot.lane.b32.xlu0 %v359_v3, %s865_s30  ;;  %v383_v36 = vpack.c.b16 %v381_v32, %v357_v26  ;;  %v336_v45 = vrot.slane %v335_v41, 4  ;;  %v388_v23 = vunpack.c.l.b16 %v327_v49  ;;  %v724_v56 = vrot.slane %v1015_v10, 9 }
  0x2c   : > { %v346_v58 = vrot.slane %v221_v29, 5  ;;  %v396_v59 = vpack.c.b16 %v395_v34, %v374_v1 }
  0x2d   : > { %386 = vrot.lane.b32.xlu1 %v383_v36, %s867_s5  ;;  %v341_v52 = vsel %vm979_vm5, %v336_v45, %v340_v46  ;;  %v390_v54 = vpack.c.b16 %v388_v23, %v367_v47  ;;  %v752_v47 = vor.u32 %v766_v44, %v751_v43 }
  0x2e   : > { %v401_v50 = vunpack.c.l.b16 %v341_v52  ;;  %v347_v19 = vsel %vm940_vm2, %v724_v56, %v346_v58 }
  0x2f   : > { %379 = vrot.lane.b32.xlu2 %v376_v42, %s866_s4  ;;  %v407_v25 = vunpack.c.l.b16 %v347_v19  ;;  %v517_v0 = vsel %vm515_vm6, %v752_v47, 0 }
  0x30   : > { %v402_v55 = vpack.c.b16 %v401_v50, %v381_v32  ;;  %520 = vmatpush.bf16.msra.mxu0 %v517_v0  ;;  %767 = vmatpush.bf16.msra.mxu1 %v517_v0 }
  0x31   : > { %v408_v39 = vpack.c.b16 %v407_v25, %v388_v23 }
  0x33   : > { %384 = vrot.lane.b32.xlu0 %v382_v48, %s867_s5 }
  0x34   : > { %521 = vmatpush.bf16.msra.mxu0 %v765_v60  ;;  %768 = vmatpush.bf16.msra.mxu1 %v765_v60 }
  0x35   : > { %397 = vrot.lane.b32.xlu1 %v1038_v51, %s868_s6 }
  0x37   : > { %391 = vrot.lane.b32.xlu2 %v389_v53, %s869_s7 }
  0x3b   : > { %393 = vrot.lane.b32.xlu0 %v390_v54, %s869_s7  ;;  %s712_s7 = sshll.u32 %s846_s12, 2 }
  0x3c   : > { %p194_p6 = scmp.lt.s32.totalorder %s712_s7, 7 }
  0x3d   : > { %405 = vrot.lane.b32.xlu1 %v402_v55, %s870_s8 }
  0x3e   : > { %s1135_s7 = smov (!%p194_p6, %s712_s7), 7 }
  0x3f   : > { %399 = vrot.lane.b32.xlu2 %v396_v59, %s868_s6 }
  0x43   : > { %403 = vrot.lane.b32.xlu0 %v359_v3, %s870_s8  ;;  %s713_s8 = sshll.u32 %s1133_s13, 3 }
  0x47   : > { %409 = vrot.lane.b32.xlu2 %v1010_v57, %s871_s9  ;;  %v764_v57 = vld [vmem:[%s1115_s1 + $0x20] sm:$0xff] }
  0x48   : > { %522 = vmatpush.bf16.msra.mxu0 %v764_v57  ;;  %769 = vmatpush.bf16.msra.mxu1 %v764_v57 }
  0x4b   : > { %411 = vrot.lane.b32.xlu0 %v408_v39, %s871_s9  ;;  %s197_s9 = sadd.s32 %s713_s8, %s1135_s7 }
  0x4c   : > { %523 = vmatpush.bf16.msra.mxu0 %v763_v61  ;;  %770 = vmatpush.bf16.msra.mxu1 %v763_v61  ;;  %s714_s10 = sshll.u32 %s197_s9, 2 }
  0x4d   : > { %s199_s20 = scalar_lea.vmem %s1116_s2, %s714_s10 }
  0x50   : > { %524 = vmatpush.bf16.msra.mxu0 %v762_v62  ;;  %771 = vmatpush.bf16.msra.mxu1 %v762_v62 }
  0x54   : > { %525 = vmatpush.bf16.msra.mxu0 %v761_v2  ;;  %772 = vmatpush.bf16.msra.mxu1 %v761_v2 }
  0x58   : > { %526 = vmatpush.bf16.msra.mxu0 %v760_v4  ;;  %773 = vmatpush.bf16.msra.mxu1 %v760_v4 }
  0x81   : > { %v378_v63 = vpop.permute.xlu2 %377 }
  0x89   : > { %v380_v7 = vpop.permute.xlu2 %379 }
  0x8e   : > { %v371_v5 = vpop.permute.xlu1 %370 }
  0x91   : > { %v392_v10 = vpop.permute.xlu2 %391 }
  0x95   : > { %v361_v6 = vpop.permute.xlu0 %360 }
  0x96   : > { %v373_v8 = vpop.permute.xlu1 %372  ;;  %v416_v14 = vsel %vm413_vm7, %v1027_v28, %v361_v6 }
  0x97   : > { %v422_v16 = vsel %vm420_vm8, %v416_v14, %v371_v5 }
  0x98   : > { %v427_v20 = vsel %vm425_vm9, %v422_v16, %v378_v63 }
  0x99   : > { %v400_v15 = vpop.permute.xlu2 %399 }
  0x9d   : > { %v363_v9 = vpop.permute.xlu0 %362 }
  0x9e   : > { %v419_v17 = vsel %vm413_vm7, %v1038_v51, %v363_v9 }
  0x9f   : > { %v387_v12 = vpop.permute.xlu1 %386  ;;  %v424_v22 = vsel %vm420_vm8, %v419_v17, %v373_v8 }
  0xa0   : > { %v429_v27 = vsel %vm425_vm9, %v424_v22, %v380_v7 }
  0xa1   : > { %v410_v29 = vpop.permute.xlu2 %409  ;;  %v434_v13 = vsel %vm430_vm10, %v429_v27, %v387_v12 }
  0xa5   : > { %v385_v11 = vpop.permute.xlu0 %384 }
  0xa6   : > { %v432_v21 = vsel %vm430_vm10, %v427_v20, %v385_v11 }
  0xa7   : > { %v398_v24 = vpop.permute.xlu1 %397  ;;  %v437_v26 = vsel %vm435_vm11, %v432_v21, %v392_v10 }
  0xa8   : > { %v442_v28 = vsel %vm440_vm12, %v437_v26, %v398_v24 }
  0xad   : > { %v394_v18 = vpop.permute.xlu0 %393 }
  0xae   : > { %v439_v3 = vsel %vm435_vm11, %v434_v13, %v394_v18 }
  0xaf   : > { %v444_v1 = vsel %vm440_vm12, %v439_v3, %v400_v15  ;;  %v406_v33 = vpop.permute.xlu1 %405 }
  0xb0   : > { %v449_v35 = vsel %vm445_vm14, %v444_v1, %v406_v33 }
  0xb5   : > { %v404_v30 = vpop.permute.xlu0 %403 }
  0xb6   : > { %v447_v31 = vsel %vm445_vm14, %v442_v28, %v404_v30 }
  0xb7   : > { %v452_v32 = vsel %vm450_vm13, %v447_v31, %v410_v29 }
  0xb8   : > { %753 = vmatmul.msk.bf16.vlgmr.msra.gmra.mxu0 %vm510_vm15, %v452_v32 }
  0xbd   : > { %v412_v36 = vpop.permute.xlu0 %411 }
  0xbe   : > { %v454_v37 = vsel %vm450_vm13, %v449_v35, %v412_v36 }
  0xbf   : > { %754 = vmatmul.msk.bf16.vlgmr.msra.gmra.mxu1 %vm510_vm15, %v454_v37 }
 0x135   : > { %v528_v38 = vpop.f32.mrf.mxu0 }
 0x136   : > { %v538_v40 = vpack.c.bf16 %v528_v38, %v528_v38 }
 0x138   : > { %543 = vst.msk [vmem:[%s199_s20] sm:$0xf] %vm542_vm0, %v538_v40 }
 0x13c   : > { %v533_v41 = vpop.f32.mrf.mxu1 }
 0x13d   : > { %v540_v42 = vpack.c.bf16 %v533_v41, %v533_v41  ;;  %v530_v45 = vpop.f32.mrf.mxu0 }
 0x13e   : > { %v539_v46 = vpack.c.bf16 %v530_v45, %v530_v45 }
 0x13f   : > { %545 = vst.msk [vmem:[%s199_s20 + $0x8] sm:$0xf] %vm542_vm0, %v540_v42 }
 0x140   : > { %544 = vst.msk [vmem:[%s199_s20 + $0x4] sm:$0xf] %vm542_vm0, %v539_v46 }
 0x143   : > { %550 = sbr.rel (%p755_p7) target bundleno = 330 (0x14a), region = 32 }
 0x144   : > { %v535_v48 = vpop.f32.mrf.mxu1 }
 0x145   : > { %v541_v49 = vpack.c.bf16 %v535_v48, %v535_v48 }
 0x147   : > { %546 = vst.msk [vmem:[%s199_s20 + $0xc] sm:$0xf] %vm542_vm0, %v541_v49 }
 0x148   : > { %vm551_vm1 = vcmask 189440   ;;  %v872_v51 = vmov 0.0  }
 0x149   : > { %552 = vst.msk [vmem:[%s933_s24] sm:$0x3] %vm551_vm1, %v872_v51 }
 0x14a PF: > { %v554_v52 = vsel %vm420_vm8, %v528_v38, 0.0  ;;  %v555_v23 = vsel %vm420_vm8, %v530_v45, 0.0  ;;  %v557_v50 = vsel %vm420_vm8, %v533_v41, 0.0  ;;  %v567_v54 = vmul.f32 %v528_v38, %v528_v38 }
 0x14b   : > { %v556_v53 = vadd.f32 %v555_v23, %v554_v52  ;;  %v568_v55 = vmul.f32 %v530_v45, %v530_v45  ;;  %v569_v34 = vmul.f32 %v533_v41, %v533_v41  ;;  %v559_v56 = vsel %vm420_vm8, %v535_v48, 0.0 }
 0x14c   : > { %v570_v58 = vmul.f32 %v535_v48, %v535_v48  ;;  %v571_v19 = vsel %vm420_vm8, %v567_v54, 0.0  ;;  %vm584_vm2 = vcmask 1040384   ;;  %vm587_vm3 = vcmask 189440  }
 0x14d   : > { %v558_v59 = vadd.f32 %v557_v50, %v556_v53  ;;  %v572_v25 = vsel %vm420_vm8, %v568_v55, 0.0  ;;  %v574_v39 = vsel %vm420_vm8, %v569_v34, 0.0 }
 0x14e   : > { %v573_v43 = vadd.f32 %v572_v25, %v571_v19  ;;  %v576_v47 = vsel %vm420_vm8, %v570_v58, 0.0 }
 0x14f   : > { %v560_v44 = vadd.f32 %v559_v56, %v558_v59 }
 0x150   : > { %v575_v0 = vadd.f32 %v574_v39, %v573_v43  ;;  %v553_v10 = vld [vmem:[%s933_s24] sm:$0x3] }
 0x151   : > { %v561_v60 = vrot.slane %v560_v44, 4 }
 0x152   : > { %v577_v57 = vadd.f32 %v576_v47, %v575_v0 }
 0x153   : > { %v562_v61 = vadd.f32 %v561_v60, %v560_v44 }
 0x154   : > { %v578_v62 = vrot.slane %v577_v57, 4 }
 0x155   : > { %v563_v63 = vrot.slane %v562_v61, 2 }
 0x156   : > { %v579_v2 = vadd.f32 %v578_v62, %v577_v57 }
 0x157   : > { %v564_v4 = vadd.f32 %v563_v63, %v562_v61 }
 0x158   : > { %v580_v5 = vrot.slane %v579_v2, 2 }
 0x159   : > { %v565_v6 = vrot.slane %v564_v4, 1 }
 0x15a   : > { %v581_v7 = vadd.f32 %v580_v5, %v579_v2 }
 0x15b   : > { %v566_v8 = vadd.f32 %v565_v6, %v564_v4 }
 0x15c   : > { %v582_v9 = vrot.slane %v581_v7, 1 }
 0x15e   : > { %v583_v11 = vadd.f32 %v582_v9, %v581_v7 }
 0x160   : > { %v585_v12 = vsel %vm584_vm2, %v566_v8, %v583_v11 }
 0x161   : > { %v586_v14 = vadd.f32 %v585_v12, %v553_v10 }
 0x163   : > { %588 = vst.msk [vmem:[%s933_s24] sm:$0x3] %vm587_vm3, %v586_v14 }
 0x164 PF: > { %s14_s16 = sadd.s32 1, %s862_s16   ;;  %s1122_s12 = smov %s854_s14 }
 0x165   : > { %p11_p8 = scmp.ge.s32.totalorder %s14_s16, 6   ;;  %s1123_s13 = smov %s858_s15 }
 0x166   : > { %s1124_s14 = smov %s1127_s17  ;;  %s1125_s15 = smov %s1131_s18 }
 0x167   :  { %13 = sbr.rel (!%p11_p8) target bundleno = 3 (0x3), region = 75 }

// kernel: dcm_next_stage_forward.15
= control target key start
LH: loop header
LB: loop body
LE: loop exit
PB: predicated region body
PF: predicated region fallthrough
CT: control target
= control target key end

     0   :  { %s2486_s24 = smov 0   ;;  %s2488_s25 = smov 0   ;;  %s3277_s0 = inlined_call_operand.vmem [shape: bf16[2,64,8], index: 0, kind: input, shape index: {}]   ;;  %s3278_s1 = inlined_call_operand.vmem [shape: f32[2,128,4], index: 1, kind: input, shape index: {}]   ;;  %s3279_s2 = inlined_call_operand.vmem [shape: f32[128,1], index: 2, kind: input, shape index: {}]   ;;  %s3280_s3 = inlined_call_operand.vmem [shape: bf16[2,8,128], index: 3, kind: input, shape index: {}]   ;;  %s3281_s4 = inlined_call_operand.vmem [shape: bf16[64,8], index: 4, kind: input, shape index: {}]   ;;  %s3282_s5 = inlined_call_operand.vmem [shape: bf16[2,10,10,128], index: 5, kind: input, shape index: {}]   ;;  %s3283_s6 = inlined_call_operand.vmem [shape: bf16[1152,24], index: 6, kind: input, shape index: {}]   ;;  %s3284_s7 = inlined_call_operand.vmem [shape: bf16[2,64,12], index: 7, kind: output, shape index: {}]  }
   0x1   :  { %s2490_s26 = smov 0   ;;  %s2492_s27 = smov 0  }
   0x2   :  { %s2494_s28 = smov 0  }
   0x3 LB: > { %s26_s29 = sadd.s32 1, %s2433_s26  ;;  %s29_s30 = sadd.s32 1, %s2437_s27  ;;  %s2441_s28 = sphi %s2494_s28, %s17_s28   ;;  %s2437_s27 = sphi %s2492_s27, %s3292_s27   ;;  %s2433_s26 = sphi %s2490_s26, %s3291_s26   ;;  %s2429_s25 = sphi %s2488_s25, %s3290_s25   ;;  %s2425_s24 = sphi %s2486_s24, %s3289_s24  }
   0x4   : > { %p27_p0 = scmp.ge.s32.totalorder %s26_s29, 2  ;;  %p1898_p1 = scmp.ge.s32.totalorder %s2441_s28, 1 }
   0x5   : > { %p298_p2 = scmp.lt.s32.totalorder %s2441_s28, 5 }
   0x6   : > { %s3294_s29 = smov (%p27_p0, %s26_s29), 0  ;;  %s3296_s30 = smov (!%p27_p0, %s29_s30), %s2437_s27 }
   0x7   : > { %p299_p3 = pnand %p1898_p1, %p298_p2  ;;  %p31_p4 = scmp.ge.s32.totalorder %s3296_s30, 2 }
   0x8   : > { %s1899_s8 = sshll.u32 (!%p299_p3), %s2425_s24, 2  ;;  %p358_p5 = scmp.lt.s32.totalorder (!%p299_p3), %s2429_s25, 1 }
   0x9   : > { %s3298_s30 = smov (%p31_p4, %s3296_s30), 0  ;;  %302 = sbr.rel (%p299_p3) target bundleno = 613 (0x265), region = 48 }
   0xa   : > { %p360_p6 = scmp.lt.s32.totalorder (!%p299_p3), %s1899_s8, 7  ;;  %s2224_s18 = sshll.u32 (!%p299_p3), %s2425_s24, 5 }
   0xb   : > { %s2445_s19 = smov (!%p299_p3), 116  }
   0xe   : > { %v402_v0 = vld [vmem:[%s3279_s2 + $0x20] sm:$0xff]  ;;  %v400_v1 = vld [vmem:[%s3279_s2 + $0x10] sm:$0xff]  ;;  %v2443_v3 = vmov 0   ;;  %v403_v7 = vld [vmem:[%s3279_s2 + $0x28] sm:$0xff]  ;;  %s3300_s25 = smov (!%p358_p5, %s2429_s25), 1  ;;  %s3302_s8 = smov (!%p360_p6, %s1899_s8), 7 }
   0xf   : > { %v398_v2 = vld [vmem:[%s3279_s2] sm:$0xff]  ;;  %2368 = vset.pattern.permute.xlu2 %v2443_v3  ;;  %2367 = vset.pattern.permute.xlu1 %v2443_v3  ;;  %vm418_vm0 = vcmp.gt.f32.partialorder %v402_v0, 0.0  ;;  %vm416_vm1 = vcmp.gt.f32.partialorder %v400_v1, 0.0  ;;  %v401_v8 = vld [vmem:[%s3279_s2 + $0x18] sm:$0xff]  ;;  %v399_v9 = vld [vmem:[%s3279_s2 + $0x8] sm:$0xff]  ;;  %vm419_vm3 = vcmp.gt.f32.partialorder %v403_v7, 0.0 }
  0x10   : > { %vm414_vm2 = vcmp.gt.f32.partialorder %v398_v2, 0.0  ;;  %2366 = vset.pattern.permute.xlu0 %v2443_v3  ;;  %v450_v4 = vsel %vm418_vm0, 1, %v2443_v3  ;;  %v448_v5 = vsel %vm416_vm1, 1, %v2443_v3  ;;  %vm417_vm4 = vcmp.gt.f32.partialorder %v401_v8, 0.0  ;;  %v406_v13 = vld [vmem:[%s3279_s2 + $0x40] sm:$0xff]  ;;  %v405_v14 = vld [vmem:[%s3279_s2 + $0x38] sm:$0xff] }
  0x11   : > { %v446_v6 = vsel %vm414_vm2, 1, %v2443_v3  ;;  %475 = vperm.xlu2 %2368, %v450_v4   ;;  %469 = vperm.xlu1 %2367, %v448_v5   ;;  %vm415_vm5 = vcmp.gt.f32.partialorder %v399_v9, 0.0  ;;  %v451_v10 = vsel %vm419_vm3, 1, %v2443_v3  ;;  %v449_v11 = vsel %vm417_vm4, 1, %v2443_v3  ;;  %v404_v15 = vld [vmem:[%s3279_s2 + $0x30] sm:$0xff]  ;;  %v409_v19 = vld [vmem:[%s3279_s2 + $0x58] sm:$0xff] }
  0x12   : > { %463 = vperm.xlu0 %2366, %v446_v6   ;;  %v447_v12 = vsel %vm415_vm5, 1, %v2443_v3  ;;  %vm422_vm6 = vcmp.gt.f32.partialorder %v406_v13, 0.0  ;;  %vm421_vm7 = vcmp.gt.f32.partialorder %v405_v14, 0.0  ;;  %vm420_vm8 = vcmp.gt.f32.partialorder %v404_v15, 0.0  ;;  %v408_v20 = vld [vmem:[%s3279_s2 + $0x50] sm:$0xff]  ;;  %v407_v21 = vld [vmem:[%s3279_s2 + $0x48] sm:$0xff] }
  0x13   : > { %v454_v16 = vsel %vm422_vm6, 1, %v2443_v3  ;;  %v453_v17 = vsel %vm421_vm7, 1, %v2443_v3  ;;  %v452_v18 = vsel %vm420_vm8, 1, %v2443_v3  ;;  %vm425_vm9 = vcmp.gt.f32.partialorder %v409_v19, 0.0  ;;  %v412_v25 = vld [vmem:[%s3279_s2 + $0x70] sm:$0xff]  ;;  %v411_v26 = vld [vmem:[%s3279_s2 + $0x68] sm:$0xff] }
  0x14   : > { %vm424_vm10 = vcmp.gt.f32.partialorder %v408_v20, 0.0  ;;  %vm423_vm11 = vcmp.gt.f32.partialorder %v407_v21, 0.0  ;;  %v457_v22 = vsel %vm425_vm9, 1, %v2443_v3  ;;  %v410_v27 = vld [vmem:[%s3279_s2 + $0x60] sm:$0xff]  ;;  %vm428_vm12 = vcmp.gt.f32.partialorder %v412_v25, 0.0  ;;  %v413_v31 = vld [vmem:[%s3279_s2 + $0x78] sm:$0xff] }
  0x15   : > { %v456_v23 = vsel %vm424_vm10, 1, %v2443_v3  ;;  %v455_v24 = vsel %vm423_vm11, 1, %v2443_v3  ;;  %vm427_vm13 = vcmp.gt.f32.partialorder %v411_v26, 0.0  ;;  %vm426_vm14 = vcmp.gt.f32.partialorder %v410_v27, 0.0  ;;  %s1904_s9 = sshll.u32 %s3300_s25, 2  ;;  %s1906_s13 = sshll.u32 %s3302_s8, 2 }
  0x16   : > { %v460_v28 = vsel %vm428_vm12, 1, %v2443_v3  ;;  %v459_v29 = vsel %vm427_vm13, 1, %v2443_v3  ;;  %v458_v30 = vsel %vm426_vm14, 1, %v2443_v3  ;;  %vm429_vm15 = vcmp.gt.f32.partialorder %v413_v31, 0.0  ;;  %s375_s12 = scalar_lea.vmem %s3280_s3, %s1904_s9  ;;  %s380_s16 = scalar_lea.vmem %s3281_s4, %s1906_s13 }
  0x17   : > { %v461_v32 = vsel %vm429_vm15, 1, %v2443_v3  ;;  %v686_v33 = vld [vmem:[%s375_s12] sm:$0xf]  ;;  %vm704_vm0 = vcmask 1043456   ;;  %vm697_vm1 = vcmask 64512   ;;  %v2222_v37 = vld [vmem:[%s380_s16 + $0x8] sm:$0xff] }
  0x18   : > { %v706_v34 = vsel %vm704_vm0, %v686_v33, 0  ;;  %v2221_v35 = vld [vmem:[%s380_s16] sm:$0xff]  ;;  %s2220_s17 = sshll.u32 %s3300_s25, 7  ;;  %vm542_vm5 = vcmask 31744   ;;  %s2322_s23 = smul.u32 80, %s3300_s25 }
  0x19   : > { %478 = vperm.xlu2 %2368, %v451_v10   ;;  %472 = vperm.xlu1 %2367, %v449_v11   ;;  %s2608_s20 = scalar_lea.vmem %s3278_s1, %s2220_s17 }
  0x1a   : > { %466 = vperm.xlu0 %2366, %v447_v12   ;;  %715 = vmatpush.bf16.msra.mxu0 %v706_v34  ;;  %v434_v47 = vld [vmem:[%s2608_s20 + $0x20] sm:$0xff]  ;;  %v435_v48 = vld [vmem:[%s2608_s20 + $0x28] sm:$0xff]  ;;  %v432_v56 = vld [vmem:[%s2608_s20 + $0x10] sm:$0xff]  ;;  %s386_s17 = scalar_lea.vmem %s3282_s5, %s2322_s23 }
  0x1b   : > { %v438_v51 = vld [vmem:[%s2608_s20 + $0x40] sm:$0xff]  ;;  %v433_v57 = vld [vmem:[%s2608_s20 + $0x18] sm:$0xff]  ;;  %v431_v58 = vld [vmem:[%s2608_s20 + $0x8] sm:$0xff]  ;;  %s2863_s11 = scalar_lea.vmem %s386_s17, %s2224_s18  ;;  %s2444_s18 = smov 8  }
  0x1c   : > { %v430_v54 = vld [vmem:[%s2608_s20] sm:$0xff]  ;;  %v437_v59 = vld [vmem:[%s2608_s20 + $0x38] sm:$0xff]  ;;  %v436_v60 = vld [vmem:[%s2608_s20 + $0x30] sm:$0xff] }
  0x1d   : > { %1919 = vmatmul.msk.bf16.vlgmr.msra.gmra.mxu0 %vm697_vm1, %v2221_v35  ;;  %v440_v0 = vld [vmem:[%s2608_s20 + $0x50] sm:$0xff]  ;;  %v439_v2 = vld [vmem:[%s2608_s20 + $0x48] sm:$0xff]  ;;  %v442_v11 = vld [vmem:[%s2608_s20 + $0x60] sm:$0xff] }
  0x1e   : > { %v443_v4 = vld [vmem:[%s2608_s20 + $0x68] sm:$0xff]  ;;  %v445_v34 = vld [vmem:[%s2608_s20 + $0x78] sm:$0xff] }
  0x21   : > { %487 = vperm.xlu2 %2368, %v454_v16   ;;  %484 = vperm.xlu1 %2367, %v453_v17   ;;  %v441_v16 = vld [vmem:[%s2608_s20 + $0x58] sm:$0xff] }
  0x22   : > { %481 = vperm.xlu0 %2366, %v452_v18  }
  0x29   : > { %496 = vperm.xlu2 %2368, %v457_v22   ;;  %493 = vperm.xlu1 %2367, %v456_v23  }
  0x2a   : > { %490 = vperm.xlu0 %2366, %v455_v24   ;;  %v444_v24 = vld [vmem:[%s2608_s20 + $0x70] sm:$0xff]  ;;  %s1900_s20 = sshll.u32 %s3300_s25, 3 }
  0x2b   : > { %s363_s21 = sadd.s32 %s1900_s20, %s3302_s8 }
  0x2c   : > { %s1901_s22 = sshll.u32 %s363_s21, 2 }
  0x2d   : > { %1920 = vmatmul.msk.bf16.gmra.mxu0 %vm697_vm1, %v2222_v37  ;;  %s365_s24 = scalar_lea.vmem %s3277_s0, %s1901_s22  ;;  %s395_s23 = scalar_lea.vmem %s3284_s7, %s1901_s22 }
  0x31   : > { %505 = vperm.xlu2 %2368, %v460_v28   ;;  %502 = vperm.xlu1 %2367, %v459_v29  }
  0x32   : > { %499 = vperm.xlu0 %2366, %v458_v30  }
  0x3a   : > { %508 = vperm.xlu0 %2366, %v461_v32  }
  0x6b   : > { %v476_v36 = vpop.permute.xlu2 %475 }
  0x6c   : > { %vm514_vm2 = vcmp.eq.s32.totalorder %v476_v36, 1 }
  0x6d   : > { %v2613_v52 = vsel %vm514_vm2, -1e+30, %v434_v47 }
  0x6e   : > { %v547_v61 = vsel %vm542_vm5, %v2613_v52, -inf }
  0x73   : > { %v479_v40 = vpop.permute.xlu2 %478 }
  0x74   : > { %vm515_vm3 = vcmp.eq.s32.totalorder %v479_v40, 1 }
  0x75   : > { %v2615_v53 = vsel %vm515_vm3, -1e+30, %v435_v48 }
  0x76   : > { %v549_v62 = vsel %vm542_vm5, %v2615_v53, -inf }
  0x7b   : > { %v488_v43 = vpop.permute.xlu2 %487 }
  0x7c   : > { %vm518_vm4 = vcmp.eq.s32.totalorder %v488_v43, 1 }
  0x7d   : > { %v2618_v55 = vsel %vm518_vm4, -1e+30, %v438_v51  ;;  %v2248_v51 = vld [vmem:[%s3283_s6 + $0xb8] sm:$0xff]  ;;  %vm772_vm4 = vsmask.f32 3328 }
  0x7e   : > { %v555_v1 = vsel %vm542_vm5, %v2618_v55, -inf  ;;  %1560 = vmatpush.bf16.msrb.mxu0 %v2248_v51 }
  0x83   : > { %v470_v38 = vpop.permute.xlu1 %469  ;;  %v497_v49 = vpop.permute.xlu2 %496 }
  0x84   : > { %v464_v39 = vpop.permute.xlu0 %463  ;;  %vm512_vm10 = vcmp.eq.s32.totalorder %v470_v38, 1  ;;  %vm521_vm0 = vcmp.eq.s32.totalorder %v497_v49, 1  ;;  %v2231_v49 = vld [vmem:[%s3283_s6 + $0x30] sm:$0xff] }
  0x85   : > { %vm510_vm6 = vcmp.eq.s32.totalorder %v464_v39, 1  ;;  %v2644_v9 = vsel %vm512_vm10, -1e+30, %v432_v56  ;;  %v2677_v28 = vsel %vm521_vm0, -1e+30, %v441_v16  ;;  %vm1749_vm10 = vcmask 93184  }
  0x86   : > { %v2629_v63 = vsel %vm510_vm6, -1e+30, %v430_v54  ;;  %v545_v20 = vsel %vm542_vm5, %v2644_v9, -inf  ;;  %v561_v40 = vsel %vm542_vm5, %v2677_v28, -inf }
  0x87   : > { %v543_v10 = vsel %vm542_vm5, %v2629_v63, -inf }
  0x88   : > { %v548_v21 = vmax.f32 %v543_v10, %v547_v61  ;;  %v2238_v61 = vld [vmem:[%s3283_s6 + $0x68] sm:$0xff] }
  0x8a   : > { %v556_v38 = vmax.f32 %v548_v21, %v555_v1  ;;  %v2229_v1 = vld [vmem:[%s3283_s6 + $0x20] sm:$0xff] }
  0x8b   : > { %v473_v41 = vpop.permute.xlu1 %472  ;;  %v506_v12 = vpop.permute.xlu2 %505 }
  0x8c   : > { %v467_v42 = vpop.permute.xlu0 %466  ;;  %vm513_vm11 = vcmp.eq.s32.totalorder %v473_v41, 1  ;;  %vm524_vm2 = vcmp.eq.s32.totalorder %v506_v12, 1  ;;  %v2232_v41 = vld [vmem:[%s3283_s6 + $0x38] sm:$0xff] }
  0x8d   : > { %vm511_vm7 = vcmp.eq.s32.totalorder %v467_v42, 1  ;;  %v2650_v13 = vsel %vm513_vm11, -1e+30, %v433_v57  ;;  %v2684_v35 = vsel %vm524_vm2, -1e+30, %v444_v24  ;;  %v2240_v42 = vld [vmem:[%s3283_s6 + $0x78] sm:$0xff]  ;;  %1522 = vmatpush.bf16.msra.mxu2 %v2232_v41 }
  0x8e   : > { %v2637_v5 = vsel %vm511_vm7, -1e+30, %v431_v58  ;;  %v546_v25 = vsel %vm542_vm5, %v2650_v13, -inf  ;;  %v567_v47 = vsel %vm542_vm5, %v2684_v35, -inf  ;;  %1541 = vmatpush.bf16.msra.mxu3 %v2240_v42  ;;  %v2247_v57 = vld [vmem:[%s3283_s6 + $0xb0] sm:$0xff]  ;;  %vm839_vm7 = vcmask 1042432  }
  0x8f   : > { %v544_v17 = vsel %vm542_vm5, %v2637_v5, -inf  ;;  %1561 = vmatpush.bf16.msrb.mxu0 %v2247_v57 }
  0x90   : > { %v550_v29 = vmax.f32 %v544_v17, %v549_v62 }
  0x91   : > { %1523 = vmatpush.bf16.msra.mxu2 %v2231_v49 }
  0x93   : > { %v485_v44 = vpop.permute.xlu1 %484 }
  0x94   : > { %v482_v45 = vpop.permute.xlu0 %481  ;;  %vm517_vm8 = vcmp.eq.s32.totalorder %v485_v44, 1 }
  0x95   : > { %vm516_vm9 = vcmp.eq.s32.totalorder %v482_v45, 1  ;;  %v2640_v6 = vsel %vm517_vm8, -1e+30, %v437_v59  ;;  %vm840_vm8 = vcmask 1046532  }
  0x96   : > { %v2642_v7 = vsel %vm516_vm9, -1e+30, %v436_v60  ;;  %v553_v18 = vsel %vm542_vm5, %v2640_v6, -inf  ;;  %v2230_v60 = vld [vmem:[%s3283_s6 + $0x28] sm:$0xff]  ;;  %vm2927_vm9 = vmor %vm839_vm7, %vm840_vm8 }
  0x97   : > { %v551_v19 = vsel %vm542_vm5, %v2642_v7, -inf  ;;  %v554_v30 = vmax.f32 %v546_v25, %v553_v18  ;;  %1524 = vmatpush.bf16.msra.mxu2 %v2230_v60 }
  0x98   : > { %v552_v31 = vmax.f32 %v545_v20, %v551_v19 }
  0x9b   : > { %v494_v46 = vpop.permute.xlu1 %493  ;;  %1525 = vmatpush.bf16.msra.mxu2 %v2229_v1 }
  0x9c   : > { %v491_v50 = vpop.permute.xlu0 %490  ;;  %vm520_vm12 = vcmp.eq.s32.totalorder %v494_v46, 1  ;;  %v562_v46 = vmax.f32 %v554_v30, %v561_v40 }
  0x9d   : > { %vm519_vm13 = vcmp.eq.s32.totalorder %v491_v50, 1  ;;  %v2653_v14 = vsel %vm520_vm12, -1e+30, %v440_v0  ;;  %v2239_v50 = vld [vmem:[%s3283_s6 + $0x70] sm:$0xff] }
  0x9e   : > { %v2655_v15 = vsel %vm519_vm13, -1e+30, %v439_v2  ;;  %v559_v26 = vsel %vm542_vm5, %v2653_v14, -inf  ;;  %1542 = vmatpush.bf16.msra.mxu3 %v2239_v50  ;;  %v2237_v2 = vld [vmem:[%s3283_s6 + $0x60] sm:$0xff] }
  0x9f   : > { %v557_v27 = vsel %vm542_vm5, %v2655_v15, -inf  ;;  %v560_v36 = vmax.f32 %v552_v31, %v559_v26 }
  0xa0   : > { %v558_v37 = vmax.f32 %v550_v29, %v557_v27 }
  0xa1   : > { %v568_v54 = vmax.f32 %v560_v36, %v567_v47 }
  0xa2   : > { %1543 = vmatpush.bf16.msra.mxu3 %v2238_v61 }
  0xa3   : > { %v503_v3 = vpop.permute.xlu1 %502 }
  0xa4   : > { %v500_v8 = vpop.permute.xlu0 %499  ;;  %vm523_vm14 = vcmp.eq.s32.totalorder %v503_v3, 1 }
  0xa5   : > { %vm522_vm15 = vcmp.eq.s32.totalorder %v500_v8, 1  ;;  %v2666_v22 = vsel %vm523_vm14, -1e+30, %v443_v4 }
  0xa6   : > { %v2668_v23 = vsel %vm522_vm15, -1e+30, %v442_v11  ;;  %v565_v32 = vsel %vm542_vm5, %v2666_v22, -inf  ;;  %1544 = vmatpush.bf16.msra.mxu3 %v2237_v2 }
  0xa7   : > { %v563_v33 = vsel %vm542_vm5, %v2668_v23, -inf  ;;  %v566_v43 = vmax.f32 %v558_v37, %v565_v32 }
  0xa8   : > { %v564_v44 = vmax.f32 %v556_v38, %v563_v33 }
  0xaa   : > { %v571_v58 = vmax.f32 %v564_v44, %v566_v43 }
  0xac   : > { %v509_v39 = vpop.permute.xlu0 %508 }
  0xad   : > { %vm525_vm3 = vcmp.eq.s32.totalorder %v509_v39, 1 }
  0xae   : > { %v2694_v45 = vsel %vm525_vm3, -1e+30, %v445_v34 }
  0xaf   : > { %v569_v48 = vsel %vm542_vm5, %v2694_v45, -inf }
  0xb0   : > { %v570_v56 = vmax.f32 %v562_v46, %v569_v48 }
  0xb2   : > { %v572_v59 = vmax.f32 %v568_v54, %v570_v56 }
  0xb4   : > { %v573_v62 = vmax.f32 %v571_v58, %v572_v59 }
  0xb6   : > { %v574_v0 = vrot.slane %v573_v62, 4 }
  0xb8   : > { %v575_v3 = vmax.f32 %v573_v62, %v574_v0 }
  0xba   : > { %v576_v4 = vrot.slane %v575_v3, 2 }
  0xbc   : > { %v577_v8 = vmax.f32 %v575_v3, %v576_v4 }
  0xbe   : > { %v578_v10 = vrot.slane %v577_v8, 1 }
  0xc0   : > { %v2724_v11 = vmax.f32 %v577_v8, %v578_v10 }
  0xc2   : > { %v580_v12 = vsub.f32 %v2629_v63, %v2724_v11  ;;  %v581_v16 = vsub.f32 %v2637_v5, %v2724_v11  ;;  %v582_v17 = vsub.f32 %v2644_v9, %v2724_v11  ;;  %v583_v18 = vsub.f32 %v2650_v13, %v2724_v11 }
  0xc3   : > { %v584_v19 = vsub.f32 %v2613_v52, %v2724_v11  ;;  %v585_v24 = vsub.f32 %v2615_v53, %v2724_v11  ;;  %v586_v63 = vsub.f32 %v2642_v7, %v2724_v11  ;;  %v587_v9 = vsub.f32 %v2640_v6, %v2724_v11 }
  0xc4   : > { %v596_v20 = vmul.f32 1.442695, %v580_v12  ;;  %v598_v21 = vmul.f32 1.442695, %v581_v16  ;;  %v600_v25 = vmul.f32 1.442695, %v582_v17  ;;  %v588_v52 = vsub.f32 %v2618_v55, %v2724_v11 }
  0xc5   : > { %v602_v26 = vmul.f32 1.442695, %v583_v18  ;;  %v604_v5 = vmul.f32 1.442695, %v584_v19  ;;  %v606_v13 = vmul.f32 1.442695, %v585_v24  ;;  %v589_v7 = vsub.f32 %v2655_v15, %v2724_v11 }
  0xc6   : > { %2369 = vpow2.f32 %v596_v20  ;;  %v608_v27 = vmul.f32 1.442695, %v586_v63  ;;  %v610_v30 = vmul.f32 1.442695, %v587_v9  ;;  %v590_v33 = vsub.f32 %v2653_v14, %v2724_v11  ;;  %v2236_v24 = vld [vmem:[%s3283_s6 + $0x58] sm:$0xff] }
  0xc7   : > { %2371 = vpow2.f32 %v598_v21  ;;  %v612_v34 = vmul.f32 1.442695, %v588_v52  ;;  %v591_v38 = vsub.f32 %v2677_v28, %v2724_v11  ;;  %v614_v39 = vmul.f32 1.442695, %v589_v7  ;;  %v2228_v21 = vld [vmem:[%s3283_s6 + $0x18] sm:$0xff]  ;;  %1545 = vmatpush.bf16.msra.mxu3 %v2236_v24  ;;  %v2235_v7 = vld [vmem:[%s3283_s6 + $0x50] sm:$0xff] }
  0xc8   : > { %2373 = vpow2.f32 %v600_v25  ;;  %v592_v14 = vsub.f32 %v2668_v23, %v2724_v11  ;;  %v616_v43 = vmul.f32 1.442695, %v590_v33  ;;  %v593_v28 = vsub.f32 %v2666_v22, %v2724_v11  ;;  %v2246_v25 = vld [vmem:[%s3283_s6 + $0xa8] sm:$0xff]  ;;  %1526 = vmatpush.bf16.msra.mxu2 %v2228_v21  ;;  %v2251_v24 = vld [vmem:[%s3283_s6 + $0xd0] sm:$0xff] }
  0xc9   : > { %2375 = vpow2.f32 %v602_v26  ;;  %v618_v48 = vmul.f32 1.442695, %v591_v38  ;;  %v594_v23 = vsub.f32 %v2684_v35, %v2724_v11  ;;  %v595_v22 = vsub.f32 %v2694_v45, %v2724_v11  ;;  %1562 = vmatpush.bf16.msrb.mxu0 %v2246_v25 }
  0xca   : > { %2377 = vpow2.f32 %v604_v5  ;;  %v620_v54 = vmul.f32 1.442695, %v592_v14  ;;  %v622_v59 = vmul.f32 1.442695, %v593_v28  ;;  %v2243_v14 = vld [vmem:[%s3283_s6 + $0x90] sm:$0xff] }
  0xcb   : > { %2379 = vpow2.f32 %v606_v13  ;;  %v624_v35 = vmul.f32 1.442695, %v594_v23  ;;  %v626_v3 = vmul.f32 1.442695, %v595_v22  ;;  %1546 = vmatpush.bf16.msra.mxu3 %v2235_v7  ;;  %v2869_v28 = vld [vmem:[%s2863_s11 + $0x8] sm:$0xf] }
  0xcc   : > { %v2744_v53 = vpop.eup %2369  ;;  %2381 = vpow2.f32 %v608_v27  ;;  %v2227_v27 = vld [vmem:[%s3283_s6 + $0x10] sm:$0xff]  ;;  %v899_v23 = vunpack.c.l.b16 %v2869_v28 }
  0xcd   : > { %v2746_v29 = vpop.eup %2371  ;;  %v628_v31 = vsel %vm542_vm5, %v2744_v53, 0.0  ;;  %2383 = vpow2.f32 %v610_v30  ;;  %v2245_v30 = vld [vmem:[%s3283_s6 + $0xa0] sm:$0xff]  ;;  %1527 = vmatpush.bf16.msra.mxu2 %v2227_v27 }
  0xce   : > { %v2752_v6 = vpop.eup %2373  ;;  %v629_v32 = vsel %vm542_vm5, %v2746_v29, 0.0  ;;  %2385 = vpow2.f32 %v612_v34  ;;  %1563 = vmatpush.bf16.msrb.mxu0 %v2245_v30  ;;  %v2226_v34 = vld [vmem:[%s3283_s6 + $0x8] sm:$0xff]  ;;  %v2280_v30 = vld [vmem:[%s3283_s6 + $0x1b8] sm:$0xff] }
  0xcf   : > { %v2756_v55 = vpop.eup %2375  ;;  %v630_v36 = vadd.f32 %v629_v32, %v628_v31  ;;  %v631_v15 = vsel %vm542_vm5, %v2752_v6, 0.0  ;;  %2387 = vpow2.f32 %v614_v39 }
  0xd0   : > { %v2762_v37 = vpop.eup %2377  ;;  %v633_v41 = vsel %vm542_vm5, %v2756_v55, 0.0  ;;  %2389 = vpow2.f32 %v616_v43 }
  0xd1   : > { %v632_v40 = vadd.f32 %v631_v15, %v630_v36  ;;  %v2768_v42 = vpop.eup %2379  ;;  %v635_v46 = vsel %vm542_vm5, %v2762_v37, 0.0  ;;  %2391 = vpow2.f32 %v618_v48  ;;  %v2234_v36 = vld [vmem:[%s3283_s6 + $0x48] sm:$0xff]  ;;  %v2244_v15 = vld [vmem:[%s3283_s6 + $0x98] sm:$0xff]  ;;  %1528 = vmatpush.bf16.msra.mxu2 %v2226_v34  ;;  %v2872_v48 = vld [vmem:[%s2863_s11 + $0x4] sm:$0x1] }
  0xd2   : > { %v2774_v47 = vpop.eup %2381  ;;  %v637_v50 = vsel %vm542_vm5, %v2768_v42, 0.0  ;;  %2393 = vpow2.f32 %v620_v54  ;;  %1547 = vmatpush.bf16.msra.mxu3 %v2234_v36  ;;  %1564 = vmatpush.bf16.msrb.mxu0 %v2244_v15  ;;  %v2877_v54 = vld [vmem:[%s2863_s11 + $0xc] sm:$0x1] }
  0xd3   : > { %v634_v44 = vadd.f32 %v633_v41, %v632_v40  ;;  %v2780_v51 = vpop.eup %2383  ;;  %v639_v57 = vsel %vm542_vm5, %v2774_v47, 0.0  ;;  %2395 = vpow2.f32 %v622_v59  ;;  %v2225_v40 = vld [vmem:[%s3283_s6] sm:$0xff]  ;;  %v785_v59 = vshll.u32 %v2872_v48, 16 }
  0xd4   : > { %v2786_v58 = vpop.eup %2385  ;;  %v641_v61 = vsel %vm542_vm5, %v2780_v51, 0.0  ;;  %2397 = vpow2.f32 %v624_v35  ;;  %v2233_v41 = vld [vmem:[%s3283_s6 + $0x40] sm:$0xff]  ;;  %v848_v34 = vrot.slane %v2877_v54, 5 }
  0xd5   : > { %v636_v49 = vadd.f32 %v635_v46, %v634_v44  ;;  %v2792_v62 = vpop.eup %2387  ;;  %v643_v1 = vsel %vm542_vm5, %v2786_v58, 0.0  ;;  %2399 = vpow2.f32 %v626_v3  ;;  %1529 = vmatpush.bf16.msra.mxu2 %v2225_v40  ;;  %v2866_v46 = vld [vmem:[%s2863_s11] sm:$0xf]  ;;  %v787_v21 = vrot.slane %v785_v59, 5  ;;  %v2989_v59 = vld [vmem:[%s2863_s11 + $0x18] sm:$0xf] }
  0xd6   : > { %v2796_v2 = vpop.eup %2389  ;;  %v645_v45 = vsel %vm542_vm5, %v2792_v62, 0.0  ;;  %1548 = vmatpush.bf16.msra.mxu3 %v2233_v41  ;;  %1565 = vmatpush.bf16.msrb.mxu0 %v2243_v14  ;;  %v779_v22 = vshll.u32 %v2866_v46, 16  ;;  %v1924_v7 = vrot.slane %v2866_v46, 9 }
  0xd7   : > { %v638_v56 = vadd.f32 %v637_v50, %v636_v49  ;;  %v2800_v8 = vpop.eup %2391  ;;  %v647_v11 = vsel %vm542_vm5, %v2796_v2, 0.0  ;;  %v898_v50 = vunpack.c.l.b16 %v2866_v46 }
  0xd8   : > { %v2804_v12 = vpop.eup %2393  ;;  %v649_v17 = vsel %vm542_vm5, %v2800_v8, 0.0 }
  0xd9   : > { %v640_v60 = vadd.f32 %v639_v57, %v638_v56  ;;  %v2808_v18 = vpop.eup %2395  ;;  %v651_v20 = vsel %vm542_vm5, %v2804_v12, 0.0  ;;  %v2242_v56 = vld [vmem:[%s3283_s6 + $0x88] sm:$0xff]  ;;  %v776_v57 = vshrl.u32 %v2866_v46, 16  ;;  %v902_v35 = vpack.c.b16 %v899_v23, %v898_v50 }
  0xda   : > { %v2821_v26 = vpop.eup %2397  ;;  %v653_v5 = vsel %vm542_vm5, %v2808_v18, 0.0  ;;  %1566 = vmatpush.bf16.msrb.mxu0 %v2242_v56  ;;  %v2261_v56 = vld [vmem:[%s3283_s6 + $0x120] sm:$0xff] }
  0xdb   : > { %v642_v0 = vadd.f32 %v641_v61, %v640_v60  ;;  %v2825_v9 = vpop.eup %2399  ;;  %v655_v52 = vsel %vm542_vm5, %v2821_v26, 0.0  ;;  %v2272_v60 = vld [vmem:[%s3283_s6 + $0x178] sm:$0xff]  ;;  %v778_v3 = vrot.slane %v776_v57, 4  ;;  %1530 = vmatmul.bf16.vlgmr.msra.gmra.mxu2 %v902_v35 }
  0xdc   : > { %v657_v32 = vsel %vm542_vm5, %v2825_v9, 0.0  ;;  %vm773_vm5 = vsmask.f32 7440  ;;  %1617 = vmatpush.bf16.msrb.mxu3 %v2272_v60 }
  0xdd   : > { %v644_v4 = vadd.f32 %v643_v1, %v642_v0  ;;  %v790_v0 = vshrl.u32 %v2869_v28, 16  ;;  %v793_v1 = vshll.u32 %v2869_v28, 16  ;;  %vm2904_vm6 = vmor %vm772_vm4, %vm773_vm5 }
  0xdf   : > { %v646_v10 = vadd.f32 %v645_v45, %v644_v4  ;;  %v781_v4 = vrot.slane %v779_v22, 5  ;;  %v799_v45 = vshll.u32 %v2877_v54, 16 }
  0xe1   : > { %v648_v16 = vadd.f32 %v647_v11, %v646_v10  ;;  %v2264_v10 = vld [vmem:[%s3283_s6 + $0x138] sm:$0xff]  ;;  %v2241_v11 = vld [vmem:[%s3283_s6 + $0x80] sm:$0xff] }
  0xe2   : > { %1598 = vmatpush.bf16.msrb.mxu2 %v2264_v10  ;;  %1567 = vmatpush.bf16.msrb.mxu0 %v2241_v11  ;;  %v2260_v10 = vld [vmem:[%s3283_s6 + $0x118] sm:$0xff] }
  0xe3   : > { %v650_v19 = vadd.f32 %v649_v17, %v648_v16  ;;  %v792_v16 = vrot.slane %v790_v0, 4  ;;  %v795_v17 = vrot.slane %v793_v1, 5  ;;  %v2278_v0 = vld [vmem:[%s3283_s6 + $0x1a8] sm:$0xff] }
  0xe5   : > { %v652_v63 = vadd.f32 %v651_v20, %v650_v19  ;;  %v2271_v19 = vld [vmem:[%s3283_s6 + $0x170] sm:$0xff]  ;;  %v782_v20 = vor.u32 %v781_v4, %v778_v3  ;;  %v796_v25 = vor.u32 %v795_v17, %v792_v16  ;;  %v901_v16 = vunpack.c.l.b16 %v2989_v59 }
  0xe6   : > { %1618 = vmatpush.bf16.msrb.mxu3 %v2271_v19  ;;  %1636 = vmatpush.bf16.msra.mxu0 %v2280_v30 }
  0xe7   : > { %v654_v13 = vadd.f32 %v653_v5, %v652_v63  ;;  %v801_v63 = vrot.slane %v799_v45, 5  ;;  %v783_v5 = vrot.slane %v782_v20, 4  ;;  %v797_v27 = vrot.slane %v796_v25, 4  ;;  %v767_v45 = vld [vmem:[%s2863_s11 + $0x1c] sm:$0x1] }
  0xe8   : > { %v818_v25 = vshrl.u32 %v2989_v59, 16 }
  0xe9   : > { %v656_v31 = vadd.f32 %v655_v52, %v654_v13  ;;  %v2263_v13 = vld [vmem:[%s3283_s6 + $0x130] sm:$0xff]  ;;  %v2270_v52 = vld [vmem:[%s3283_s6 + $0x168] sm:$0xff]  ;;  %v802_v15 = vsel %vm2904_vm6, %v797_v27, %v801_v63  ;;  %v821_v63 = vshll.u32 %v2989_v59, 16  ;;  %v827_v27 = vshll.u32 %v767_v45, 16 }
  0xea   : > { %1599 = vmatpush.bf16.msrb.mxu2 %v2263_v13  ;;  %1619 = vmatpush.bf16.msrb.mxu3 %v2270_v52  ;;  %v2964_v54 = vunpack.c.l.b16 %v802_v15 }
  0xeb   : > { %v658_v33 = vadd.f32 %v657_v32, %v656_v31  ;;  %v788_v31 = vsel %vm2904_vm6, %v783_v5, %v787_v21  ;;  %v844_v32 = vrot.slane %v2872_v48, 5 }
  0xec   : > { %v906_v46 = vunpack.c.l.b16 %v788_v31 }
  0xed   : > { %v659_v38 = vrot.slane %v658_v33, 4 }
  0xee   : > { %v910_v60 = vpack.c.b16 %v2964_v54, %v906_v46  ;;  %v856_v46 = vrot.slane %v767_v45, 5 }
  0xef   : > { %v660_v39 = vadd.f32 %v659_v38, %v658_v33  ;;  %v1925_v33 = vrot.slane %v2869_v28, 9 }
  0xf0   : > { %1549 = vmatmul.bf16.vlgmr.msra.gmra.mxu3 %v910_v60 }
  0xf1   : > { %v661_v43 = vrot.slane %v660_v39, 2  ;;  %v2956_v48 = vsel %vm2927_vm9, %v1925_v33, %v848_v34  ;;  %v823_v33 = vrot.slane %v821_v63, 5  ;;  %v2259_v34 = vld [vmem:[%s3283_s6 + $0x110] sm:$0xff]  ;;  %v2296_v63 = vld [vmem:[%s3283_s6 + $0x238] sm:$0xff] }
  0xf2   : > { %v915_v35 = vunpack.c.l.b16 %v2956_v48  ;;  %v3165_v48 = vld [vmem:[%s3283_s6 + $0x1d8] sm:$0xff] }
  0xf3   : > { %v662_v44 = vadd.f32 %v661_v43, %v660_v39  ;;  %v2262_v43 = vld [vmem:[%s3283_s6 + $0x128] sm:$0xff] }
  0xf4   : > { %1600 = vmatpush.bf16.msrb.mxu2 %v2262_v43  ;;  %v829_v43 = vrot.slane %v827_v27, 5  ;;  %v2273_v27 = vld [vmem:[%s3283_s6 + $0x180] sm:$0xff] }
  0xf5   : > { %v663_v49 = vrot.slane %v662_v44, 1 }
  0xf7   : > { %v664_v61 = vadd.f32 %v663_v49, %v662_v44  ;;  %v2279_v44 = vld [vmem:[%s3283_s6 + $0x1b0] sm:$0xff] }
  0xf8   : > { %1637 = vmatpush.bf16.msra.mxu0 %v2279_v44  ;;  %1601 = vmatpush.bf16.msrb.mxu2 %v2261_v56  ;;  %v1927_v44 = vrot.slane %v2989_v59, 9 }
  0xf9   : > { %2401 = vrcp.f32 %v664_v61 }
  0xfa   : > { %v3062_v60 = vsel %vm2927_vm9, %v1927_v44, %v856_v46 }
  0xfb   : > { %v917_v45 = vunpack.c.l.b16 %v3062_v60  ;;  %v2249_v60 = vld [vmem:[%s3283_s6 + $0xc0] sm:$0xff] }
  0xfc   : > { %1638 = vmatpush.bf16.msra.mxu0 %v2278_v0  ;;  %1602 = vmatpush.bf16.msrb.mxu2 %v2260_v10  ;;  %v2265_v10 = vld [vmem:[%s3283_s6 + $0x140] sm:$0xff] }
  0xff   : > { %v2923_v36 = vpop.eup %2401 }
 0x100   : > { %v680_v39 = vmul.f32 %v2923_v36, %v2821_v26  ;;  %v681_v40 = vmul.f32 %v2923_v36, %v2825_v9  ;;  %v678_v41 = vmul.f32 %v2923_v36, %v2804_v12  ;;  %v679_v14 = vmul.f32 %v2923_v36, %v2808_v18  ;;  %v2269_v26 = vld [vmem:[%s3283_s6 + $0x160] sm:$0xff]  ;;  %1603 = vmatpush.bf16.msrb.mxu2 %v2259_v34 }
 0x101   : > { %v2950_v12 = vmul.f32 %v2923_v36, %v2796_v2  ;;  %v845_v18 = vsel %vm2927_vm9, %v1924_v7, %v844_v32  ;;  %v677_v49 = vmul.f32 %v2923_v36, %v2800_v8  ;;  %v2962_v50 = vmul.f32 %v2923_v36, %v2786_v58  ;;  %1620 = vmatpush.bf16.msrb.mxu3 %v2269_v26  ;;  %v2267_v7 = vld [vmem:[%s3283_s6 + $0x150] sm:$0xff] }
 0x102   : > { %v736_v9 = vpack.c.bf16 %v681_v40, %v680_v39  ;;  %v2968_v2 = vmul.f32 %v2923_v36, %v2762_v37  ;;  %v735_v57 = vpack.c.bf16 %v679_v14, %v678_v41  ;;  %v2975_v8 = vmul.f32 %v2923_v36, %v2768_v42  ;;  %v2986_v37 = vld [vmem:[%s2863_s11 + $0x10] sm:$0xf]  ;;  %v2276_v14 = vld [vmem:[%s3283_s6 + $0x198] sm:$0xff] }
 0x103   : > { %v2979_v58 = vmul.f32 %v2923_v36, %v2752_v6  ;;  %v2983_v22 = vmul.f32 %v2923_v36, %v2756_v55  ;;  %v914_v61 = vunpack.c.l.b16 %v845_v18  ;;  %v2995_v42 = vmul.f32 %v2923_v36, %v2744_v53  ;;  %v765_v6 = vld [vmem:[%s2863_s11 + $0x14] sm:$0x1]  ;;  %v2268_v55 = vld [vmem:[%s3283_s6 + $0x158] sm:$0xff]  ;;  %v2266_v18 = vld [vmem:[%s3283_s6 + $0x148] sm:$0xff] }
 0x104   : > { %737 = vmatpush.bf16.msra.mxu1 %v736_v9  ;;  %v731_v1 = vpack.c.bf16 %v2975_v8, %v2968_v2  ;;  %v3010_v53 = vmul.f32 %v2923_v36, %v2746_v29  ;;  %v900_v4 = vunpack.c.l.b16 %v2986_v37  ;;  %v804_v17 = vshrl.u32 %v2986_v37, 16  ;;  %v2277_v29 = vld [vmem:[%s3283_s6 + $0x1a0] sm:$0xff]  ;;  %v2256_v2 = vld [vmem:[%s3283_s6 + $0xf8] sm:$0xff]  ;;  %v2294_v8 = vld [vmem:[%s3283_s6 + $0x228] sm:$0xff] }
 0x105   : > { %v730_v3 = vpack.c.bf16 %v2983_v22, %v2979_v58  ;;  %v918_v11 = vpack.c.b16 %v915_v35, %v914_v61  ;;  %v807_v19 = vshll.u32 %v2986_v37, 16  ;;  %v813_v21 = vshll.u32 %v765_v6, 16  ;;  %1621 = vmatpush.bf16.msrb.mxu3 %v2268_v55  ;;  %1639 = vmatpush.bf16.msra.mxu0 %v2277_v29  ;;  %v2274_v29 = vld [vmem:[%s3283_s6 + $0x188] sm:$0xff]  ;;  %v3138_v58 = vld [vmem:[%s3283_s6 + $0x1e0] sm:$0xff] }
 0x106   : > { %v729_v20 = vpack.c.bf16 %v3010_v53, %v2995_v42  ;;  %v3033_v5 = vpack.c.b16 %v901_v16, %v900_v4  ;;  %v806_v13 = vrot.slane %v804_v17, 4  ;;  %v734_v30 = vpack.c.bf16 %v677_v49, %v2950_v12  ;;  %v2293_v42 = vld [vmem:[%s3283_s6 + $0x220] sm:$0xff] }
 0x107   : > { %1568 = vmatmul.bf16.vlgmr.msrb.gmra.mxu0 %v918_v11  ;;  %v809_v52 = vrot.slane %v807_v19, 5  ;;  %v675_v31 = vmul.f32 %v2923_v36, %v2792_v62  ;;  %v820_v32 = vrot.slane %v818_v25, 4  ;;  %v815_v39 = vrot.slane %v813_v21, 5  ;;  %v2257_v19 = vld [vmem:[%s3283_s6 + $0x100] sm:$0xff]  ;;  %v3092_v21 = vld [vmem:[%s3283_s6 + $0x1f8] sm:$0xff] }
 0x108   : > { %738 = vmatpush.bf16.msra.mxu1 %v735_v57  ;;  %1535 = vmatmul.bf16.gmra.mxu2 %v3033_v5  ;;  %v1926_v40 = vrot.slane %v2986_v37, 9  ;;  %v852_v41 = vrot.slane %v765_v6, 5  ;;  %v672_v26 = vmul.f32 %v2923_v36, %v2774_v47  ;;  %v673_v9 = vmul.f32 %v2923_v36, %v2780_v51  ;;  %v2258_v47 = vld [vmem:[%s3283_s6 + $0x108] sm:$0xff]  ;;  %v2275_v36 = vld [vmem:[%s3283_s6 + $0x190] sm:$0xff]  ;;  %v3153_v53 = vld [vmem:[%s2863_s11 + $0x20] sm:$0xf] }
 0x109   : > { %v810_v15 = vor.u32 %v809_v52, %v806_v13  ;;  %v824_v62 = vor.u32 %v823_v33, %v820_v32  ;;  %1622 = vmatpush.bf16.msrb.mxu3 %v2267_v7  ;;  %v733_v49 = vpack.c.bf16 %v675_v31, %v2962_v50  ;;  %1640 = vmatpush.bf16.msra.mxu0 %v2276_v14  ;;  %v717_v50 = vpop.f32.mrf.mxu0  ;;  %v3105_v13 = vld [vmem:[%s3283_s6 + $0x1f0] sm:$0xff]  ;;  %v3157_v32 = vld [vmem:[%s2863_s11 + $0x28] sm:$0xf]  ;;  %v862_v34 = vshll.u32 %v3153_v53, 16  ;;  %v2292_v14 = vld [vmem:[%s3283_s6 + $0x218] sm:$0xff] }
 0x10a   : > { %v853_v57 = vsel %vm2927_vm9, %v1926_v40, %v852_v41  ;;  %v732_v11 = vpack.c.bf16 %v673_v9, %v672_v26  ;;  %1604 = vmatpush.bf16.msrb.mxu2 %v2258_v47  ;;  %v2295_v7 = vld [vmem:[%s3283_s6 + $0x230] sm:$0xff]  ;;  %v2254_v33 = vld [vmem:[%s3283_s6 + $0xe8] sm:$0xff]  ;;  %v879_v40 = vshrl.u32 %v3157_v32, 16  ;;  %v882_v41 = vshll.u32 %v3157_v32, 16 }
 0x10b   : > { %v811_v12 = vrot.slane %v810_v15, 4  ;;  %v825_v56 = vrot.slane %v824_v62, 4  ;;  %v916_v0 = vunpack.c.l.b16 %v853_v57  ;;  %v3170_v15 = vld [vmem:[%s2863_s11 + $0x2c] sm:$0x1]  ;;  %v1928_v44 = vrot.slane %v3153_v53, 9 }
 0x10c   : > { %739 = vmatpush.bf16.msra.mxu1 %v734_v30  ;;  %v881_v26 = vrot.slane %v879_v40, 4  ;;  %v884_v9 = vrot.slane %v882_v41, 5  ;;  %v888_v57 = vshll.u32 %v3170_v15, 16  ;;  %v923_v38 = vpack.c.b16 %v900_v4, %v899_v23 }
 0x10d   : > { %v816_v51 = vsel %vm2904_vm6, %v811_v12, %v815_v39  ;;  %v830_v61 = vsel %vm2904_vm6, %v825_v56, %v829_v43  ;;  %1623 = vmatpush.bf16.msrb.mxu3 %v2266_v18  ;;  %1641 = vmatpush.bf16.msra.mxu0 %v2275_v36  ;;  %v3096_v25 = vpack.c.b16 %v917_v45, %v916_v0  ;;  %v864_v43 = vrot.slane %v862_v34, 5  ;;  %v3182_v12 = vld [vmem:[%s3283_s6 + $0x1d0] sm:$0xff]  ;;  %v2253_v18 = vld [vmem:[%s3283_s6 + $0xe0] sm:$0xff] }
 0x10e   : > { %v908_v6 = vunpack.c.l.b16 %v816_v51  ;;  %v3074_v55 = vunpack.c.l.b16 %v830_v61  ;;  %1605 = vmatpush.bf16.msrb.mxu2 %v2257_v19  ;;  %v885_v47 = vor.u32 %v884_v9, %v881_v26  ;;  %v2291_v51 = vld [vmem:[%s3283_s6 + $0x210] sm:$0xff] }
 0x110   : > { %740 = vmatpush.bf16.msra.mxu1 %v733_v49  ;;  %v3081_v17 = vpack.c.b16 %v3074_v55, %v908_v6  ;;  %v928_v52 = vpack.c.b16 %v908_v6, %v2964_v54  ;;  %v3123_v54 = vld [vmem:[%s3283_s6 + $0x1e8] sm:$0xff]  ;;  %v886_v6 = vrot.slane %v885_v47, 4 }
 0x111   : > { %1624 = vmatpush.bf16.msrb.mxu3 %v2265_v10  ;;  %1642 = vmatpush.bf16.msra.mxu0 %v2274_v29  ;;  %v719_v30 = vpop.f32.mrf.mxu0 }
 0x112   : > { %1554 = vmatmul.bf16.gmra.mxu3 %v3081_v17  ;;  %2314 = vmatpush.bf16.msra.mxu2 %v2296_v63  ;;  %v727_v22 = vpack.c.bf16 %v719_v30, %v717_v50  ;;  %v890_v50 = vrot.slane %v888_v57, 5 }
 0x114   : > { %741 = vmatpush.bf16.msra.mxu1 %v732_v11  ;;  %v891_v19 = vsel %vm2904_vm6, %v886_v6, %v890_v50 }
 0x115   : > { %2306 = vmatpush.bf16.msra.mxu3 %v3092_v21  ;;  %1643 = vmatpush.bf16.msra.mxu0 %v2273_v27 }
 0x116   : > { %2315 = vmatpush.bf16.msra.mxu2 %v2295_v7 }
 0x117   : > { %1573 = vmatmul.bf16.gmra.mxu0 %v3096_v25 }
 0x118   : > { %742 = vmatpush.bf16.msra.mxu1 %v731_v1  ;;  %1606 = vmatmul.bf16.vlgmr.msrb.gmra.mxu2 %v928_v52  ;;  %v2255_v1 = vld [vmem:[%s3283_s6 + $0xf0] sm:$0xff]  ;;  %v2290_v52 = vld [vmem:[%s3283_s6 + $0x208] sm:$0xff] }
 0x119   : > { %2307 = vmatpush.bf16.msra.mxu3 %v3105_v13  ;;  %1674 = vmatpush.bf16.msrb.mxu0 %v2296_v63  ;;  %v722_v31 = vpop.f32.mrf.mxu0 }
 0x11a   : > { %2316 = vmatpush.bf16.msra.mxu2 %v2294_v8 }
 0x11c   : > { %743 = vmatpush.bf16.msra.mxu1 %v730_v3  ;;  %v933_v3 = vpack.c.b16 %v916_v0, %v915_v35  ;;  %v859_v35 = vshrl.u32 %v3153_v53, 16  ;;  %v2252_v0 = vld [vmem:[%s3283_s6 + $0xd8] sm:$0xff] }
 0x11d   : > { %2308 = vmatpush.bf16.msra.mxu3 %v3123_v54  ;;  %1675 = vmatpush.bf16.msrb.mxu0 %v2295_v7  ;;  %v2281_v7 = vld [vmem:[%s3283_s6 + $0x1c0] sm:$0xff] }
 0x11e   : > { %2317 = vmatpush.bf16.msra.mxu2 %v2293_v42  ;;  %v861_v62 = vrot.slane %v859_v35, 4 }
 0x120   : > { %744 = vmatpush.bf16.msra.mxu1 %v729_v20  ;;  %v769_v20 = vld [vmem:[%s2863_s11 + $0x24] sm:$0x1]  ;;  %v865_v49 = vor.u32 %v864_v43, %v861_v62 }
 0x121   : > { %2309 = vmatpush.bf16.msra.mxu3 %v3138_v58  ;;  %1676 = vmatpush.bf16.msrb.mxu0 %v2294_v8  ;;  %v868_v39 = vshll.u32 %v769_v20, 16  ;;  %v876_v46 = vrot.slane %v769_v20, 5  ;;  %v724_v11 = vpop.f32.mrf.mxu0  ;;  %v937_v8 = vunpack.c.l.b16 %v3157_v32 }
 0x122   : > { %1625 = vmatmul.bf16.vlgmr.msrb.gmra.mxu3 %v933_v3  ;;  %2318 = vmatpush.bf16.msra.mxu2 %v2292_v14  ;;  %v866_v36 = vrot.slane %v865_v49, 4  ;;  %v728_v30 = vpack.c.bf16 %v724_v11, %v722_v31  ;;  %v2289_v3 = vld [vmem:[%s3283_s6 + $0x200] sm:$0xff] }
 0x123   : > { %745 = vmatmul.bf16.vlgmr.msra.gmra.mxu1 %v727_v22  ;;  %v870_v56 = vrot.slane %v868_v39, 5  ;;  %v877_v61 = vsel %vm2927_vm9, %v1928_v44, %v876_v46  ;;  %v896_v22 = vrot.slane %v3170_v15, 5 }
 0x124   : > { %1579 = vmatpush.bf16.msrb.mxu1 %v2256_v2  ;;  %v932_v63 = vunpack.c.l.b16 %v877_v61  ;;  %v922_v2 = vunpack.c.l.b16 %v3153_v53 }
 0x125   : > { %2310 = vmatpush.bf16.msra.mxu3 %v3165_v48  ;;  %1677 = vmatpush.bf16.msrb.mxu0 %v2293_v42  ;;  %v871_v10 = vsel %vm2904_vm6, %v866_v36, %v870_v56  ;;  %v2250_v42 = vld [vmem:[%s3283_s6 + $0xc8] sm:$0xff] }
 0x126   : > { %v927_v29 = vunpack.c.l.b16 %v871_v10  ;;  %2319 = vmatpush.bf16.msra.mxu2 %v2291_v51  ;;  %v938_v53 = vpack.c.b16 %v937_v8, %v922_v2  ;;  %v924_v28 = vpack.c.b16 %v922_v2, %v901_v16 }
 0x127   : > { %1644 = vmatmul.bf16.vlgmr.msra.gmra.mxu0 %v3033_v5  ;;  %v2282_v5 = vld [vmem:[%s3283_s6 + $0x1c8] sm:$0xff] }
 0x128   : > { %1580 = vmatpush.bf16.msrb.mxu1 %v2255_v1  ;;  %v929_v27 = vpack.c.b16 %v927_v29, %v3074_v55  ;;  %v1929_v55 = vrot.slane %v3157_v32, 9  ;;  %v934_v1 = vpack.c.b16 %v932_v63, %v917_v45  ;;  %v940_v32 = vunpack.c.l.b16 %v891_v19 }
 0x129   : > { %2311 = vmatpush.bf16.msra.mxu3 %v3182_v12  ;;  %1678 = vmatpush.bf16.msrb.mxu0 %v2292_v14 }
 0x12a   : > { %1611 = vmatmul.bf16.gmra.mxu2 %v929_v27  ;;  %v897_v20 = vsel %vm2927_vm9, %v1929_v55, %v896_v22 }
 0x12b   : > { %2320 = vmatpush.bf16.msra.mxu2 %v2290_v52  ;;  %v943_v45 = vunpack.c.l.b16 %v897_v20 }
 0x12c   : > { %1581 = vmatpush.bf16.msrb.mxu1 %v2254_v33  ;;  %v941_v33 = vpack.c.b16 %v940_v32, %v927_v29 }
 0x12d   : > { %2312 = vmatpush.bf16.msra.mxu3 %v2282_v5  ;;  %1679 = vmatpush.bf16.msrb.mxu0 %v2291_v51  ;;  %v944_v31 = vpack.c.b16 %v943_v45, %v932_v63 }
 0x12f   : > { %2321 = vmatpush.bf16.msra.mxu2 %v2289_v3 }
 0x130   : > { %1582 = vmatpush.bf16.msrb.mxu1 %v2253_v18 }
 0x131   : > { %2313 = vmatpush.bf16.msra.mxu3 %v2281_v7  ;;  %1680 = vmatpush.bf16.msrb.mxu0 %v2290_v52 }
 0x132   : > { %1630 = vmatmul.bf16.gmra.mxu3 %v934_v1 }
 0x133   : > { %750 = vmatmul.bf16.gmra.mxu1 %v728_v30 }
 0x134   : > { %1583 = vmatpush.bf16.msrb.mxu1 %v2252_v0 }
 0x135   : > { %1681 = vmatpush.bf16.msrb.mxu0 %v2289_v3 }
 0x137   : > { %1649 = vmatmul.bf16.gmra.mxu0 %v938_v53 }
 0x138   : > { %1584 = vmatpush.bf16.msrb.mxu1 %v2251_v24 }
 0x13a   : > { %1687 = vmatmul.bf16.vlgmr.msra.gmra.mxu2 %v944_v31 }
 0x13c   : > { %1585 = vmatpush.bf16.msrb.mxu1 %v2250_v42 }
 0x140   : > { %1586 = vmatpush.bf16.msrb.mxu1 %v2249_v60 }
 0x142   : > { %1668 = vmatmul.bf16.vlgmr.msra.gmra.mxu3 %v941_v33 }
 0x143   : > { %1587 = vmatmul.bf16.vlgmr.msrb.gmra.mxu1 %v923_v38 }
 0x144   : > { %1655 = vmatpush.bf16.msra.mxu1 %v3092_v21 }
 0x147   : > { %1682 = vmatmul.bf16.vlgmr.msrb.gmra.mxu0 %v3096_v25 }
 0x148   : > { %1656 = vmatpush.bf16.msra.mxu1 %v3105_v13 }
 0x14c   : > { %1657 = vmatpush.bf16.msra.mxu1 %v3123_v54 }
 0x150   : > { %1658 = vmatpush.bf16.msra.mxu1 %v3138_v58 }
 0x153   : > { %1592 = vmatmul.bf16.gmra.mxu1 %v924_v28 }
 0x154   : > { %1659 = vmatpush.bf16.msra.mxu1 %v3165_v48 }
 0x158   : > { %1660 = vmatpush.bf16.msra.mxu1 %v3182_v12 }
 0x15c   : > { %1661 = vmatpush.bf16.msra.mxu1 %v2282_v5 }
 0x15e   : > { %v1531_v23 = vpop.f32.mrf.mxu2 }
 0x160   : > { %1662 = vmatpush.bf16.msra.mxu1 %v2281_v7 }
 0x163   : > { %1663 = vmatmul.bf16.vlgmr.msra.gmra.mxu1 %v3081_v17 }
 0x166   : > { %v1533_v13 = vpop.f32.mrf.mxu2 }
 0x173   : > { %v1550_v37 = vpop.f32.mrf.mxu3 }
 0x174   : > { %v1551_v57 = vadd.f32 %v1550_v37, %v1531_v23 }
 0x17b   : > { %v1552_v21 = vpop.f32.mrf.mxu3 }
 0x17c   : > { %v1553_v10 = vadd.f32 %v1552_v21, %v1533_v13 }
 0x184   : > { %v1569_v4 = vpop.f32.mrf.mxu0 }
 0x185   : > { %v1570_v50 = vadd.f32 %v1569_v4, %v1551_v57 }
 0x18b   : > { %v1536_v58 = vpop.f32.mrf.mxu2 }
 0x18c   : > { %v1571_v25 = vpop.f32.mrf.mxu0 }
 0x18d   : > { %v1572_v24 = vadd.f32 %v1571_v25, %v1553_v10 }
 0x193   : > { %v1538_v34 = vpop.f32.mrf.mxu2 }
 0x194   : > { %v1574_v59 = vpop.f32.mrf.mxu0 }
 0x195   : > { %v1555_v54 = vpop.f32.mrf.mxu3 }
 0x196   : > { %v1556_v18 = vadd.f32 %v1555_v54, %v1536_v58 }
 0x198   : > { %v1575_v51 = vadd.f32 %v1574_v59, %v1556_v18 }
 0x19b   : > { %v1607_v17 = vpop.f32.mrf.mxu2 }
 0x19c   : > { %v1576_v15 = vpop.f32.mrf.mxu0 }
 0x19d   : > { %v1557_v16 = vpop.f32.mrf.mxu3 }
 0x19e   : > { %v1558_v6 = vadd.f32 %v1557_v16, %v1538_v34 }
 0x1a0   : > { %v746_v35 = vpop.f32.mrf.mxu1  ;;  %v1577_v63 = vadd.f32 %v1576_v15, %v1558_v6  ;;  %v2305_v15 = vld [vmem:[%s365_s24 + $0x8] sm:$0xff]  }
 0x1a1   : > { %1705 = vrot.lane.b32.xlu1 %v746_v35, %s2444_s18  ;;  %v2298_v35 = vld [vmem:[%s365_s24] sm:$0xff]  }
 0x1a2   : > { %v2299_v16 = vunpack.c.l.bf16 %v2298_v35 }
 0x1a3   : > { %v1609_v43 = vpop.f32.mrf.mxu2 }
 0x1a4   : > { %v1645_v41 = vpop.f32.mrf.mxu0 }
 0x1a5   : > { %v1626_v39 = vpop.f32.mrf.mxu3 }
 0x1a8   : > { %v748_v48 = vpop.f32.mrf.mxu1 }
 0x1a9   : > { %1707 = vrot.lane.b32.xlu2 %v748_v48, %s2444_s18 }
 0x1ac   : > { %v1647_v46 = vpop.f32.mrf.mxu0 }
 0x1ad   : > { %v1628_v62 = vpop.f32.mrf.mxu3  ;;  %v1612_v9 = vpop.f32.mrf.mxu2 }
 0x1b0   : > { %v751_v40 = vpop.f32.mrf.mxu1 }
 0x1b1   : > { %1709 = vrot.lane.b32.xlu0 %v751_v40, %s2444_s18  ;;  %v2304_v40 = vunpack.c.h.bf16 %v2305_v15 }
 0x1b4   : > { %v1650_v49 = vpop.f32.mrf.mxu0 }
 0x1b5   : > { %v1631_v26 = vpop.f32.mrf.mxu3  ;;  %v1614_v47 = vpop.f32.mrf.mxu2 }
 0x1b8   : > { %v753_v14 = vpop.f32.mrf.mxu1 }
 0x1b9   : > { %1711 = vrot.lane.b32.xlu1 %v753_v14, %s2444_s18 }
 0x1bc   : > { %v1652_v19 = vpop.f32.mrf.mxu0 }
 0x1bd   : > { %v1633_v56 = vpop.f32.mrf.mxu3  ;;  %v1688_v30 = vpop.f32.mrf.mxu2 }
 0x1c0   : > { %v1588_v44 = vpop.f32.mrf.mxu1 }
 0x1c1   : > { %v1589_v5 = vadd.f32 %v1588_v44, %v1570_v50 }
 0x1c3   : > { %v1608_v52 = vadd.f32 %v1607_v17, %v1589_v5 }
 0x1c4   : > { %v1683_v60 = vpop.f32.mrf.mxu0 }
 0x1c5   : > { %v1669_v29 = vpop.f32.mrf.mxu3  ;;  %v1627_v3 = vadd.f32 %v1626_v39, %v1608_v52  ;;  %v1690_v4 = vpop.f32.mrf.mxu2 }
 0x1c7   : > { %v1646_v53 = vadd.f32 %v1645_v41, %v1627_v3 }
 0x1c8   : > { %v1590_v12 = vpop.f32.mrf.mxu1 }
 0x1c9   : > { %v1591_v55 = vadd.f32 %v1590_v12, %v1572_v24 }
 0x1cb   : > { %v1610_v42 = vadd.f32 %v1609_v43, %v1591_v55 }
 0x1cc   : > { %v1685_v25 = vpop.f32.mrf.mxu0 }
 0x1cd   : > { %v1629_v33 = vadd.f32 %v1628_v62, %v1610_v42  ;;  %v1671_v28 = vpop.f32.mrf.mxu3 }
 0x1cf   : > { %v1648_v37 = vadd.f32 %v1647_v46, %v1629_v33  ;;  %v2303_v46 = vunpack.c.l.bf16 %v2305_v15 }
 0x1d0   : > { %v1593_v36 = vpop.f32.mrf.mxu1 }
 0x1d1   : > { %v1594_v61 = vadd.f32 %v1593_v36, %v1575_v51  ;;  %v2300_v36 = vunpack.c.h.bf16 %v2298_v35 }
 0x1d3   : > { %v1613_v0 = vadd.f32 %v1612_v9, %v1594_v61 }
 0x1d5   : > { %v1632_v11 = vadd.f32 %v1631_v26, %v1613_v0 }
 0x1d7   : > { %v1651_v27 = vadd.f32 %v1650_v49, %v1632_v11 }
 0x1d8   : > { %v1595_v7 = vpop.f32.mrf.mxu1 }
 0x1d9   : > { %v1596_v2 = vadd.f32 %v1595_v7, %v1577_v63  ;;  %v1670_v8 = vadd.f32 %v1669_v29, %v1651_v27 }
 0x1db   : > { %v1615_v22 = vadd.f32 %v1614_v47, %v1596_v2  ;;  %v1689_v1 = vadd.f32 %v1688_v30, %v1670_v8 }
 0x1dd   : > { %1733 = vrot.lane.b32.xlu1 %v1689_v1, %s2445_s19  ;;  %v1634_v20 = vadd.f32 %v1633_v56, %v1615_v22 }
 0x1df   : > { %v1653_v32 = vadd.f32 %v1652_v19, %v1634_v20 }
 0x1e0   : > { %v1664_v45 = vpop.f32.mrf.mxu1 }
 0x1e1   : > { %v1665_v31 = vadd.f32 %v1664_v45, %v1646_v53  ;;  %v1672_v23 = vadd.f32 %v1671_v28, %v1653_v32 }
 0x1e3   : > { %v1684_v38 = vadd.f32 %v1683_v60, %v1665_v31  ;;  %v1691_v54 = vadd.f32 %v1690_v4, %v1672_v23 }
 0x1e5   : > { %1729 = vrot.lane.b32.xlu2 %v1684_v38, %s2445_s19 }
 0x1e8   : > { %v1666_v21 = vpop.f32.mrf.mxu1 }
 0x1e9   : > { %v1667_v13 = vadd.f32 %v1666_v21, %v1648_v37 }
 0x1eb   : > { %v1686_v58 = vadd.f32 %v1685_v25, %v1667_v13 }
 0x1ed   : > { %1731 = vrot.lane.b32.xlu0 %v1686_v58, %s2445_s19  ;;  %1735 = vrot.lane.b32.xlu2 %v1691_v54, %s2445_s19 }
 0x203   : > { %v1708_v59 = vpop.permute.xlu2 %1707 }
 0x204   : > { %v1718_v50 = vsel %vm697_vm1, %v2300_v36, %v1708_v59 }
 0x205   : > { %v1722_v61 = vmul.f32 %v1718_v50, %v1686_v58 }
 0x213   : > { %v1706_v48 = vpop.permute.xlu1 %1705 }
 0x214   : > { %v1717_v34 = vsel %vm697_vm1, %v2299_v16, %v1706_v48 }
 0x215   : > { %v1721_v39 = vmul.f32 %v1717_v34, %v1684_v38 }
 0x223   : > { %v1710_v9 = vpop.permute.xlu0 %1709 }
 0x224   : > { %v1719_v49 = vsel %vm697_vm1, %v2303_v46, %v1710_v9 }
 0x225   : > { %v1723_v56 = vmul.f32 %v1719_v49, %v1689_v1 }
 0x22b   : > { %v1712_v41 = vpop.permute.xlu1 %1711 }
 0x22c   : > { %v1720_v43 = vsel %vm697_vm1, %v2304_v40, %v1712_v41 }
 0x22d   : > { %v1724_v44 = vmul.f32 %v1720_v43, %v1691_v54 }
 0x23f   : > { %v1730_v17 = vpop.permute.xlu2 %1729 }
 0x240   : > { %v1741_v14 = vadd.f32 %v1730_v17, %v1721_v39 }
 0x242   : > { %v1745_v62 = vpack.c.bf16 %v1741_v14, %v1741_v14 }
 0x244   : > { %1750 = vst.msk [vmem:[%s395_s23] sm:$0xf] %vm1749_vm10, %v1745_v62 }
 0x247   : > { %v1736_v26 = vpop.permute.xlu2 %1735 }
 0x248   : > { %v1744_v12 = vadd.f32 %v1736_v26, %v1724_v44 }
 0x24a   : > { %v1748_v18 = vpack.c.bf16 %v1744_v12, %v1744_v12 }
 0x24c   : > { %1753 = vst.msk [vmem:[%s395_s23 + $0xc] sm:$0xf] %vm1749_vm10, %v1748_v18 }
 0x24f   : > { %v1734_v57 = vpop.permute.xlu1 %1733 }
 0x250   : > { %v1743_v47 = vadd.f32 %v1734_v57, %v1723_v56 }
 0x252   : > { %v1747_v51 = vpack.c.bf16 %v1743_v47, %v1743_v47 }
 0x254   : > { %1752 = vst.msk [vmem:[%s395_s23 + $0x8] sm:$0xf] %vm1749_vm10, %v1747_v51 }
 0x25f   : > { %v1732_v6 = vpop.permute.xlu0 %1731 }
 0x260   : > { %v1742_v5 = vadd.f32 %v1732_v6, %v1722_v61 }
 0x262   : > { %v1746_v0 = vpack.c.bf16 %v1742_v5, %v1742_v5 }
 0x264   : > { %1751 = vst.msk [vmem:[%s395_s23 + $0x4] sm:$0xf] %vm1749_vm10, %v1746_v0 }
 0x265 PF: > { %s17_s28 = sadd.s32 1, %s2441_s28   ;;  %s3289_s24 = smov %s2433_s26 }
 0x266   : > { %p14_p7 = scmp.ge.s32.totalorder %s17_s28, 6   ;;  %s3290_s25 = smov %s2437_s27 }
 0x267   : > { %s3291_s26 = smov %s3294_s29  ;;  %s3292_s27 = smov %s3298_s30 }
 0x268   :  { %16 = sbr.rel (!%p14_p7) target bundleno = 3 (0x3), region = 91 }

// kernel: dcm_next_stage_forward.17
= control target key start
LH: loop header
LB: loop body
LE: loop exit
PB: predicated region body
PF: predicated region fallthrough
CT: control target
= control target key end

     0   :  { %s585_s9 = smov 0   ;;  %s587_s10 = smov 0   ;;  %s694_s0 = inlined_call_operand.vmem [shape: bf16[2,64,24], index: 0, kind: input, shape index: {}]   ;;  %s695_s1 = inlined_call_operand.vmem [shape: f32[2,2,24], index: 1, kind: input, shape index: {}]   ;;  %s696_s2 = inlined_call_operand.vmem [shape: bf16[2,64,12], index: 2, kind: output, shape index: {}]  }
   0x1   :  { %s589_s11 = smov 0   ;;  %s591_s12 = smov 0  }
   0x2   :  { %s593_s13 = smov 0  }
   0x3 LB: > { %s21_s14 = sadd.s32 1, %s559_s11  ;;  %s24_s15 = sadd.s32 1, %s563_s12  ;;  %s567_s13 = sphi %s593_s13, %s12_s13   ;;  %s563_s12 = sphi %s591_s12, %s710_s12   ;;  %s559_s11 = sphi %s589_s11, %s709_s11   ;;  %s555_s10 = sphi %s587_s10, %s708_s10   ;;  %s551_s9 = sphi %s585_s9, %s707_s9  }
   0x4   : > { %p22_p0 = scmp.ge.s32.totalorder %s21_s14, 2  ;;  %p447_p1 = scmp.ge.s32.totalorder %s567_s13, 1 }
   0x5   : > { %p142_p2 = scmp.lt.s32.totalorder %s567_s13, 5 }
   0x6   : > { %s712_s14 = smov (%p22_p0, %s21_s14), 0  ;;  %s714_s15 = smov (!%p22_p0, %s24_s15), %s563_s12 }
   0x7   : > { %p143_p3 = pnand %p447_p1, %p142_p2  ;;  %p26_p4 = scmp.ge.s32.totalorder %s714_s15, 2 }
   0x8   : > { %p177_p5 = scmp.lt.s32.totalorder (!%p143_p3), %s555_s10, 1  ;;  %s448_s17 = sshll.u32 (!%p143_p3), %s551_s9, 2 }
   0x9   : > { %s716_s15 = smov (%p26_p4, %s714_s15), 0  ;;  %146 = sbr.rel (%p143_p3) target bundleno = 207 (0xcf), region = 28 }
   0xa   : > { %p179_p6 = scmp.lt.s32.totalorder (!%p143_p3), %s448_s17, 7  ;;  %s569_s27 = smov (!%p143_p3), 116  }
   0xe   : > { %s718_s10 = smov (!%p177_p5, %s555_s10), 1  ;;  %s720_s17 = smov (!%p179_p6, %s448_s17), 7 }
   0xf   : > { %s451_s16 = sshll.u32 %s718_s10, 1  ;;  %s449_s21 = sshll.u32 %s718_s10, 3 }
  0x10   : > { %s189_s20 = scalar_lea.vmem %s695_s1, %s451_s16  ;;  %s618_s22 = sadd.s32 %s449_s21, %s720_s17 }
  0x11   : > { %v208_v0 = vld [vmem:[%s189_s20] sm:$0x1]  ;;  %v210_v1 = vld [vmem:[%s189_s20 + $0x1] sm:$0x1]  ;;  %s450_s23 = sshll.u32 %s618_s22, 2 }
  0x12   : > { %v209_v2 = vmul.f32 0.015625, %v208_v0  ;;  %v211_v3 = vmul.f32 0.015625, %v210_v1  ;;  %s184_s26 = scalar_lea.vmem %s694_s0, %s450_s23  ;;  %s198_s30 = scalar_lea.vmem %s696_s2, %s450_s23 }
  0x13   : > { %v469_v10 = vld [vmem:[%s184_s26 + $0x8] sm:$0xff]   ;;  %v462_v12 = vld [vmem:[%s184_s26] sm:$0xff]  }
  0x14   : > { %v212_v4 = vmul.f32 %v209_v2, %v209_v2  ;;  %v467_v13 = vunpack.c.l.bf16 %v469_v10  ;;  %v215_v15 = vperm.slane %v209_v2, 0  ;;  %v463_v16 = vunpack.c.l.bf16 %v462_v12 }
  0x15   : > { %v468_v17 = vunpack.c.h.bf16 %v469_v10  ;;  %v464_v18 = vunpack.c.h.bf16 %v462_v12 }
  0x16   : > { %v213_v5 = vsub.f32 %v211_v3, %v212_v4  ;;  %v218_v21 = vsub.f32 %v467_v13, %v215_v15  ;;  %v216_v22 = vsub.f32 %v463_v16, %v215_v15 }
  0x17   : > { %v219_v23 = vsub.f32 %v468_v17, %v215_v15  ;;  %v217_v24 = vsub.f32 %v464_v18, %v215_v15 }
  0x18   : > { %v214_v6 = vmax.f32 %v213_v5, 0.0 }
  0x1a   : > { %v220_v7 = vadd.f32 1e-05, %v214_v6 }
  0x1c   : > { %511 = vrsqrt.f32 %v220_v7  ;;  %vm227_vm0 = vweird.f32 %v220_v7 }
  0x22   : > { %v512_v8 = vpop.eup %511 }
  0x23   : > { %v222_v9 = vmul.f32 %v512_v8, %v220_v7  ;;  %vm228_vm1 = vweird.f32 %v512_v8 }
  0x24   : > { %vm229_vm2 = vmor %vm227_vm0, %vm228_vm1 }
  0x25   : > { %v223_v11 = vmul.f32 %v512_v8, %v222_v9 }
  0x27   : > { %v224_v14 = vmul.f32 0.5, %v223_v11 }
  0x29   : > { %v225_v19 = vsub.f32 1.5, %v224_v14 }
  0x2b   : > { %v226_v20 = vmul.f32 %v512_v8, %v225_v19 }
  0x2d   : > { %v230_v25 = vsel %vm229_vm2, %v512_v8, %v226_v20 }
  0x2e   : > { %v231_v26 = vperm.slane %v230_v25, 0 }
  0x30   : > { %v626_v27 = vmul.f32 %v231_v26, %v218_v21  ;;  %v628_v28 = vmul.f32 %v231_v26, %v216_v22  ;;  %v630_v29 = vmul.f32 %v231_v26, %v219_v23  ;;  %v632_v30 = vmul.f32 %v231_v26, %v217_v24 }
  0x32   : > { %v457_v31 = vmul.f32 -1.442695, %v626_v27  ;;  %v455_v32 = vmul.f32 -1.442695, %v628_v28  ;;  %v458_v33 = vmul.f32 -1.442695, %v630_v29 }
  0x33   : > { %v456_v34 = vmul.f32 -1.442695, %v632_v30 }
  0x34   : > { %513 = vpow2.f32 %v457_v31 }
  0x35   : > { %515 = vpow2.f32 %v455_v32 }
  0x36   : > { %517 = vpow2.f32 %v458_v33 }
  0x37   : > { %519 = vpow2.f32 %v456_v34 }
  0x3a   : > { %v514_v35 = vpop.eup %513 }
  0x3b   : > { %v516_v36 = vpop.eup %515  ;;  %v250_v37 = vadd.f32 1.0, %v514_v35 }
  0x3c   : > { %v518_v38 = vpop.eup %517  ;;  %v248_v39 = vadd.f32 1.0, %v516_v36 }
  0x3d   : > { %v520_v40 = vpop.eup %519  ;;  %521 = vrcp.f32 %v250_v37  ;;  %v251_v41 = vadd.f32 1.0, %v518_v38  ;;  %v291_v44 = vand.u32 2147483647, %v250_v37  ;;  %v293_v47 = vand.u32 2147483648, %v250_v37 }
  0x3e   : > { %523 = vrcp.f32 %v248_v39  ;;  %v249_v42 = vadd.f32 1.0, %v520_v40  ;;  %v261_v48 = vand.u32 2147483647, %v248_v39  ;;  %v263_v50 = vand.u32 2147483648, %v248_v39 }
  0x3f   : > { %525 = vrcp.f32 %v251_v41  ;;  %vm287_vm3 = vweird.f32 %v250_v37  ;;  %vm638_vm5 = vcmp.eq.f32.partialorder %v291_v44, 8.507059e+37  ;;  %vm257_vm6 = vweird.f32 %v248_v39 }
  0x40   : > { %527 = vrcp.f32 %v249_v42  ;;  %v294_v57 = vor.u32 1.1754944e-38, %v293_v47  ;;  %vm642_vm8 = vcmp.eq.f32.partialorder %v261_v48, 8.507059e+37  ;;  %v264_v62 = vor.u32 1.1754944e-38, %v263_v50 }
  0x41   : > { %vm302_vm10 = vweird.f32 %v251_v41  ;;  %v308_v3 = vand.u32 2147483648, %v251_v41  ;;  %vm272_vm13 = vweird.f32 %v249_v42  ;;  %v306_v8 = vand.u32 2147483647, %v251_v41 }
  0x42   : > { %v278_v9 = vand.u32 2147483648, %v249_v42  ;;  %v276_v14 = vand.u32 2147483647, %v249_v42 }
  0x43   : > { %v522_v43 = vpop.eup %521  ;;  %v309_v17 = vor.u32 1.1754944e-38, %v308_v3  ;;  %vm307_vm1 = vcmp.eq.f32.partialorder %v306_v8, 8.507059e+37 }
  0x44   : > { %v524_v45 = vpop.eup %523  ;;  %v283_v46 = vmul.f32 %v522_v43, %v250_v37  ;;  %vm288_vm4 = vweird.f32 %v522_v43  ;;  %v279_v20 = vor.u32 1.1754944e-38, %v278_v9  ;;  %vm277_vm2 = vcmp.eq.f32.partialorder %v276_v14, 8.507059e+37 }
  0x45   : > { %v253_v49 = vmul.f32 %v524_v45, %v248_v39  ;;  %v526_v52 = vpop.eup %525  ;;  %vm258_vm7 = vweird.f32 %v524_v45  ;;  %vm646_vm9 = vmor %vm287_vm3, %vm288_vm4  ;;  %vm336_vm3 = vcmask 93184  }
  0x46   : > { %v284_v51 = vsub.f32 1.0, %v283_v46  ;;  %v528_v55 = vpop.eup %527  ;;  %v298_v59 = vmul.f32 %v526_v52, %v251_v41  ;;  %vm650_vm11 = vmor %vm257_vm6, %vm258_vm7  ;;  %vm303_vm12 = vweird.f32 %v526_v52 }
  0x47   : > { %v254_v54 = vsub.f32 1.0, %v253_v49  ;;  %v268_v63 = vmul.f32 %v528_v55, %v249_v42  ;;  %vm273_vm14 = vweird.f32 %v528_v55  ;;  %vm661_vm15 = vmor %vm302_vm10, %vm303_vm12 }
  0x48   : > { %v285_v56 = vmul.f32 %v522_v43, %v284_v51  ;;  %v299_v2 = vsub.f32 1.0, %v298_v59  ;;  %vm274_vm0 = vmor %vm272_vm13, %vm273_vm14 }
  0x49   : > { %v255_v61 = vmul.f32 %v524_v45, %v254_v54  ;;  %v269_v5 = vsub.f32 1.0, %v268_v63 }
  0x4a   : > { %v286_v0 = vadd.f32 %v522_v43, %v285_v56  ;;  %v300_v7 = vmul.f32 %v526_v52, %v299_v2 }
  0x4b   : > { %v256_v4 = vadd.f32 %v524_v45, %v255_v61  ;;  %v270_v13 = vmul.f32 %v528_v55, %v269_v5 }
  0x4c   : > { %v290_v6 = vsel %vm646_vm9, %v522_v43, %v286_v0  ;;  %v301_v16 = vadd.f32 %v526_v52, %v300_v7 }
  0x4d   : > { %v295_v10 = vsel %vm638_vm5, %v294_v57, %v290_v6  ;;  %v260_v11 = vsel %vm650_vm11, %v524_v45, %v256_v4  ;;  %v271_v18 = vadd.f32 %v528_v55, %v270_v13 }
  0x4e   : > { %320 = vrot.lane.b32.xlu1 %v295_v10, %s569_s27  ;;  %v265_v15 = vsel %vm642_vm8, %v264_v62, %v260_v11  ;;  %v305_v19 = vsel %vm661_vm15, %v526_v52, %v301_v16 }
  0x4f   : > { %316 = vrot.lane.b32.xlu0 %v265_v15, %s569_s27  ;;  %v275_v21 = vsel %vm274_vm0, %v528_v55, %v271_v18  ;;  %v310_v22 = vsel %vm307_vm1, %v309_v17, %v305_v19 }
  0x50   : > { %v280_v23 = vsel %vm277_vm2, %v279_v20, %v275_v21 }
  0x56   : > { %322 = vrot.lane.b32.xlu1 %v310_v22, %s569_s27 }
  0x57   : > { %318 = vrot.lane.b32.xlu0 %v280_v23, %s569_s27 }
  0xc0   : > { %v321_v24 = vpop.permute.xlu1 %320 }
  0xc1   : > { %v330_v25 = vmul.f32 %v321_v24, %v626_v27  ;;  %v317_v26 = vpop.permute.xlu0 %316 }
  0xc2   : > { %v328_v31 = vmul.f32 %v317_v26, %v628_v28 }
  0xc3   : > { %v334_v32 = vpack.c.bf16 %v330_v25, %v330_v25 }
  0xc4   : > { %v332_v33 = vpack.c.bf16 %v328_v31, %v328_v31 }
  0xc5   : > { %339 = vst.msk [vmem:[%s198_s30 + $0x8] sm:$0xf] %vm336_vm3, %v334_v32 }
  0xc6   : > { %337 = vst.msk [vmem:[%s198_s30] sm:$0xf] %vm336_vm3, %v332_v33 }
  0xc8   : > { %v323_v34 = vpop.permute.xlu1 %322 }
  0xc9   : > { %v331_v35 = vmul.f32 %v323_v34, %v630_v29  ;;  %v319_v36 = vpop.permute.xlu0 %318 }
  0xca   : > { %v329_v37 = vmul.f32 %v319_v36, %v632_v30 }
  0xcb   : > { %v335_v27 = vpack.c.bf16 %v331_v35, %v331_v35 }
  0xcc   : > { %v333_v38 = vpack.c.bf16 %v329_v37, %v329_v37 }
  0xcd   : > { %340 = vst.msk [vmem:[%s198_s30 + $0xc] sm:$0xf] %vm336_vm3, %v335_v27 }
  0xce   : > { %338 = vst.msk [vmem:[%s198_s30 + $0x4] sm:$0xf] %vm336_vm3, %v333_v38 }
  0xcf PF: > { %s12_s13 = sadd.s32 1, %s567_s13   ;;  %s707_s9 = smov %s559_s11 }
  0xd0   : > { %p9_p7 = scmp.ge.s32.totalorder %s12_s13, 6   ;;  %s708_s10 = smov %s563_s12 }
  0xd1   : > { %s709_s11 = smov %s712_s14  ;;  %s710_s12 = smov %s716_s15 }
  0xd2   :  { %11 = sbr.rel (!%p9_p7) target bundleno = 3 (0x3), region = 61 }

// kernel: dcm_next_stage_forward.19
= control target key start
LH: loop header
LB: loop body
LE: loop exit
PB: predicated region body
PF: predicated region fallthrough
CT: control target
= control target key end

     0   :  { %s577_s12 = smov 0   ;;  %s579_s13 = smov 0   ;;  %s639_s0 = inlined_call_operand.vmem [shape: bf16[2,64,12], index: 0, kind: input, shape index: {}]   ;;  %s640_s1 = inlined_call_operand.vmem [shape: f32[2,2,12], index: 1, kind: input, shape index: {}]   ;;  %s641_s2 = inlined_call_operand.vmem [shape: bf16[2,64,12], index: 2, kind: input, shape index: {}]   ;;  %s642_s3 = inlined_call_operand.vmem [shape: bf16[2,64,12], index: 3, kind: output, shape index: {}]  }
   0x1   :  { %s581_s14 = smov 0   ;;  %s583_s15 = smov 0  }
   0x2   :  { %s585_s16 = smov 0  }
   0x3 LB: > { %s22_s17 = sadd.s32 1, %s547_s14  ;;  %s25_s18 = sadd.s32 1, %s551_s15  ;;  %s555_s16 = sphi %s585_s16, %s13_s16   ;;  %s551_s15 = sphi %s583_s15, %s646_s15   ;;  %s547_s14 = sphi %s581_s14, %s645_s14   ;;  %s543_s13 = sphi %s579_s13, %s644_s13   ;;  %s539_s12 = sphi %s577_s12, %s643_s12  }
   0x4   : > { %p23_p0 = scmp.ge.s32.totalorder %s22_s17, 2  ;;  %p444_p1 = scmp.ge.s32.totalorder %s555_s16, 1 }
   0x5   : > { %p184_p2 = scmp.lt.s32.totalorder %s555_s16, 5 }
   0x6   : > { %s648_s17 = smov (%p23_p0, %s22_s17), 0  ;;  %s650_s18 = smov (!%p23_p0, %s25_s18), %s551_s15 }
   0x7   : > { %p185_p3 = pnand %p444_p1, %p184_p2  ;;  %p27_p4 = scmp.ge.s32.totalorder %s650_s18, 2 }
   0x8   : > { %p230_p5 = scmp.lt.s32.totalorder (!%p185_p3), %s543_s13, 1  ;;  %s445_s23 = sshll.u32 (!%p185_p3), %s539_s12, 2 }
   0x9   : > { %s652_s18 = smov (%p27_p4, %s650_s18), 0  ;;  %188 = sbr.rel (%p185_p3) target bundleno = 58 (0x3a), region = 32 }
   0xa   : > { %p232_p6 = scmp.lt.s32.totalorder (!%p185_p3), %s445_s23, 7 }
   0xe   : > { %s654_s13 = smov (!%p230_p5, %s543_s13), 1  ;;  %s656_s23 = smov (!%p232_p6, %s445_s23), 7  ;;  %vm315_vm3 = vcmask 93184  }
   0xf   : > { %s448_s19 = sshll.u32 %s654_s13, 1  ;;  %s446_s24 = sshll.u32 %s654_s13, 3 }
  0x10   : > { %s242_s22 = scalar_lea.vmem %s640_s1, %s448_s19  ;;  %s235_s25 = sadd.s32 %s446_s24, %s656_s23 }
  0x11   : > { %v271_v0 = vld [vmem:[%s242_s22] sm:$0x1]  ;;  %v273_v1 = vld [vmem:[%s242_s22 + $0x1] sm:$0x1]  ;;  %s610_s26 = sshll.u32 %s235_s25, 2 }
  0x12   : > { %v272_v2 = vmul.f32 0.015625, %v271_v0  ;;  %v274_v3 = vmul.f32 0.015625, %v273_v1  ;;  %s237_s29 = scalar_lea.vmem %s639_s0, %s610_s26  ;;  %s251_s5 = scalar_lea.vmem %s641_s2, %s610_s26 }
  0x13   : > { %v458_v10 = vld [vmem:[%s237_s29] sm:$0xff]   ;;  %v473_v11 = vld [vmem:[%s237_s29 + $0x8] sm:$0xff]   ;;  %s261_s8 = scalar_lea.vmem %s642_s3, %s610_s26 }
  0x14   : > { %v275_v4 = vmul.f32 %v272_v2, %v272_v2  ;;  %v459_v13 = vunpack.c.l.bf16 %v458_v10  ;;  %v460_v15 = vunpack.c.h.bf16 %v458_v10  ;;  %v463_v16 = vunpack.c.l.bf16 %v473_v11  ;;  %v466_v20 = vld [vmem:[%s251_s5] sm:$0xff]   ;;  %v474_v22 = vld [vmem:[%s251_s5 + $0x8] sm:$0xff]  }
  0x15   : > { %v464_v17 = vunpack.c.h.bf16 %v473_v11  ;;  %v278_v18 = vperm.slane %v272_v2, 0  ;;  %v467_v28 = vunpack.c.l.bf16 %v466_v20  ;;  %v468_v30 = vunpack.c.h.bf16 %v466_v20 }
  0x16   : > { %v276_v5 = vsub.f32 %v274_v3, %v275_v4  ;;  %v471_v31 = vunpack.c.l.bf16 %v474_v22  ;;  %v472_v32 = vunpack.c.h.bf16 %v474_v22 }
  0x17   : > { %v279_v23 = vsub.f32 %v459_v13, %v278_v18  ;;  %v280_v24 = vsub.f32 %v460_v15, %v278_v18  ;;  %v281_v25 = vsub.f32 %v463_v16, %v278_v18  ;;  %v282_v26 = vsub.f32 %v464_v17, %v278_v18 }
  0x18   : > { %v277_v6 = vmax.f32 %v276_v5, 0.0 }
  0x1a   : > { %v283_v7 = vadd.f32 1e-05, %v277_v6 }
  0x1c   : > { %515 = vrsqrt.f32 %v283_v7  ;;  %vm290_vm0 = vweird.f32 %v283_v7 }
  0x22   : > { %v516_v8 = vpop.eup %515 }
  0x23   : > { %v285_v9 = vmul.f32 %v516_v8, %v283_v7  ;;  %vm291_vm1 = vweird.f32 %v516_v8 }
  0x24   : > { %vm292_vm2 = vmor %vm290_vm0, %vm291_vm1 }
  0x25   : > { %v286_v12 = vmul.f32 %v516_v8, %v285_v9 }
  0x27   : > { %v287_v14 = vmul.f32 0.5, %v286_v12 }
  0x29   : > { %v288_v19 = vsub.f32 1.5, %v287_v14 }
  0x2b   : > { %v289_v21 = vmul.f32 %v516_v8, %v288_v19 }
  0x2d   : > { %v293_v27 = vsel %vm292_vm2, %v516_v8, %v289_v21 }
  0x2e   : > { %v294_v29 = vperm.slane %v293_v27, 0 }
  0x30   : > { %v295_v33 = vmul.f32 %v294_v29, %v279_v23  ;;  %v296_v34 = vmul.f32 %v294_v29, %v280_v24  ;;  %v297_v35 = vmul.f32 %v294_v29, %v281_v25  ;;  %v298_v36 = vmul.f32 %v294_v29, %v282_v26 }
  0x32   : > { %v307_v37 = vadd.f32 %v467_v28, %v295_v33  ;;  %v308_v38 = vadd.f32 %v468_v30, %v296_v34  ;;  %v309_v39 = vadd.f32 %v471_v31, %v297_v35  ;;  %v310_v40 = vadd.f32 %v472_v32, %v298_v36 }
  0x34   : > { %v311_v41 = vpack.c.bf16 %v307_v37, %v307_v37  ;;  %v312_v42 = vpack.c.bf16 %v308_v38, %v308_v38  ;;  %v313_v43 = vpack.c.bf16 %v309_v39, %v309_v39  ;;  %v314_v44 = vpack.c.bf16 %v310_v40, %v310_v40 }
  0x36   : > { %316 = vst.msk [vmem:[%s261_s8] sm:$0xf] %vm315_vm3, %v311_v41 }
  0x37   : > { %317 = vst.msk [vmem:[%s261_s8 + $0x4] sm:$0xf] %vm315_vm3, %v312_v42 }
  0x38   : > { %318 = vst.msk [vmem:[%s261_s8 + $0x8] sm:$0xf] %vm315_vm3, %v313_v43 }
  0x39   : > { %319 = vst.msk [vmem:[%s261_s8 + $0xc] sm:$0xf] %vm315_vm3, %v314_v44 }
  0x3a PF: > { %s13_s16 = sadd.s32 1, %s555_s16   ;;  %s643_s12 = smov %s547_s14 }
  0x3b   : > { %p10_p7 = scmp.ge.s32.totalorder %s13_s16, 6   ;;  %s644_s13 = smov %s551_s15 }
  0x3c   : > { %s645_s14 = smov %s648_s17  ;;  %s646_s15 = smov %s652_s18 }
  0x3d   :  { %12 = sbr.rel (!%p10_p7) target bundleno = 3 (0x3), region = 68 }

// kernel: dcm_next_stage_forward.18
= control target key start
LH: loop header
LB: loop body
LE: loop exit
PB: predicated region body
PF: predicated region fallthrough
CT: control target
= control target key end

     0   :  { %s893_s12 = smov 0   ;;  %s895_s13 = smov 0   ;;  %s1114_s0 = inlined_call_operand.vmem [shape: bf16[2,10,10,12], index: 0, kind: input, shape index: {}]   ;;  %s1115_s1 = inlined_call_operand.vmem [shape: bf16[108,12], index: 1, kind: input, shape index: {}]   ;;  %s1116_s2 = inlined_call_operand.vmem [shape: bf16[2,64,12], index: 2, kind: output, shape index: {0}]   ;;  %s1117_s3 = inlined_call_operand.vmem [shape: f32[2,2,12], index: 3, kind: output, shape index: {1}]  }
   0x1   :  { %s897_s14 = smov 0   ;;  %s899_s15 = smov 0  }
   0x2   :  { %s901_s16 = smov 0  }
   0x3 LB: > { %s23_s17 = sadd.s32 1, %s854_s14  ;;  %s26_s18 = sadd.s32 1, %s858_s15  ;;  %s862_s16 = sphi %s901_s16, %s14_s16   ;;  %s858_s15 = sphi %s899_s15, %s1125_s15   ;;  %s854_s14 = sphi %s897_s14, %s1124_s14   ;;  %s850_s13 = sphi %s895_s13, %s1123_s13   ;;  %s846_s12 = sphi %s893_s12, %s1122_s12  }
   0x4   : > { %p24_p0 = scmp.ge.s32.totalorder %s23_s17, 2  ;;  %p710_p1 = scmp.ge.s32.totalorder %s862_s16, 1 }
   0x5   : > { %p154_p2 = scmp.lt.s32.totalorder %s862_s16, 5 }
   0x6   : > { %s1127_s17 = smov (%p24_p0, %s23_s17), 0  ;;  %s1129_s18 = smov (!%p24_p0, %s26_s18), %s858_s15 }
   0x7   : > { %p155_p3 = pnand %p710_p1, %p154_p2  ;;  %p28_p4 = scmp.ge.s32.totalorder %s1129_s18, 2 }
   0x8   : > { %p186_p5 = scmp.lt.s32.totalorder (!%p155_p3), %s850_s13, 1  ;;  %s759_s19 = sshll.u32 (!%p155_p3), %s846_s12, 5 }
   0x9   : > { %s1131_s18 = smov (%p28_p4, %s1129_s18), 0  ;;  %158 = sbr.rel (%p155_p3) target bundleno = 356 (0x164), region = 28 }
   0xa   : > { %s864_s29 = smov (!%p155_p3), 24   ;;  %s865_s30 = smov (!%p155_p3), 12  }
   0xb   : > { %s866_s4 = smov (!%p155_p3), 36   ;;  %s867_s5 = smov (!%p155_p3), 48  }
   0xc   : > { %s868_s6 = smov (!%p155_p3), 72   ;;  %s869_s7 = smov (!%p155_p3), 60  }
   0xd   : > { %s870_s8 = smov (!%p155_p3), 84   ;;  %s871_s9 = smov (!%p155_p3), 96  }
   0xe   : > { %s1133_s13 = smov (!%p186_p5, %s850_s13), 1  ;;  %vm289_vm0 = vcmask 1042432   ;;  %vm290_vm1 = vcmask 1046532   ;;  %vm222_vm3 = vsmask.f32 3328  ;;  %vm515_vm6 = vcmask 1045504  }
   0xf   : > { %s774_s20 = smul.u32 80, %s1133_s13  ;;  %s715_s21 = sshll.u32 %s1133_s13, 1  ;;  %vm940_vm2 = vmor %vm289_vm0, %vm290_vm1  ;;  %vm223_vm4 = vsmask.f32 7440  ;;  %vm413_vm7 = vcmask 97280   ;;  %vm420_vm8 = vcmask 195584  }
  0x10   : > { %s933_s24 = scalar_lea.vmem %s1117_s3, %s715_s21  ;;  %vm979_vm5 = vmor %vm222_vm3, %vm223_vm4  ;;  %vm425_vm9 = vcmask 293888   ;;  %vm430_vm10 = vcmask 392192   ;;  %vm435_vm11 = vcmask 490496   ;;  %vm440_vm12 = vcmask 588800   ;;  %p755_p7 = scmp.ne.s32.totalorder %s846_s12, 0 }
  0x11   : > { %s190_s27 = scalar_lea.vmem %s1114_s0, %s774_s20  ;;  %vm450_vm13 = vcmask 785408   ;;  %vm445_vm14 = vcmask 687104   ;;  %vm510_vm15 = vcmask 883712   ;;  %vm542_vm0 = vcmask 93184  }
  0x12   : > { %s938_s28 = scalar_lea.vmem %s190_s27, %s759_s19 }
  0x13   : > { %v945_v1 = vld [vmem:[%s938_s28] sm:$0xf]  ;;  %v211_v2 = vld [vmem:[%s938_s28 + $0x4] sm:$0x1]  ;;  %v949_v3 = vld [vmem:[%s938_s28 + $0x8] sm:$0xf] }
  0x14   : > { %v213_v4 = vld [vmem:[%s938_s28 + $0xc] sm:$0x1]  ;;  %v719_v5 = vrot.slane %v945_v1, 9  ;;  %v294_v6 = vrot.slane %v211_v2, 5  ;;  %v720_v7 = vrot.slane %v949_v3, 9  ;;  %v226_v8 = vshrl.u32 %v945_v1, 16 }
  0x15   : > { %v298_v9 = vrot.slane %v213_v4, 5  ;;  %v229_v10 = vshll.u32 %v945_v1, 16  ;;  %v235_v11 = vshll.u32 %v211_v2, 16  ;;  %v240_v12 = vshrl.u32 %v949_v3, 16  ;;  %v958_v13 = vld [vmem:[%s938_s28 + $0x10] sm:$0xf] }
  0x16   : > { %v295_v14 = vsel %vm940_vm2, %v719_v5, %v294_v6  ;;  %v228_v15 = vrot.slane %v226_v8, 4  ;;  %v243_v16 = vshll.u32 %v949_v3, 16  ;;  %v249_v17 = vshll.u32 %v213_v4, 16  ;;  %v215_v18 = vld [vmem:[%s938_s28 + $0x14] sm:$0x1] }
  0x17   : > { %v966_v19 = vsel %vm940_vm2, %v720_v7, %v298_v9  ;;  %v364_v20 = vunpack.c.l.b16 %v295_v14  ;;  %v231_v21 = vrot.slane %v229_v10, 5  ;;  %v237_v22 = vrot.slane %v235_v11, 5  ;;  %v969_v23 = vld [vmem:[%s938_s28 + $0x18] sm:$0xf]  ;;  %v217_v24 = vld [vmem:[%s938_s28 + $0x1c] sm:$0x1] }
  0x18   : > { %v365_v25 = vunpack.c.l.b16 %v966_v19  ;;  %v242_v26 = vrot.slane %v240_v12, 4  ;;  %v245_v27 = vrot.slane %v243_v16, 5  ;;  %v251_v28 = vrot.slane %v249_v17, 5  ;;  %v999_v50 = vld [vmem:[%s938_s28 + $0x20] sm:$0xf] }
  0x19   : > { %v232_v29 = vor.u32 %v231_v21, %v228_v15  ;;  %v721_v30 = vrot.slane %v958_v13, 9  ;;  %v302_v31 = vrot.slane %v215_v18, 5  ;;  %v722_v32 = vrot.slane %v969_v23, 9  ;;  %v219_v55 = vld [vmem:[%s938_s28 + $0x24] sm:$0x1] }
  0x1a   : > { %v368_v33 = vpack.c.b16 %v365_v25, %v364_v20  ;;  %v246_v35 = vor.u32 %v245_v27, %v242_v26  ;;  %v306_v36 = vrot.slane %v217_v24, 5  ;;  %v254_v37 = vshrl.u32 %v958_v13, 16  ;;  %v1015_v10 = vld [vmem:[%s938_s28 + $0x28] sm:$0xf] }
  0x1b   : > { %v233_v38 = vrot.slane %v232_v29, 4  ;;  %v986_v39 = vsel %vm940_vm2, %v721_v30, %v302_v31  ;;  %v257_v40 = vshll.u32 %v958_v13, 16  ;;  %v263_v41 = vshll.u32 %v215_v18, 16  ;;  %v221_v29 = vld [vmem:[%s938_s28 + $0x2c] sm:$0x1] }
  0x1c   : > { %370 = vrot.lane.b32.xlu1 %v368_v33, %s864_s29  ;;  %v247_v42 = vrot.slane %v246_v35, 4  ;;  %v992_v43 = vsel %vm940_vm2, %v722_v32, %v306_v36  ;;  %v366_v44 = vunpack.c.l.b16 %v986_v39  ;;  %v256_v45 = vrot.slane %v254_v37, 4 }
  0x1d   : > { %v238_v46 = vsel %vm979_vm5, %v233_v38, %v237_v22  ;;  %v367_v47 = vunpack.c.l.b16 %v992_v43  ;;  %v259_v48 = vrot.slane %v257_v40, 5  ;;  %v265_v49 = vrot.slane %v263_v41, 5  ;;  %v751_v43 = vld [vmem:[%s1115_s1 + $0x30] sm:$0xf] }
  0x1e   : > { %v252_v51 = vsel %vm979_vm5, %v247_v42, %v251_v28  ;;  %v354_v52 = vunpack.c.l.b16 %v238_v46  ;;  %v268_v53 = vshrl.u32 %v969_v23, 16  ;;  %v271_v54 = vshll.u32 %v969_v23, 16 }
  0x1f   : > { %v355_v56 = vunpack.c.l.b16 %v252_v51  ;;  %v1010_v57 = vpack.c.b16 %v367_v47, %v366_v44  ;;  %v260_v58 = vor.u32 %v259_v48, %v256_v45  ;;  %v277_v59 = vshll.u32 %v217_v24, 16 }
  0x20   : > { %v270_v60 = vrot.slane %v268_v53, 4  ;;  %v273_v61 = vrot.slane %v271_v54, 5  ;;  %v309_v62 = vshrl.u32 %v999_v50, 16  ;;  %v312_v63 = vshll.u32 %v999_v50, 16 }
  0x21   : > { %v358_v2 = vpack.c.b16 %v355_v56, %v354_v52  ;;  %v261_v4 = vrot.slane %v260_v58, 4  ;;  %v318_v5 = vshll.u32 %v219_v55, 16  ;;  %v279_v7 = vrot.slane %v277_v59, 5 }
  0x22   : > { %v274_v6 = vor.u32 %v273_v61, %v270_v60  ;;  %v311_v8 = vrot.slane %v309_v62, 4  ;;  %v314_v9 = vrot.slane %v312_v63, 5  ;;  %v350_v16 = vunpack.c.l.b16 %v958_v13  ;;  %v765_v60 = vld [vmem:[%s1115_s1 + $0x28] sm:$0xff]  ;;  %v763_v61 = vld [vmem:[%s1115_s1 + $0x18] sm:$0xff]  ;;  %v762_v62 = vld [vmem:[%s1115_s1 + $0x10] sm:$0xff] }
  0x23   : > { %360 = vrot.lane.b32.xlu0 %v358_v2, %s865_s30  ;;  %v266_v11 = vsel %vm979_vm5, %v261_v4, %v265_v49  ;;  %v320_v15 = vrot.slane %v318_v5, 5  ;;  %v349_v18 = vunpack.c.l.b16 %v949_v3  ;;  %v348_v20 = vunpack.c.l.b16 %v945_v1  ;;  %v761_v2 = vld [vmem:[%s1115_s1 + $0x8] sm:$0xff]  ;;  %v760_v4 = vld [vmem:[%s1115_s1] sm:$0xff] }
  0x24   : > { %372 = vrot.lane.b32.xlu1 %v1010_v57, %s864_s29  ;;  %v275_v12 = vrot.slane %v274_v6, 4  ;;  %v315_v14 = vor.u32 %v314_v9, %v311_v8  ;;  %v356_v17 = vunpack.c.l.b16 %v266_v11  ;;  %v329_v21 = vshrl.u32 %v1015_v10, 16 }
  0x25   : > { %v375_v27 = vpack.c.b16 %v350_v16, %v349_v18  ;;  %v1027_v28 = vpack.c.b16 %v349_v18, %v348_v20  ;;  %v332_v31 = vshll.u32 %v1015_v10, 16  ;;  %v374_v1 = vunpack.c.l.b16 %v999_v50 }
  0x26   : > { %v280_v22 = vsel %vm979_vm5, %v275_v12, %v279_v7  ;;  %v316_v24 = vrot.slane %v315_v14, 4  ;;  %v331_v13 = vrot.slane %v329_v21, 4  ;;  %v338_v35 = vshll.u32 %v221_v29, 16 }
  0x27   : > { %v357_v26 = vunpack.c.l.b16 %v280_v22  ;;  %377 = vrot.lane.b32.xlu2 %v375_v27, %s866_s4  ;;  %v334_v33 = vrot.slane %v332_v31, 5  ;;  %v351_v37 = vunpack.c.l.b16 %v969_v23  ;;  %v723_v38 = vrot.slane %v999_v50, 9 }
  0x28   : > { %v321_v30 = vsel %vm979_vm5, %v316_v24, %v320_v15  ;;  %v326_v40 = vrot.slane %v219_v55, 5  ;;  %v340_v46 = vrot.slane %v338_v35, 5  ;;  %v382_v48 = vpack.c.b16 %v356_v17, %v355_v56 }
  0x29   : > { %v359_v3 = vpack.c.b16 %v357_v26, %v356_v17  ;;  %v381_v32 = vunpack.c.l.b16 %v321_v30  ;;  %v335_v41 = vor.u32 %v334_v33, %v331_v13  ;;  %v376_v42 = vpack.c.b16 %v374_v1, %v351_v37 }
  0x2a   : > { %v327_v49 = vsel %vm940_vm2, %v723_v38, %v326_v40  ;;  %v1038_v51 = vpack.c.b16 %v351_v37, %v350_v16  ;;  %v389_v53 = vpack.c.b16 %v366_v44, %v365_v25  ;;  %v395_v34 = vunpack.c.l.b16 %v1015_v10  ;;  %v766_v44 = vld [vmem:[%s1115_s1 + $0x30] sm:$0x30] }
  0x2b   : > { %362 = vrot.lane.b32.xlu0 %v359_v3, %s865_s30  ;;  %v383_v36 = vpack.c.b16 %v381_v32, %v357_v26  ;;  %v336_v45 = vrot.slane %v335_v41, 4  ;;  %v388_v23 = vunpack.c.l.b16 %v327_v49  ;;  %v724_v56 = vrot.slane %v1015_v10, 9 }
  0x2c   : > { %v346_v58 = vrot.slane %v221_v29, 5  ;;  %v396_v59 = vpack.c.b16 %v395_v34, %v374_v1 }
  0x2d   : > { %386 = vrot.lane.b32.xlu1 %v383_v36, %s867_s5  ;;  %v341_v52 = vsel %vm979_vm5, %v336_v45, %v340_v46  ;;  %v390_v54 = vpack.c.b16 %v388_v23, %v367_v47  ;;  %v752_v47 = vor.u32 %v766_v44, %v751_v43 }
  0x2e   : > { %v401_v50 = vunpack.c.l.b16 %v341_v52  ;;  %v347_v19 = vsel %vm940_vm2, %v724_v56, %v346_v58 }
  0x2f   : > { %379 = vrot.lane.b32.xlu2 %v376_v42, %s866_s4  ;;  %v407_v25 = vunpack.c.l.b16 %v347_v19  ;;  %v517_v0 = vsel %vm515_vm6, %v752_v47, 0 }
  0x30   : > { %v402_v55 = vpack.c.b16 %v401_v50, %v381_v32  ;;  %520 = vmatpush.bf16.msra.mxu0 %v517_v0  ;;  %767 = vmatpush.bf16.msra.mxu1 %v517_v0 }
  0x31   : > { %v408_v39 = vpack.c.b16 %v407_v25, %v388_v23 }
  0x33   : > { %384 = vrot.lane.b32.xlu0 %v382_v48, %s867_s5 }
  0x34   : > { %521 = vmatpush.bf16.msra.mxu0 %v765_v60  ;;  %768 = vmatpush.bf16.msra.mxu1 %v765_v60 }
  0x35   : > { %397 = vrot.lane.b32.xlu1 %v1038_v51, %s868_s6 }
  0x37   : > { %391 = vrot.lane.b32.xlu2 %v389_v53, %s869_s7 }
  0x3b   : > { %393 = vrot.lane.b32.xlu0 %v390_v54, %s869_s7  ;;  %s712_s7 = sshll.u32 %s846_s12, 2 }
  0x3c   : > { %p194_p6 = scmp.lt.s32.totalorder %s712_s7, 7 }
  0x3d   : > { %405 = vrot.lane.b32.xlu1 %v402_v55, %s870_s8 }
  0x3e   : > { %s1135_s7 = smov (!%p194_p6, %s712_s7), 7 }
  0x3f   : > { %399 = vrot.lane.b32.xlu2 %v396_v59, %s868_s6 }
  0x43   : > { %403 = vrot.lane.b32.xlu0 %v359_v3, %s870_s8  ;;  %s713_s8 = sshll.u32 %s1133_s13, 3 }
  0x47   : > { %409 = vrot.lane.b32.xlu2 %v1010_v57, %s871_s9  ;;  %v764_v57 = vld [vmem:[%s1115_s1 + $0x20] sm:$0xff] }
  0x48   : > { %522 = vmatpush.bf16.msra.mxu0 %v764_v57  ;;  %769 = vmatpush.bf16.msra.mxu1 %v764_v57 }
  0x4b   : > { %411 = vrot.lane.b32.xlu0 %v408_v39, %s871_s9  ;;  %s197_s9 = sadd.s32 %s713_s8, %s1135_s7 }
  0x4c   : > { %523 = vmatpush.bf16.msra.mxu0 %v763_v61  ;;  %770 = vmatpush.bf16.msra.mxu1 %v763_v61  ;;  %s714_s10 = sshll.u32 %s197_s9, 2 }
  0x4d   : > { %s199_s20 = scalar_lea.vmem %s1116_s2, %s714_s10 }
  0x50   : > { %524 = vmatpush.bf16.msra.mxu0 %v762_v62  ;;  %771 = vmatpush.bf16.msra.mxu1 %v762_v62 }
  0x54   : > { %525 = vmatpush.bf16.msra.mxu0 %v761_v2  ;;  %772 = vmatpush.bf16.msra.mxu1 %v761_v2 }
  0x58   : > { %526 = vmatpush.bf16.msra.mxu0 %v760_v4  ;;  %773 = vmatpush.bf16.msra.mxu1 %v760_v4 }
  0x81   : > { %v378_v63 = vpop.permute.xlu2 %377 }
  0x89   : > { %v380_v7 = vpop.permute.xlu2 %379 }
  0x8e   : > { %v371_v5 = vpop.permute.xlu1 %370 }
  0x91   : > { %v392_v10 = vpop.permute.xlu2 %391 }
  0x95   : > { %v361_v6 = vpop.permute.xlu0 %360 }
  0x96   : > { %v373_v8 = vpop.permute.xlu1 %372  ;;  %v416_v14 = vsel %vm413_vm7, %v1027_v28, %v361_v6 }
  0x97   : > { %v422_v16 = vsel %vm420_vm8, %v416_v14, %v371_v5 }
  0x98   : > { %v427_v20 = vsel %vm425_vm9, %v422_v16, %v378_v63 }
  0x99   : > { %v400_v15 = vpop.permute.xlu2 %399 }
  0x9d   : > { %v363_v9 = vpop.permute.xlu0 %362 }
  0x9e   : > { %v419_v17 = vsel %vm413_vm7, %v1038_v51, %v363_v9 }
  0x9f   : > { %v387_v12 = vpop.permute.xlu1 %386  ;;  %v424_v22 = vsel %vm420_vm8, %v419_v17, %v373_v8 }
  0xa0   : > { %v429_v27 = vsel %vm425_vm9, %v424_v22, %v380_v7 }
  0xa1   : > { %v410_v29 = vpop.permute.xlu2 %409  ;;  %v434_v13 = vsel %vm430_vm10, %v429_v27, %v387_v12 }
  0xa5   : > { %v385_v11 = vpop.permute.xlu0 %384 }
  0xa6   : > { %v432_v21 = vsel %vm430_vm10, %v427_v20, %v385_v11 }
  0xa7   : > { %v398_v24 = vpop.permute.xlu1 %397  ;;  %v437_v26 = vsel %vm435_vm11, %v432_v21, %v392_v10 }
  0xa8   : > { %v442_v28 = vsel %vm440_vm12, %v437_v26, %v398_v24 }
  0xad   : > { %v394_v18 = vpop.permute.xlu0 %393 }
  0xae   : > { %v439_v3 = vsel %vm435_vm11, %v434_v13, %v394_v18 }
  0xaf   : > { %v444_v1 = vsel %vm440_vm12, %v439_v3, %v400_v15  ;;  %v406_v33 = vpop.permute.xlu1 %405 }
  0xb0   : > { %v449_v35 = vsel %vm445_vm14, %v444_v1, %v406_v33 }
  0xb5   : > { %v404_v30 = vpop.permute.xlu0 %403 }
  0xb6   : > { %v447_v31 = vsel %vm445_vm14, %v442_v28, %v404_v30 }
  0xb7   : > { %v452_v32 = vsel %vm450_vm13, %v447_v31, %v410_v29 }
  0xb8   : > { %753 = vmatmul.msk.bf16.vlgmr.msra.gmra.mxu0 %vm510_vm15, %v452_v32 }
  0xbd   : > { %v412_v36 = vpop.permute.xlu0 %411 }
  0xbe   : > { %v454_v37 = vsel %vm450_vm13, %v449_v35, %v412_v36 }
  0xbf   : > { %754 = vmatmul.msk.bf16.vlgmr.msra.gmra.mxu1 %vm510_vm15, %v454_v37 }
 0x135   : > { %v528_v38 = vpop.f32.mrf.mxu0 }
 0x136   : > { %v538_v40 = vpack.c.bf16 %v528_v38, %v528_v38 }
 0x138   : > { %543 = vst.msk [vmem:[%s199_s20] sm:$0xf] %vm542_vm0, %v538_v40 }
 0x13c   : > { %v533_v41 = vpop.f32.mrf.mxu1 }
 0x13d   : > { %v540_v42 = vpack.c.bf16 %v533_v41, %v533_v41  ;;  %v530_v45 = vpop.f32.mrf.mxu0 }
 0x13e   : > { %v539_v46 = vpack.c.bf16 %v530_v45, %v530_v45 }
 0x13f   : > { %545 = vst.msk [vmem:[%s199_s20 + $0x8] sm:$0xf] %vm542_vm0, %v540_v42 }
 0x140   : > { %544 = vst.msk [vmem:[%s199_s20 + $0x4] sm:$0xf] %vm542_vm0, %v539_v46 }
 0x143   : > { %550 = sbr.rel (%p755_p7) target bundleno = 330 (0x14a), region = 32 }
 0x144   : > { %v535_v48 = vpop.f32.mrf.mxu1 }
 0x145   : > { %v541_v49 = vpack.c.bf16 %v535_v48, %v535_v48 }
 0x147   : > { %546 = vst.msk [vmem:[%s199_s20 + $0xc] sm:$0xf] %vm542_vm0, %v541_v49 }
 0x148   : > { %vm551_vm1 = vcmask 91136   ;;  %v872_v51 = vmov 0.0  }
 0x149   : > { %552 = vst.msk [vmem:[%s933_s24] sm:$0x3] %vm551_vm1, %v872_v51 }
 0x14a PF: > { %v554_v52 = vsel %vm413_vm7, %v528_v38, 0.0  ;;  %v555_v23 = vsel %vm413_vm7, %v530_v45, 0.0  ;;  %v557_v50 = vsel %vm413_vm7, %v533_v41, 0.0  ;;  %v567_v54 = vmul.f32 %v528_v38, %v528_v38 }
 0x14b   : > { %v556_v53 = vadd.f32 %v555_v23, %v554_v52  ;;  %v568_v55 = vmul.f32 %v530_v45, %v530_v45  ;;  %v569_v34 = vmul.f32 %v533_v41, %v533_v41  ;;  %v559_v56 = vsel %vm413_vm7, %v535_v48, 0.0 }
 0x14c   : > { %v570_v58 = vmul.f32 %v535_v48, %v535_v48  ;;  %v571_v19 = vsel %vm413_vm7, %v567_v54, 0.0  ;;  %vm584_vm2 = vcmask 1040384   ;;  %vm587_vm3 = vcmask 91136  }
 0x14d   : > { %v558_v59 = vadd.f32 %v557_v50, %v556_v53  ;;  %v572_v25 = vsel %vm413_vm7, %v568_v55, 0.0  ;;  %v574_v39 = vsel %vm413_vm7, %v569_v34, 0.0 }
 0x14e   : > { %v573_v43 = vadd.f32 %v572_v25, %v571_v19  ;;  %v576_v47 = vsel %vm413_vm7, %v570_v58, 0.0 }
 0x14f   : > { %v560_v44 = vadd.f32 %v559_v56, %v558_v59 }
 0x150   : > { %v575_v0 = vadd.f32 %v574_v39, %v573_v43  ;;  %v553_v10 = vld [vmem:[%s933_s24] sm:$0x3] }
 0x151   : > { %v561_v60 = vrot.slane %v560_v44, 4 }
 0x152   : > { %v577_v57 = vadd.f32 %v576_v47, %v575_v0 }
 0x153   : > { %v562_v61 = vadd.f32 %v561_v60, %v560_v44 }
 0x154   : > { %v578_v62 = vrot.slane %v577_v57, 4 }
 0x155   : > { %v563_v63 = vrot.slane %v562_v61, 2 }
 0x156   : > { %v579_v2 = vadd.f32 %v578_v62, %v577_v57 }
 0x157   : > { %v564_v4 = vadd.f32 %v563_v63, %v562_v61 }
 0x158   : > { %v580_v5 = vrot.slane %v579_v2, 2 }
 0x159   : > { %v565_v6 = vrot.slane %v564_v4, 1 }
 0x15a   : > { %v581_v7 = vadd.f32 %v580_v5, %v579_v2 }
 0x15b   : > { %v566_v8 = vadd.f32 %v565_v6, %v564_v4 }
 0x15c   : > { %v582_v9 = vrot.slane %v581_v7, 1 }
 0x15e   : > { %v583_v11 = vadd.f32 %v582_v9, %v581_v7 }
 0x160   : > { %v585_v12 = vsel %vm584_vm2, %v566_v8, %v583_v11 }
 0x161   : > { %v586_v14 = vadd.f32 %v585_v12, %v553_v10 }
 0x163   : > { %588 = vst.msk [vmem:[%s933_s24] sm:$0x3] %vm587_vm3, %v586_v14 }
 0x164 PF: > { %s14_s16 = sadd.s32 1, %s862_s16   ;;  %s1122_s12 = smov %s854_s14 }
 0x165   : > { %p11_p8 = scmp.ge.s32.totalorder %s14_s16, 6   ;;  %s1123_s13 = smov %s858_s15 }
 0x166   : > { %s1124_s14 = smov %s1127_s17  ;;  %s1125_s15 = smov %s1131_s18 }
 0x167   :  { %13 = sbr.rel (!%p11_p8) target bundleno = 3 (0x3), region = 75 }

// kernel: dcm_next_stage_forward.25
= control target key start
LH: loop header
LB: loop body
LE: loop exit
PB: predicated region body
PF: predicated region fallthrough
CT: control target
= control target key end

     0   :  { %s581_s9 = smov 0   ;;  %s583_s10 = smov 0   ;;  %s687_s0 = inlined_call_operand.vmem [shape: bf16[2,64,8], index: 0, kind: input, shape index: {}]   ;;  %s688_s1 = inlined_call_operand.vmem [shape: f32[2,2,8], index: 1, kind: input, shape index: {}]   ;;  %s689_s2 = inlined_call_operand.vmem [shape: f32[2,64,4], index: 2, kind: output, shape index: {}]  }
   0x1   :  { %s585_s11 = smov 0   ;;  %s587_s12 = smov 0  }
   0x2   :  { %s589_s13 = smov 0  }
   0x3 LB: > { %s21_s14 = sadd.s32 1, %s555_s11  ;;  %s24_s15 = sadd.s32 1, %s559_s12  ;;  %s563_s13 = sphi %s589_s13, %s12_s13   ;;  %s559_s12 = sphi %s587_s12, %s703_s12   ;;  %s555_s11 = sphi %s585_s11, %s702_s11   ;;  %s551_s10 = sphi %s583_s10, %s701_s10   ;;  %s547_s9 = sphi %s581_s9, %s700_s9  }
   0x4   : > { %p22_p0 = scmp.ge.s32.totalorder %s21_s14, 2  ;;  %p443_p1 = scmp.ge.s32.totalorder %s563_s13, 1 }
   0x5   : > { %p142_p2 = scmp.lt.s32.totalorder %s563_s13, 5 }
   0x6   : > { %s705_s14 = smov (%p22_p0, %s21_s14), 0  ;;  %s707_s15 = smov (!%p22_p0, %s24_s15), %s559_s12 }
   0x7   : > { %p143_p3 = pnand %p443_p1, %p142_p2  ;;  %p26_p4 = scmp.ge.s32.totalorder %s707_s15, 2 }
   0x8   : > { %p177_p5 = scmp.lt.s32.totalorder (!%p143_p3), %s551_s10, 1  ;;  %s444_s17 = sshll.u32 (!%p143_p3), %s547_s9, 2 }
   0x9   : > { %s709_s15 = smov (%p26_p4, %s707_s15), 0  ;;  %146 = sbr.rel (%p143_p3) target bundleno = 205 (0xcd), region = 28 }
   0xa   : > { %p179_p6 = scmp.lt.s32.totalorder (!%p143_p3), %s444_s17, 7  ;;  %s565_s27 = smov (!%p143_p3), 124  }
   0xe   : > { %s711_s10 = smov (!%p177_p5, %s551_s10), 1  ;;  %s713_s17 = smov (!%p179_p6, %s444_s17), 7 }
   0xf   : > { %s447_s16 = sshll.u32 %s711_s10, 1  ;;  %s445_s21 = sshll.u32 %s711_s10, 3 }
  0x10   : > { %s189_s20 = scalar_lea.vmem %s688_s1, %s447_s16  ;;  %s614_s22 = sadd.s32 %s445_s21, %s713_s17 }
  0x11   : > { %v208_v0 = vld [vmem:[%s189_s20] sm:$0x1]  ;;  %v210_v1 = vld [vmem:[%s189_s20 + $0x1] sm:$0x1]  ;;  %s446_s23 = sshll.u32 %s614_s22, 2  ;;  %s450_s28 = sshll.u32 %s614_s22, 3 }
  0x12   : > { %v209_v2 = vmul.f32 0.015625, %v208_v0  ;;  %v211_v3 = vmul.f32 0.015625, %v210_v1  ;;  %s184_s26 = scalar_lea.vmem %s687_s0, %s446_s23  ;;  %s198_s3 = scalar_lea.vmem %s689_s2, %s450_s28 }
  0x13   : > { %v465_v10 = vld [vmem:[%s184_s26 + $0x8] sm:$0xff]   ;;  %v458_v12 = vld [vmem:[%s184_s26] sm:$0xff]  }
  0x14   : > { %v212_v4 = vmul.f32 %v209_v2, %v209_v2  ;;  %v463_v13 = vunpack.c.l.bf16 %v465_v10  ;;  %v215_v15 = vperm.slane %v209_v2, 0  ;;  %v459_v16 = vunpack.c.l.bf16 %v458_v12 }
  0x15   : > { %v464_v17 = vunpack.c.h.bf16 %v465_v10  ;;  %v460_v18 = vunpack.c.h.bf16 %v458_v12 }
  0x16   : > { %v213_v5 = vsub.f32 %v211_v3, %v212_v4  ;;  %v218_v21 = vsub.f32 %v463_v13, %v215_v15  ;;  %v216_v22 = vsub.f32 %v459_v16, %v215_v15 }
  0x17   : > { %v219_v23 = vsub.f32 %v464_v17, %v215_v15  ;;  %v217_v24 = vsub.f32 %v460_v18, %v215_v15 }
  0x18   : > { %v214_v6 = vmax.f32 %v213_v5, 0.0 }
  0x1a   : > { %v220_v7 = vadd.f32 1e-05, %v214_v6 }
  0x1c   : > { %507 = vrsqrt.f32 %v220_v7  ;;  %vm227_vm0 = vweird.f32 %v220_v7 }
  0x22   : > { %v508_v8 = vpop.eup %507 }
  0x23   : > { %v222_v9 = vmul.f32 %v508_v8, %v220_v7  ;;  %vm228_vm1 = vweird.f32 %v508_v8 }
  0x24   : > { %vm229_vm2 = vmor %vm227_vm0, %vm228_vm1 }
  0x25   : > { %v223_v11 = vmul.f32 %v508_v8, %v222_v9 }
  0x27   : > { %v224_v14 = vmul.f32 0.5, %v223_v11 }
  0x29   : > { %v225_v19 = vsub.f32 1.5, %v224_v14 }
  0x2b   : > { %v226_v20 = vmul.f32 %v508_v8, %v225_v19 }
  0x2d   : > { %v230_v25 = vsel %vm229_vm2, %v508_v8, %v226_v20 }
  0x2e   : > { %v231_v26 = vperm.slane %v230_v25, 0 }
  0x30   : > { %v620_v27 = vmul.f32 %v231_v26, %v218_v21  ;;  %v622_v28 = vmul.f32 %v231_v26, %v216_v22  ;;  %v624_v29 = vmul.f32 %v231_v26, %v219_v23  ;;  %v626_v30 = vmul.f32 %v231_v26, %v217_v24 }
  0x32   : > { %v453_v31 = vmul.f32 -1.442695, %v620_v27  ;;  %v451_v32 = vmul.f32 -1.442695, %v622_v28  ;;  %v454_v33 = vmul.f32 -1.442695, %v624_v29 }
  0x33   : > { %v452_v34 = vmul.f32 -1.442695, %v626_v30 }
  0x34   : > { %509 = vpow2.f32 %v453_v31 }
  0x35   : > { %511 = vpow2.f32 %v451_v32 }
  0x36   : > { %513 = vpow2.f32 %v454_v33 }
  0x37   : > { %515 = vpow2.f32 %v452_v34 }
  0x3a   : > { %v510_v35 = vpop.eup %509 }
  0x3b   : > { %v512_v36 = vpop.eup %511  ;;  %v250_v37 = vadd.f32 1.0, %v510_v35 }
  0x3c   : > { %v514_v38 = vpop.eup %513  ;;  %v248_v39 = vadd.f32 1.0, %v512_v36 }
  0x3d   : > { %v516_v40 = vpop.eup %515  ;;  %517 = vrcp.f32 %v250_v37  ;;  %v251_v41 = vadd.f32 1.0, %v514_v38  ;;  %v291_v44 = vand.u32 2147483647, %v250_v37  ;;  %v293_v47 = vand.u32 2147483648, %v250_v37 }
  0x3e   : > { %519 = vrcp.f32 %v248_v39  ;;  %v249_v42 = vadd.f32 1.0, %v516_v40  ;;  %v261_v48 = vand.u32 2147483647, %v248_v39  ;;  %v263_v50 = vand.u32 2147483648, %v248_v39 }
  0x3f   : > { %521 = vrcp.f32 %v251_v41  ;;  %vm287_vm3 = vweird.f32 %v250_v37  ;;  %vm632_vm5 = vcmp.eq.f32.partialorder %v291_v44, 8.507059e+37  ;;  %vm257_vm6 = vweird.f32 %v248_v39 }
  0x40   : > { %523 = vrcp.f32 %v249_v42  ;;  %v294_v57 = vor.u32 1.1754944e-38, %v293_v47  ;;  %vm636_vm8 = vcmp.eq.f32.partialorder %v261_v48, 8.507059e+37  ;;  %v264_v62 = vor.u32 1.1754944e-38, %v263_v50 }
  0x41   : > { %vm302_vm10 = vweird.f32 %v251_v41  ;;  %v308_v3 = vand.u32 2147483648, %v251_v41  ;;  %vm272_vm13 = vweird.f32 %v249_v42  ;;  %v306_v8 = vand.u32 2147483647, %v251_v41 }
  0x42   : > { %v278_v9 = vand.u32 2147483648, %v249_v42  ;;  %v276_v14 = vand.u32 2147483647, %v249_v42 }
  0x43   : > { %v518_v43 = vpop.eup %517  ;;  %v309_v17 = vor.u32 1.1754944e-38, %v308_v3  ;;  %vm307_vm1 = vcmp.eq.f32.partialorder %v306_v8, 8.507059e+37 }
  0x44   : > { %v520_v45 = vpop.eup %519  ;;  %v283_v46 = vmul.f32 %v518_v43, %v250_v37  ;;  %vm288_vm4 = vweird.f32 %v518_v43  ;;  %v279_v20 = vor.u32 1.1754944e-38, %v278_v9  ;;  %vm277_vm2 = vcmp.eq.f32.partialorder %v276_v14, 8.507059e+37 }
  0x45   : > { %v253_v49 = vmul.f32 %v520_v45, %v248_v39  ;;  %v522_v52 = vpop.eup %521  ;;  %vm258_vm7 = vweird.f32 %v520_v45  ;;  %vm640_vm9 = vmor %vm287_vm3, %vm288_vm4  ;;  %vm332_vm3 = vcmask 31744  }
  0x46   : > { %v284_v51 = vsub.f32 1.0, %v283_v46  ;;  %v524_v55 = vpop.eup %523  ;;  %v298_v59 = vmul.f32 %v522_v52, %v251_v41  ;;  %vm644_vm11 = vmor %vm257_vm6, %vm258_vm7  ;;  %vm303_vm12 = vweird.f32 %v522_v52 }
  0x47   : > { %v254_v54 = vsub.f32 1.0, %v253_v49  ;;  %v268_v63 = vmul.f32 %v524_v55, %v249_v42  ;;  %vm273_vm14 = vweird.f32 %v524_v55  ;;  %vm655_vm15 = vmor %vm302_vm10, %vm303_vm12 }
  0x48   : > { %v285_v56 = vmul.f32 %v518_v43, %v284_v51  ;;  %v299_v2 = vsub.f32 1.0, %v298_v59  ;;  %vm274_vm0 = vmor %vm272_vm13, %vm273_vm14 }
  0x49   : > { %v255_v61 = vmul.f32 %v520_v45, %v254_v54  ;;  %v269_v5 = vsub.f32 1.0, %v268_v63 }
  0x4a   : > { %v286_v0 = vadd.f32 %v518_v43, %v285_v56  ;;  %v300_v7 = vmul.f32 %v522_v52, %v299_v2 }
  0x4b   : > { %v256_v4 = vadd.f32 %v520_v45, %v255_v61  ;;  %v270_v13 = vmul.f32 %v524_v55, %v269_v5 }
  0x4c   : > { %v290_v6 = vsel %vm640_vm9, %v518_v43, %v286_v0  ;;  %v301_v16 = vadd.f32 %v522_v52, %v300_v7 }
  0x4d   : > { %v295_v10 = vsel %vm632_vm5, %v294_v57, %v290_v6  ;;  %v260_v11 = vsel %vm644_vm11, %v520_v45, %v256_v4  ;;  %v271_v18 = vadd.f32 %v524_v55, %v270_v13 }
  0x4e   : > { %320 = vrot.lane.b32.xlu1 %v295_v10, %s565_s27  ;;  %v265_v15 = vsel %vm636_vm8, %v264_v62, %v260_v11  ;;  %v305_v19 = vsel %vm655_vm15, %v522_v52, %v301_v16 }
  0x4f   : > { %316 = vrot.lane.b32.xlu0 %v265_v15, %s565_s27  ;;  %v275_v21 = vsel %vm274_vm0, %v524_v55, %v271_v18  ;;  %v310_v22 = vsel %vm307_vm1, %v309_v17, %v305_v19 }
  0x50   : > { %v280_v23 = vsel %vm277_vm2, %v279_v20, %v275_v21 }
  0x56   : > { %322 = vrot.lane.b32.xlu1 %v310_v22, %s565_s27 }
  0x57   : > { %318 = vrot.lane.b32.xlu0 %v280_v23, %s565_s27 }
  0xc0   : > { %v321_v24 = vpop.permute.xlu1 %320 }
  0xc1   : > { %v330_v25 = vmul.f32 %v321_v24, %v620_v27  ;;  %v317_v26 = vpop.permute.xlu0 %316 }
  0xc2   : > { %v328_v31 = vmul.f32 %v317_v26, %v622_v28 }
  0xc3   : > { %335 = vst.msk [vmem:[%s198_s3 + $0x10] sm:$0xff] %vm332_vm3, %v330_v25 }
  0xc4   : > { %333 = vst.msk [vmem:[%s198_s3] sm:$0xff] %vm332_vm3, %v328_v31 }
  0xc8   : > { %v323_v32 = vpop.permute.xlu1 %322 }
  0xc9   : > { %v331_v33 = vmul.f32 %v323_v32, %v624_v29  ;;  %v319_v34 = vpop.permute.xlu0 %318 }
  0xca   : > { %v329_v35 = vmul.f32 %v319_v34, %v626_v30 }
  0xcb   : > { %336 = vst.msk [vmem:[%s198_s3 + $0x18] sm:$0xff] %vm332_vm3, %v331_v33 }
  0xcc   : > { %334 = vst.msk [vmem:[%s198_s3 + $0x8] sm:$0xff] %vm332_vm3, %v329_v35 }
  0xcd PF: > { %s12_s13 = sadd.s32 1, %s563_s13   ;;  %s700_s9 = smov %s555_s11 }
  0xce   : > { %p9_p7 = scmp.ge.s32.totalorder %s12_s13, 6   ;;  %s701_s10 = smov %s559_s12 }
  0xcf   : > { %s702_s11 = smov %s705_s14  ;;  %s703_s12 = smov %s709_s15 }
  0xd0   :  { %11 = sbr.rel (!%p9_p7) target bundleno = 3 (0x3), region = 61 }

// kernel: dcm_next_stage_forward.24
= control target key start
LH: loop header
LB: loop body
LE: loop exit
PB: predicated region body
PF: predicated region fallthrough
CT: control target
= control target key end

     0   :  { %s894_s12 = smov 0   ;;  %s896_s13 = smov 0   ;;  %s1105_s0 = inlined_call_operand.vmem [shape: bf16[2,10,10,12], index: 0, kind: input, shape index: {}]   ;;  %s1106_s1 = inlined_call_operand.vmem [shape: bf16[108,8], index: 1, kind: input, shape index: {}]   ;;  %s1107_s2 = inlined_call_operand.vmem [shape: bf16[2,64,8], index: 2, kind: output, shape index: {0}]   ;;  %s1108_s3 = inlined_call_operand.vmem [shape: f32[2,2,8], index: 3, kind: output, shape index: {1}]  }
   0x1   :  { %s898_s14 = smov 0   ;;  %s900_s15 = smov 0  }
   0x2   :  { %s902_s16 = smov 0  }
   0x3 LB: > { %s23_s17 = sadd.s32 1, %s855_s14  ;;  %s26_s18 = sadd.s32 1, %s859_s15  ;;  %s863_s16 = sphi %s902_s16, %s14_s16   ;;  %s859_s15 = sphi %s900_s15, %s1116_s15   ;;  %s855_s14 = sphi %s898_s14, %s1115_s14   ;;  %s851_s13 = sphi %s896_s13, %s1114_s13   ;;  %s847_s12 = sphi %s894_s12, %s1113_s12  }
   0x4   : > { %p24_p0 = scmp.ge.s32.totalorder %s23_s17, 2  ;;  %p711_p1 = scmp.ge.s32.totalorder %s863_s16, 1 }
   0x5   : > { %p154_p2 = scmp.lt.s32.totalorder %s863_s16, 5 }
   0x6   : > { %s1118_s17 = smov (%p24_p0, %s23_s17), 0  ;;  %s1120_s18 = smov (!%p24_p0, %s26_s18), %s859_s15 }
   0x7   : > { %p155_p3 = pnand %p711_p1, %p154_p2  ;;  %p28_p4 = scmp.ge.s32.totalorder %s1120_s18, 2 }
   0x8   : > { %p186_p5 = scmp.lt.s32.totalorder (!%p155_p3), %s851_s13, 1  ;;  %s760_s19 = sshll.u32 (!%p155_p3), %s847_s12, 5 }
   0x9   : > { %s1122_s18 = smov (%p28_p4, %s1120_s18), 0  ;;  %158 = sbr.rel (%p155_p3) target bundleno = 355 (0x163), region = 28 }
   0xa   : > { %s865_s29 = smov (!%p155_p3), 24   ;;  %s866_s30 = smov (!%p155_p3), 12  }
   0xb   : > { %s867_s4 = smov (!%p155_p3), 36   ;;  %s868_s5 = smov (!%p155_p3), 48  }
   0xc   : > { %s869_s6 = smov (!%p155_p3), 72   ;;  %s870_s7 = smov (!%p155_p3), 60  }
   0xd   : > { %s871_s8 = smov (!%p155_p3), 84   ;;  %s872_s9 = smov (!%p155_p3), 96  }
   0xe   : > { %s1124_s13 = smov (!%p186_p5, %s851_s13), 1  ;;  %vm289_vm0 = vcmask 1042432   ;;  %vm290_vm1 = vcmask 1046532   ;;  %vm222_vm3 = vsmask.f32 3328  ;;  %vm515_vm6 = vcmask 1045504  }
   0xf   : > { %s775_s20 = smul.u32 80, %s1124_s13  ;;  %s716_s21 = sshll.u32 %s1124_s13, 1  ;;  %vm941_vm2 = vmor %vm289_vm0, %vm290_vm1  ;;  %vm223_vm4 = vsmask.f32 7440  ;;  %vm413_vm7 = vcmask 97280   ;;  %vm420_vm8 = vcmask 195584  }
  0x10   : > { %s934_s24 = scalar_lea.vmem %s1108_s3, %s716_s21  ;;  %vm980_vm5 = vmor %vm222_vm3, %vm223_vm4  ;;  %vm425_vm9 = vcmask 293888   ;;  %vm430_vm10 = vcmask 392192   ;;  %vm435_vm11 = vcmask 490496   ;;  %vm440_vm12 = vcmask 588800   ;;  %p756_p7 = scmp.ne.s32.totalorder %s847_s12, 0 }
  0x11   : > { %s190_s27 = scalar_lea.vmem %s1105_s0, %s775_s20  ;;  %vm450_vm13 = vcmask 785408   ;;  %vm445_vm14 = vcmask 687104   ;;  %vm510_vm15 = vcmask 883712   ;;  %vm542_vm0 = vcmask 60416  }
  0x12   : > { %s939_s28 = scalar_lea.vmem %s190_s27, %s760_s19 }
  0x13   : > { %v946_v1 = vld [vmem:[%s939_s28] sm:$0xf]  ;;  %v211_v2 = vld [vmem:[%s939_s28 + $0x4] sm:$0x1]  ;;  %v950_v3 = vld [vmem:[%s939_s28 + $0x8] sm:$0xf] }
  0x14   : > { %v213_v4 = vld [vmem:[%s939_s28 + $0xc] sm:$0x1]  ;;  %v720_v5 = vrot.slane %v946_v1, 9  ;;  %v294_v6 = vrot.slane %v211_v2, 5  ;;  %v721_v7 = vrot.slane %v950_v3, 9  ;;  %v226_v8 = vshrl.u32 %v946_v1, 16 }
  0x15   : > { %v298_v9 = vrot.slane %v213_v4, 5  ;;  %v229_v10 = vshll.u32 %v946_v1, 16  ;;  %v235_v11 = vshll.u32 %v211_v2, 16  ;;  %v240_v12 = vshrl.u32 %v950_v3, 16  ;;  %v959_v13 = vld [vmem:[%s939_s28 + $0x10] sm:$0xf] }
  0x16   : > { %v295_v14 = vsel %vm941_vm2, %v720_v5, %v294_v6  ;;  %v228_v15 = vrot.slane %v226_v8, 4  ;;  %v243_v16 = vshll.u32 %v950_v3, 16  ;;  %v249_v17 = vshll.u32 %v213_v4, 16  ;;  %v215_v18 = vld [vmem:[%s939_s28 + $0x14] sm:$0x1] }
  0x17   : > { %v967_v19 = vsel %vm941_vm2, %v721_v7, %v298_v9  ;;  %v364_v20 = vunpack.c.l.b16 %v295_v14  ;;  %v231_v21 = vrot.slane %v229_v10, 5  ;;  %v237_v22 = vrot.slane %v235_v11, 5  ;;  %v970_v23 = vld [vmem:[%s939_s28 + $0x18] sm:$0xf]  ;;  %v217_v24 = vld [vmem:[%s939_s28 + $0x1c] sm:$0x1] }
  0x18   : > { %v365_v25 = vunpack.c.l.b16 %v967_v19  ;;  %v242_v26 = vrot.slane %v240_v12, 4  ;;  %v245_v27 = vrot.slane %v243_v16, 5  ;;  %v251_v28 = vrot.slane %v249_v17, 5  ;;  %v1000_v50 = vld [vmem:[%s939_s28 + $0x20] sm:$0xf] }
  0x19   : > { %v232_v29 = vor.u32 %v231_v21, %v228_v15  ;;  %v722_v30 = vrot.slane %v959_v13, 9  ;;  %v302_v31 = vrot.slane %v215_v18, 5  ;;  %v723_v32 = vrot.slane %v970_v23, 9  ;;  %v219_v55 = vld [vmem:[%s939_s28 + $0x24] sm:$0x1] }
  0x1a   : > { %v368_v33 = vpack.c.b16 %v365_v25, %v364_v20  ;;  %v246_v35 = vor.u32 %v245_v27, %v242_v26  ;;  %v306_v36 = vrot.slane %v217_v24, 5  ;;  %v254_v37 = vshrl.u32 %v959_v13, 16  ;;  %v1016_v10 = vld [vmem:[%s939_s28 + $0x28] sm:$0xf] }
  0x1b   : > { %v233_v38 = vrot.slane %v232_v29, 4  ;;  %v987_v39 = vsel %vm941_vm2, %v722_v30, %v302_v31  ;;  %v257_v40 = vshll.u32 %v959_v13, 16  ;;  %v263_v41 = vshll.u32 %v215_v18, 16  ;;  %v221_v29 = vld [vmem:[%s939_s28 + $0x2c] sm:$0x1] }
  0x1c   : > { %370 = vrot.lane.b32.xlu1 %v368_v33, %s865_s29  ;;  %v247_v42 = vrot.slane %v246_v35, 4  ;;  %v993_v43 = vsel %vm941_vm2, %v723_v32, %v306_v36  ;;  %v366_v44 = vunpack.c.l.b16 %v987_v39  ;;  %v256_v45 = vrot.slane %v254_v37, 4 }
  0x1d   : > { %v238_v46 = vsel %vm980_vm5, %v233_v38, %v237_v22  ;;  %v367_v47 = vunpack.c.l.b16 %v993_v43  ;;  %v259_v48 = vrot.slane %v257_v40, 5  ;;  %v265_v49 = vrot.slane %v263_v41, 5  ;;  %v752_v43 = vld [vmem:[%s1106_s1 + $0x30] sm:$0xf] }
  0x1e   : > { %v252_v51 = vsel %vm980_vm5, %v247_v42, %v251_v28  ;;  %v354_v52 = vunpack.c.l.b16 %v238_v46  ;;  %v268_v53 = vshrl.u32 %v970_v23, 16  ;;  %v271_v54 = vshll.u32 %v970_v23, 16 }
  0x1f   : > { %v355_v56 = vunpack.c.l.b16 %v252_v51  ;;  %v1011_v57 = vpack.c.b16 %v367_v47, %v366_v44  ;;  %v260_v58 = vor.u32 %v259_v48, %v256_v45  ;;  %v277_v59 = vshll.u32 %v217_v24, 16 }
  0x20   : > { %v270_v60 = vrot.slane %v268_v53, 4  ;;  %v273_v61 = vrot.slane %v271_v54, 5  ;;  %v309_v62 = vshrl.u32 %v1000_v50, 16  ;;  %v312_v63 = vshll.u32 %v1000_v50, 16 }
  0x21   : > { %v358_v2 = vpack.c.b16 %v355_v56, %v354_v52  ;;  %v261_v4 = vrot.slane %v260_v58, 4  ;;  %v318_v5 = vshll.u32 %v219_v55, 16  ;;  %v279_v7 = vrot.slane %v277_v59, 5 }
  0x22   : > { %v274_v6 = vor.u32 %v273_v61, %v270_v60  ;;  %v311_v8 = vrot.slane %v309_v62, 4  ;;  %v314_v9 = vrot.slane %v312_v63, 5  ;;  %v350_v16 = vunpack.c.l.b16 %v959_v13  ;;  %v766_v60 = vld [vmem:[%s1106_s1 + $0x28] sm:$0xff]  ;;  %v764_v61 = vld [vmem:[%s1106_s1 + $0x18] sm:$0xff]  ;;  %v763_v62 = vld [vmem:[%s1106_s1 + $0x10] sm:$0xff] }
  0x23   : > { %360 = vrot.lane.b32.xlu0 %v358_v2, %s866_s30  ;;  %v266_v11 = vsel %vm980_vm5, %v261_v4, %v265_v49  ;;  %v320_v15 = vrot.slane %v318_v5, 5  ;;  %v349_v18 = vunpack.c.l.b16 %v950_v3  ;;  %v348_v20 = vunpack.c.l.b16 %v946_v1  ;;  %v762_v2 = vld [vmem:[%s1106_s1 + $0x8] sm:$0xff]  ;;  %v761_v4 = vld [vmem:[%s1106_s1] sm:$0xff] }
  0x24   : > { %372 = vrot.lane.b32.xlu1 %v1011_v57, %s865_s29  ;;  %v275_v12 = vrot.slane %v274_v6, 4  ;;  %v315_v14 = vor.u32 %v314_v9, %v311_v8  ;;  %v356_v17 = vunpack.c.l.b16 %v266_v11  ;;  %v329_v21 = vshrl.u32 %v1016_v10, 16 }
  0x25   : > { %v375_v27 = vpack.c.b16 %v350_v16, %v349_v18  ;;  %v1028_v28 = vpack.c.b16 %v349_v18, %v348_v20  ;;  %v332_v31 = vshll.u32 %v1016_v10, 16  ;;  %v374_v1 = vunpack.c.l.b16 %v1000_v50 }
  0x26   : > { %v280_v22 = vsel %vm980_vm5, %v275_v12, %v279_v7  ;;  %v316_v24 = vrot.slane %v315_v14, 4  ;;  %v331_v13 = vrot.slane %v329_v21, 4  ;;  %v338_v35 = vshll.u32 %v221_v29, 16 }
  0x27   : > { %v357_v26 = vunpack.c.l.b16 %v280_v22  ;;  %377 = vrot.lane.b32.xlu2 %v375_v27, %s867_s4  ;;  %v334_v33 = vrot.slane %v332_v31, 5  ;;  %v351_v37 = vunpack.c.l.b16 %v970_v23  ;;  %v724_v38 = vrot.slane %v1000_v50, 9 }
  0x28   : > { %v321_v30 = vsel %vm980_vm5, %v316_v24, %v320_v15  ;;  %v326_v40 = vrot.slane %v219_v55, 5  ;;  %v340_v46 = vrot.slane %v338_v35, 5  ;;  %v382_v48 = vpack.c.b16 %v356_v17, %v355_v56 }
  0x29   : > { %v359_v3 = vpack.c.b16 %v357_v26, %v356_v17  ;;  %v381_v32 = vunpack.c.l.b16 %v321_v30  ;;  %v335_v41 = vor.u32 %v334_v33, %v331_v13  ;;  %v376_v42 = vpack.c.b16 %v374_v1, %v351_v37 }
  0x2a   : > { %v327_v49 = vsel %vm941_vm2, %v724_v38, %v326_v40  ;;  %v1039_v51 = vpack.c.b16 %v351_v37, %v350_v16  ;;  %v389_v53 = vpack.c.b16 %v366_v44, %v365_v25  ;;  %v395_v34 = vunpack.c.l.b16 %v1016_v10  ;;  %v767_v44 = vld [vmem:[%s1106_s1 + $0x30] sm:$0x30] }
  0x2b   : > { %362 = vrot.lane.b32.xlu0 %v359_v3, %s866_s30  ;;  %v383_v36 = vpack.c.b16 %v381_v32, %v357_v26  ;;  %v336_v45 = vrot.slane %v335_v41, 4  ;;  %v388_v23 = vunpack.c.l.b16 %v327_v49  ;;  %v725_v56 = vrot.slane %v1016_v10, 9 }
  0x2c   : > { %v346_v58 = vrot.slane %v221_v29, 5  ;;  %v396_v59 = vpack.c.b16 %v395_v34, %v374_v1 }
  0x2d   : > { %386 = vrot.lane.b32.xlu1 %v383_v36, %s868_s5  ;;  %v341_v52 = vsel %vm980_vm5, %v336_v45, %v340_v46  ;;  %v390_v54 = vpack.c.b16 %v388_v23, %v367_v47  ;;  %v753_v47 = vor.u32 %v767_v44, %v752_v43 }
  0x2e   : > { %v401_v50 = vunpack.c.l.b16 %v341_v52  ;;  %v347_v19 = vsel %vm941_vm2, %v725_v56, %v346_v58 }
  0x2f   : > { %379 = vrot.lane.b32.xlu2 %v376_v42, %s867_s4  ;;  %v407_v25 = vunpack.c.l.b16 %v347_v19  ;;  %v517_v0 = vsel %vm515_vm6, %v753_v47, 0 }
  0x30   : > { %v402_v55 = vpack.c.b16 %v401_v50, %v381_v32  ;;  %520 = vmatpush.bf16.msra.mxu0 %v517_v0  ;;  %768 = vmatpush.bf16.msra.mxu1 %v517_v0 }
  0x31   : > { %v408_v39 = vpack.c.b16 %v407_v25, %v388_v23 }
  0x33   : > { %384 = vrot.lane.b32.xlu0 %v382_v48, %s868_s5 }
  0x34   : > { %521 = vmatpush.bf16.msra.mxu0 %v766_v60  ;;  %769 = vmatpush.bf16.msra.mxu1 %v766_v60 }
  0x35   : > { %397 = vrot.lane.b32.xlu1 %v1039_v51, %s869_s6 }
  0x37   : > { %391 = vrot.lane.b32.xlu2 %v389_v53, %s870_s7 }
  0x3b   : > { %393 = vrot.lane.b32.xlu0 %v390_v54, %s870_s7  ;;  %s713_s7 = sshll.u32 %s847_s12, 2 }
  0x3c   : > { %p194_p6 = scmp.lt.s32.totalorder %s713_s7, 7 }
  0x3d   : > { %405 = vrot.lane.b32.xlu1 %v402_v55, %s871_s8 }
  0x3e   : > { %s1126_s7 = smov (!%p194_p6, %s713_s7), 7 }
  0x3f   : > { %399 = vrot.lane.b32.xlu2 %v396_v59, %s869_s6 }
  0x43   : > { %403 = vrot.lane.b32.xlu0 %v359_v3, %s871_s8  ;;  %s714_s8 = sshll.u32 %s1124_s13, 3 }
  0x47   : > { %409 = vrot.lane.b32.xlu2 %v1011_v57, %s872_s9  ;;  %v765_v57 = vld [vmem:[%s1106_s1 + $0x20] sm:$0xff] }
  0x48   : > { %522 = vmatpush.bf16.msra.mxu0 %v765_v57  ;;  %770 = vmatpush.bf16.msra.mxu1 %v765_v57 }
  0x4b   : > { %411 = vrot.lane.b32.xlu0 %v408_v39, %s872_s9  ;;  %s197_s9 = sadd.s32 %s714_s8, %s1126_s7 }
  0x4c   : > { %523 = vmatpush.bf16.msra.mxu0 %v764_v61  ;;  %771 = vmatpush.bf16.msra.mxu1 %v764_v61  ;;  %s715_s10 = sshll.u32 %s197_s9, 2 }
  0x4d   : > { %s199_s20 = scalar_lea.vmem %s1107_s2, %s715_s10 }
  0x50   : > { %524 = vmatpush.bf16.msra.mxu0 %v763_v62  ;;  %772 = vmatpush.bf16.msra.mxu1 %v763_v62 }
  0x54   : > { %525 = vmatpush.bf16.msra.mxu0 %v762_v2  ;;  %773 = vmatpush.bf16.msra.mxu1 %v762_v2 }
  0x58   : > { %526 = vmatpush.bf16.msra.mxu0 %v761_v4  ;;  %774 = vmatpush.bf16.msra.mxu1 %v761_v4 }
  0x81   : > { %v378_v63 = vpop.permute.xlu2 %377 }
  0x89   : > { %v380_v7 = vpop.permute.xlu2 %379 }
  0x8e   : > { %v371_v5 = vpop.permute.xlu1 %370 }
  0x91   : > { %v392_v10 = vpop.permute.xlu2 %391 }
  0x95   : > { %v361_v6 = vpop.permute.xlu0 %360 }
  0x96   : > { %v373_v8 = vpop.permute.xlu1 %372  ;;  %v416_v14 = vsel %vm413_vm7, %v1028_v28, %v361_v6 }
  0x97   : > { %v422_v16 = vsel %vm420_vm8, %v416_v14, %v371_v5 }
  0x98   : > { %v427_v20 = vsel %vm425_vm9, %v422_v16, %v378_v63 }
  0x99   : > { %v400_v15 = vpop.permute.xlu2 %399 }
  0x9d   : > { %v363_v9 = vpop.permute.xlu0 %362 }
  0x9e   : > { %v419_v17 = vsel %vm413_vm7, %v1039_v51, %v363_v9 }
  0x9f   : > { %v387_v12 = vpop.permute.xlu1 %386  ;;  %v424_v22 = vsel %vm420_vm8, %v419_v17, %v373_v8 }
  0xa0   : > { %v429_v27 = vsel %vm425_vm9, %v424_v22, %v380_v7 }
  0xa1   : > { %v410_v29 = vpop.permute.xlu2 %409  ;;  %v434_v13 = vsel %vm430_vm10, %v429_v27, %v387_v12 }
  0xa5   : > { %v385_v11 = vpop.permute.xlu0 %384 }
  0xa6   : > { %v432_v21 = vsel %vm430_vm10, %v427_v20, %v385_v11 }
  0xa7   : > { %v398_v24 = vpop.permute.xlu1 %397  ;;  %v437_v26 = vsel %vm435_vm11, %v432_v21, %v392_v10 }
  0xa8   : > { %v442_v28 = vsel %vm440_vm12, %v437_v26, %v398_v24 }
  0xad   : > { %v394_v18 = vpop.permute.xlu0 %393 }
  0xae   : > { %v439_v3 = vsel %vm435_vm11, %v434_v13, %v394_v18 }
  0xaf   : > { %v444_v1 = vsel %vm440_vm12, %v439_v3, %v400_v15  ;;  %v406_v33 = vpop.permute.xlu1 %405 }
  0xb0   : > { %v449_v35 = vsel %vm445_vm14, %v444_v1, %v406_v33 }
  0xb5   : > { %v404_v30 = vpop.permute.xlu0 %403 }
  0xb6   : > { %v447_v31 = vsel %vm445_vm14, %v442_v28, %v404_v30 }
  0xb7   : > { %v452_v32 = vsel %vm450_vm13, %v447_v31, %v410_v29 }
  0xb8   : > { %754 = vmatmul.msk.bf16.vlgmr.msra.gmra.mxu0 %vm510_vm15, %v452_v32 }
  0xbd   : > { %v412_v36 = vpop.permute.xlu0 %411 }
  0xbe   : > { %v454_v37 = vsel %vm450_vm13, %v449_v35, %v412_v36 }
  0xbf   : > { %755 = vmatmul.msk.bf16.vlgmr.msra.gmra.mxu1 %vm510_vm15, %v454_v37 }
 0x135   : > { %v528_v38 = vpop.f32.mrf.mxu0 }
 0x136   : > { %v538_v40 = vpack.c.bf16 %v528_v38, %v528_v38 }
 0x138   : > { %543 = vst.msk [vmem:[%s199_s20] sm:$0xf] %vm542_vm0, %v538_v40 }
 0x13c   : > { %v533_v41 = vpop.f32.mrf.mxu1 }
 0x13d   : > { %v540_v42 = vpack.c.bf16 %v533_v41, %v533_v41  ;;  %v530_v45 = vpop.f32.mrf.mxu0 }
 0x13e   : > { %v539_v46 = vpack.c.bf16 %v530_v45, %v530_v45 }
 0x13f   : > { %545 = vst.msk [vmem:[%s199_s20 + $0x8] sm:$0xf] %vm542_vm0, %v540_v42 }
 0x140   : > { %544 = vst.msk [vmem:[%s199_s20 + $0x4] sm:$0xf] %vm542_vm0, %v539_v46 }
 0x143   : > { %550 = sbr.rel (%p756_p7) target bundleno = 330 (0x14a), region = 32 }
 0x144   : > { %v535_v48 = vpop.f32.mrf.mxu1 }
 0x145   : > { %v541_v49 = vpack.c.bf16 %v535_v48, %v535_v48 }
 0x147   : > { %546 = vst.msk [vmem:[%s199_s20 + $0xc] sm:$0xf] %vm542_vm0, %v541_v49 }
 0x148   : > { %vm551_vm1 = vcmask 58368   ;;  %v873_v51 = vmov 0.0  }
 0x149   : > { %552 = vst.msk [vmem:[%s934_s24] sm:$0x3] %vm551_vm1, %v873_v51 }
 0x14a PF: > { %vm554_vm2 = vcmask 64512   ;;  %v568_v52 = vmul.f32 %v528_v38, %v528_v38  ;;  %v569_v23 = vmul.f32 %v530_v45, %v530_v45  ;;  %v570_v50 = vmul.f32 %v533_v41, %v533_v41 }
 0x14b   : > { %v555_v53 = vsel %vm554_vm2, %v528_v38, 0.0  ;;  %v556_v54 = vsel %vm554_vm2, %v530_v45, 0.0  ;;  %v558_v55 = vsel %vm554_vm2, %v533_v41, 0.0  ;;  %v571_v56 = vmul.f32 %v535_v48, %v535_v48 }
 0x14c   : > { %v557_v34 = vadd.f32 %v556_v54, %v555_v53  ;;  %v572_v58 = vsel %vm554_vm2, %v568_v52, 0.0  ;;  %v573_v59 = vsel %vm554_vm2, %v569_v23, 0.0  ;;  %v560_v19 = vsel %vm554_vm2, %v535_v48, 0.0 }
 0x14d   : > { %v574_v25 = vadd.f32 %v573_v59, %v572_v58  ;;  %v575_v39 = vsel %vm554_vm2, %v570_v50, 0.0  ;;  %v577_v44 = vsel %vm554_vm2, %v571_v56, 0.0  ;;  %vm585_vm3 = vcmask 1040384  }
 0x14e   : > { %v559_v43 = vadd.f32 %v558_v55, %v557_v34  ;;  %vm588_vm4 = vcmask 58368  }
 0x14f   : > { %v576_v47 = vadd.f32 %v575_v39, %v574_v25 }
 0x150   : > { %v561_v0 = vadd.f32 %v560_v19, %v559_v43  ;;  %v553_v10 = vld [vmem:[%s934_s24] sm:$0x3] }
 0x151   : > { %v578_v60 = vadd.f32 %v577_v44, %v576_v47 }
 0x152   : > { %v562_v57 = vrot.slane %v561_v0, 4 }
 0x153   : > { %v579_v61 = vrot.slane %v578_v60, 4 }
 0x154   : > { %v563_v62 = vadd.f32 %v562_v57, %v561_v0 }
 0x155   : > { %v580_v63 = vadd.f32 %v579_v61, %v578_v60 }
 0x156   : > { %v564_v2 = vrot.slane %v563_v62, 2 }
 0x157   : > { %v581_v4 = vrot.slane %v580_v63, 2 }
 0x158   : > { %v565_v5 = vadd.f32 %v564_v2, %v563_v62 }
 0x159   : > { %v582_v6 = vadd.f32 %v581_v4, %v580_v63 }
 0x15a   : > { %v566_v7 = vrot.slane %v565_v5, 1 }
 0x15b   : > { %v583_v8 = vrot.slane %v582_v6, 1 }
 0x15c   : > { %v567_v9 = vadd.f32 %v566_v7, %v565_v5 }
 0x15d   : > { %v584_v11 = vadd.f32 %v583_v8, %v582_v6 }
 0x15f   : > { %v586_v12 = vsel %vm585_vm3, %v567_v9, %v584_v11 }
 0x160   : > { %v587_v14 = vadd.f32 %v586_v12, %v553_v10 }
 0x162   : > { %589 = vst.msk [vmem:[%s934_s24] sm:$0x3] %vm588_vm4, %v587_v14 }
 0x163 PF: > { %s14_s16 = sadd.s32 1, %s863_s16   ;;  %s1113_s12 = smov %s855_s14 }
 0x164   : > { %p11_p8 = scmp.ge.s32.totalorder %s14_s16, 6   ;;  %s1114_s13 = smov %s859_s15 }
 0x165   : > { %s1115_s14 = smov %s1118_s17  ;;  %s1116_s15 = smov %s1122_s18 }
 0x166   :  { %13 = sbr.rel (!%p11_p8) target bundleno = 3 (0x3), region = 75 }

</bundles_post_ra>
